<compile_context>
chip_gen: v7x
topology: tpu7x:2x2x1
jax: 0.10.0
libtpu: 0.0.40
codegen_flags: <defaults>
</compile_context>

<pallas_src>
import functools
import math

import jax
import jax.numpy as jnp
from jax.experimental import pallas as pl
from jax.experimental.pallas import tpu as pltpu


def _round_up(x, m):
    return (x + m - 1) // m * m


def _layer_att_kernel(x_ref, wq_ref, wk_ref, wv_ref,
                      bq_ref, bk_ref, bv_ref,
                      cnn_w_ref, cnn_b_ref, out_ref, *, layers, norm):
    """One batch tile: Q/K/V projections + layer attention + 1x1 conv."""
    wq = wq_ref[...]          # (F, O)   already transposed in the wrapper
    wk = wk_ref[...]
    wv = wv_ref[...]
    bq = bq_ref[...]          # (1, O)
    bk = bk_ref[...]
    bv = bv_ref[...]

    # Per-layer projections: clean 2-D MXU matmuls, f32 accumulation.
    q, k, v = [], [], []
    for l in range(layers):
        x_l = x_ref[l]        # (TB, F) static first-axis index (no copy)
        q.append(jnp.dot(x_l, wq, preferred_element_type=jnp.float32) + bq)
        k.append(jnp.dot(x_l, wk, preferred_element_type=jnp.float32) + bk)
        v.append(jnp.dot(x_l, wv, preferred_element_type=jnp.float32) + bv)

    # Attention scores s[i][j] = <q_i, k_j> * norm, each (TB, 1).
    s = [[jnp.sum(q[i] * k[j], axis=-1, keepdims=True) * norm
          for j in range(layers)] for i in range(layers)]

    # Softmax over dim=1 (over i, for every fixed column j) — nn.Softmax(dim=1).
    alpha = [[None] * layers for _ in range(layers)]
    for j in range(layers):
        cmax = s[0][j]
        for i in range(1, layers):
            cmax = jnp.maximum(cmax, s[i][j])
        ex = [jnp.exp(s[i][j] - cmax) for i in range(layers)]
        den = ex[0]
        for i in range(1, layers):
            den = den + ex[i]
        inv = 1.0 / den
        for i in range(layers):
            alpha[i][j] = ex[i] * inv

    # z_i = sum_j alpha[i][j] * v_j ; out = sum_i conv_w[i] * z_i + conv_b.
    acc = jnp.zeros(out_ref.shape, jnp.float32)
    for i in range(layers):
        z_i = alpha[i][0] * v[0]
        for j in range(1, layers):
            z_i = z_i + alpha[i][j] * v[j]
        acc = acc + cnn_w_ref[i:i + 1, :] * z_i   # (1, O) row broadcast
    out_ref[...] = (acc + cnn_b_ref[...]).astype(out_ref.dtype)


def layer_att_forward(x, params, *, block_b=128):
    """x: (num_nodes, layers, inSize)  ->  (num_nodes, outSize)."""
    B, L, F = x.shape
    O = params["q_weight"].shape[0]
    f32 = jnp.float32

    # Wrapper-side layout plumbing (free at the XLA/HBM level):
    wq_t = jnp.asarray(params["q_weight"], f32).T        # (F, O) — no in-kernel .T
    wk_t = jnp.asarray(params["k_weight"], f32).T
    wv_t = jnp.asarray(params["v_weight"], f32).T
    bq = jnp.asarray(params["q_bias"], f32).reshape(1, O)
    bk = jnp.asarray(params["k_bias"], f32).reshape(1, O)
    bv = jnp.asarray(params["v_bias"], f32).reshape(1, O)
    cw = jnp.asarray(params["attcnn_weight"], f32).reshape(L, 1)
    cw = jnp.broadcast_to(cw, (L, O))                    # (L, O)
    cb = jnp.broadcast_to(
        jnp.asarray(params["attcnn_bias"], f32).reshape(1, 1), (1, O))

    # Tile the node axis; pad to a multiple of the tile, slice afterwards.
    TB = min(block_b, _round_up(B, 8))
    B_pad = _round_up(B, TB)

    x_lbf = jnp.transpose(jnp.asarray(x, f32), (1, 0, 2))  # (L, B, F)
    if B_pad != B:
        x_lbf = jnp.pad(x_lbf, ((0, 0), (0, B_pad - B), (0, 0)))

    norm = 1.0 / math.sqrt(O)
    grid = (B_pad // TB,)

    kernel = functools.partial(_layer_att_kernel, layers=L, norm=norm)
    out = pl.pallas_call(
        kernel,
        out_shape=jax.ShapeDtypeStruct((B_pad, O), x.dtype),
        grid=grid,
        in_specs=[
            pl.BlockSpec((L, TB, F), lambda i: (0, i, 0)),   # x tile (streamed)
            pl.BlockSpec((F, O), lambda i: (0, 0)),          # Wq (resident)
            pl.BlockSpec((F, O), lambda i: (0, 0)),          # Wk
            pl.BlockSpec((F, O), lambda i: (0, 0)),          # Wv
            pl.BlockSpec((1, O), lambda i: (0, 0)),          # bq
            pl.BlockSpec((1, O), lambda i: (0, 0)),          # bk
            pl.BlockSpec((1, O), lambda i: (0, 0)),          # bv
            pl.BlockSpec((L, O), lambda i: (0, 0)),          # conv weight rows
            pl.BlockSpec((1, O), lambda i: (0, 0)),          # conv bias row
        ],
        out_specs=pl.BlockSpec((TB, O), lambda i: (i, 0)),
        compiler_params=pltpu.CompilerParams(
            dimension_semantics=("parallel",),
        ),
    )(x_lbf, wq_t, wk_t, wv_t, bq, bk, bv, cw, cb)

    return out[:B]


if __name__ == "__main__":
    # Small, module-consistent shapes: gcnlayers=2 -> layers=3 "tokens" per node.
    inSize, outSize, gcnlayers = 32, 32, 2
    layers = gcnlayers + 1
    num_nodes = 200          # deliberately not a multiple of the tile (tests padding)

    key = jax.random.PRNGKey(0)
    keys = jax.random.split(key, 9)

    def _uniform(k, shape, fan_in):
        bound = 1.0 / math.sqrt(fan_in)
        return jax.random.uniform(k, shape, jnp.float32, minval=-bound, maxval=bound)

    params = {
        "q_weight": _uniform(keys[0], (outSize, inSize), inSize),
        "q_bias": _uniform(keys[1], (outSize,), inSize),
        "k_weight": _uniform(keys[2], (outSize, inSize), inSize),
        "k_bias": _uniform(keys[3], (outSize,), inSize),
        "v_weight": _uniform(keys[4], (outSize, inSize), inSize),
        "v_bias": _uniform(keys[5], (outSize,), inSize),
        "attcnn_weight": _uniform(keys[6], (1, layers, 1), layers),
        "attcnn_bias": _uniform(keys[7], (1,), layers),
    }
    x = jax.random.normal(keys[8], (num_nodes, layers, inSize), jnp.float32)

    out = layer_att_forward(x, params, block_b=128)
    out = jax.block_until_ready(out)

    # Pure-JAX reference of the PyTorch forward.
    Q = x @ params["q_weight"].T + params["q_bias"]
    K = x @ params["k_weight"].T + params["k_bias"]
    V = x @ params["v_weight"].T + params["v_bias"]
    att = jnp.einsum("bld,bmd->blm", Q, K) * (1.0 / math.sqrt(outSize))
    alpha = jax.nn.softmax(att, axis=1)                 # dim=1, as in the module
    z = jnp.einsum("blm,bmd->bld", alpha, V)
    w_cnn = params["attcnn_weight"][0, :, 0]
    ref = jnp.einsum("bld,l->bd", z, w_cnn) + params["attcnn_bias"][0]

    assert out.shape == (num_nodes, outSize)
    max_err = float(jnp.max(jnp.abs(out - ref)))
    assert jnp.allclose(out, ref, atol=1e-4, rtol=1e-4), max_err

    print("KERNEL_OK")
</pallas_src>

<mosaic_0001>
module attributes {stable_mosaic.version = 11 : i64} {
  func.func @_layer_att_kernel(%arg0: i32, %arg1: memref<3x128x32xf32, #tpu.memory_space<vmem>>, %arg2: memref<32x32xf32, #tpu.memory_space<vmem>>, %arg3: memref<32x32xf32, #tpu.memory_space<vmem>>, %arg4: memref<32x32xf32, #tpu.memory_space<vmem>>, %arg5: memref<1x32xf32, #tpu.memory_space<vmem>>, %arg6: memref<1x32xf32, #tpu.memory_space<vmem>>, %arg7: memref<1x32xf32, #tpu.memory_space<vmem>>, %arg8: memref<3x32xf32, #tpu.memory_space<vmem>>, %arg9: memref<1x32xf32, #tpu.memory_space<vmem>>, %arg10: memref<128x32xf32, #tpu.memory_space<vmem>>) attributes {dimension_semantics = [#tpu.dimension_semantics<parallel>], iteration_bounds = array<i64: 2>, scalar_prefetch = 0 : i64, scratch_operands = 0 : i64, tpu.core_type = #tpu.core_type<tc>, window_params = [{transform_indices = @transform_0, window_bounds = array<i64: 3, 128, 32>}, {pipeline_mode = #tpu.pipeline_mode<synchronous>, transform_indices = @transform_1, window_bounds = array<i64: 32, 32>}, {pipeline_mode = #tpu.pipeline_mode<synchronous>, transform_indices = @transform_2, window_bounds = array<i64: 32, 32>}, {pipeline_mode = #tpu.pipeline_mode<synchronous>, transform_indices = @transform_3, window_bounds = array<i64: 32, 32>}, {pipeline_mode = #tpu.pipeline_mode<synchronous>, transform_indices = @transform_4, window_bounds = array<i64: 1, 32>}, {pipeline_mode = #tpu.pipeline_mode<synchronous>, transform_indices = @transform_5, window_bounds = array<i64: 1, 32>}, {pipeline_mode = #tpu.pipeline_mode<synchronous>, transform_indices = @transform_6, window_bounds = array<i64: 1, 32>}, {pipeline_mode = #tpu.pipeline_mode<synchronous>, transform_indices = @transform_7, window_bounds = array<i64: 3, 32>}, {pipeline_mode = #tpu.pipeline_mode<synchronous>, transform_indices = @transform_8, window_bounds = array<i64: 1, 32>}, {transform_indices = @transform_9, window_bounds = array<i64: 128, 32>}]} {
    %c0 = arith.constant 0 : index
    %c0_0 = arith.constant 0 : index
    %0 = vector.load %arg2[%c0, %c0_0] : memref<32x32xf32, #tpu.memory_space<vmem>>, vector<32x32xf32>
    %c0_1 = arith.constant 0 : index
    %c0_2 = arith.constant 0 : index
    %1 = vector.load %arg3[%c0_1, %c0_2] : memref<32x32xf32, #tpu.memory_space<vmem>>, vector<32x32xf32>
    %c0_3 = arith.constant 0 : index
    %c0_4 = arith.constant 0 : index
    %2 = vector.load %arg4[%c0_3, %c0_4] : memref<32x32xf32, #tpu.memory_space<vmem>>, vector<32x32xf32>
    %c0_5 = arith.constant 0 : index
    %c0_6 = arith.constant 0 : index
    %3 = vector.load %arg5[%c0_5, %c0_6] : memref<1x32xf32, #tpu.memory_space<vmem>>, vector<1x32xf32>
    %c0_7 = arith.constant 0 : index
    %c0_8 = arith.constant 0 : index
    %4 = vector.load %arg6[%c0_7, %c0_8] : memref<1x32xf32, #tpu.memory_space<vmem>>, vector<1x32xf32>
    %c0_9 = arith.constant 0 : index
    %c0_10 = arith.constant 0 : index
    %5 = vector.load %arg7[%c0_9, %c0_10] : memref<1x32xf32, #tpu.memory_space<vmem>>, vector<1x32xf32>
    %c0_11 = arith.constant 0 : index
    %c0_12 = arith.constant 0 : index
    %c0_13 = arith.constant 0 : index
    %6 = vector.load %arg1[%c0_11, %c0_12, %c0_13] : memref<3x128x32xf32, #tpu.memory_space<vmem>>, vector<1x128x32xf32>
    %7 = vector.shape_cast %6 : vector<1x128x32xf32> to vector<128x32xf32>
    %cst = arith.constant dense<0.000000e+00> : vector<128x32xf32>
    %8 = tpu.matmul %7, %0, %cst {dimension_numbers = #tpu.dot_dimension_numbers<[1], [0], [0], [1], [0, 0, 1, 1], [], []>} : vector<128x32xf32>, vector<32x32xf32>, vector<128x32xf32> -> vector<128x32xf32>
    %9 = vector.broadcast %3 : vector<1x32xf32> to vector<128x32xf32>
    %10 = arith.addf %8, %9 : vector<128x32xf32>
    %cst_14 = arith.constant dense<0.000000e+00> : vector<128x32xf32>
    %11 = tpu.matmul %7, %1, %cst_14 {dimension_numbers = #tpu.dot_dimension_numbers<[1], [0], [0], [1], [0, 0, 1, 1], [], []>} : vector<128x32xf32>, vector<32x32xf32>, vector<128x32xf32> -> vector<128x32xf32>
    %12 = vector.broadcast %4 : vector<1x32xf32> to vector<128x32xf32>
    %13 = arith.addf %11, %12 : vector<128x32xf32>
    %cst_15 = arith.constant dense<0.000000e+00> : vector<128x32xf32>
    %14 = tpu.matmul %7, %2, %cst_15 {dimension_numbers = #tpu.dot_dimension_numbers<[1], [0], [0], [1], [0, 0, 1, 1], [], []>} : vector<128x32xf32>, vector<32x32xf32>, vector<128x32xf32> -> vector<128x32xf32>
    %15 = vector.broadcast %5 : vector<1x32xf32> to vector<128x32xf32>
    %16 = arith.addf %14, %15 : vector<128x32xf32>
    %c1 = arith.constant 1 : index
    %c0_16 = arith.constant 0 : index
    %c0_17 = arith.constant 0 : index
    %17 = vector.load %arg1[%c1, %c0_16, %c0_17] : memref<3x128x32xf32, #tpu.memory_space<vmem>>, vector<1x128x32xf32>
    %18 = vector.shape_cast %17 : vector<1x128x32xf32> to vector<128x32xf32>
    %cst_18 = arith.constant dense<0.000000e+00> : vector<128x32xf32>
    %19 = tpu.matmul %18, %0, %cst_18 {dimension_numbers = #tpu.dot_dimension_numbers<[1], [0], [0], [1], [0, 0, 1, 1], [], []>} : vector<128x32xf32>, vector<32x32xf32>, vector<128x32xf32> -> vector<128x32xf32>
    %20 = vector.broadcast %3 : vector<1x32xf32> to vector<128x32xf32>
    %21 = arith.addf %19, %20 : vector<128x32xf32>
    %cst_19 = arith.constant dense<0.000000e+00> : vector<128x32xf32>
    %22 = tpu.matmul %18, %1, %cst_19 {dimension_numbers = #tpu.dot_dimension_numbers<[1], [0], [0], [1], [0, 0, 1, 1], [], []>} : vector<128x32xf32>, vector<32x32xf32>, vector<128x32xf32> -> vector<128x32xf32>
    %23 = vector.broadcast %4 : vector<1x32xf32> to vector<128x32xf32>
    %24 = arith.addf %22, %23 : vector<128x32xf32>
    %cst_20 = arith.constant dense<0.000000e+00> : vector<128x32xf32>
    %25 = tpu.matmul %18, %2, %cst_20 {dimension_numbers = #tpu.dot_dimension_numbers<[1], [0], [0], [1], [0, 0, 1, 1], [], []>} : vector<128x32xf32>, vector<32x32xf32>, vector<128x32xf32> -> vector<128x32xf32>
    %26 = vector.broadcast %5 : vector<1x32xf32> to vector<128x32xf32>
    %27 = arith.addf %25, %26 : vector<128x32xf32>
    %c2 = arith.constant 2 : index
    %c0_21 = arith.constant 0 : index
    %c0_22 = arith.constant 0 : index
    %28 = vector.load %arg1[%c2, %c0_21, %c0_22] : memref<3x128x32xf32, #tpu.memory_space<vmem>>, vector<1x128x32xf32>
    %29 = vector.shape_cast %28 : vector<1x128x32xf32> to vector<128x32xf32>
    %cst_23 = arith.constant dense<0.000000e+00> : vector<128x32xf32>
    %30 = tpu.matmul %29, %0, %cst_23 {dimension_numbers = #tpu.dot_dimension_numbers<[1], [0], [0], [1], [0, 0, 1, 1], [], []>} : vector<128x32xf32>, vector<32x32xf32>, vector<128x32xf32> -> vector<128x32xf32>
    %31 = vector.broadcast %3 : vector<1x32xf32> to vector<128x32xf32>
    %32 = arith.addf %30, %31 : vector<128x32xf32>
    %cst_24 = arith.constant dense<0.000000e+00> : vector<128x32xf32>
    %33 = tpu.matmul %29, %1, %cst_24 {dimension_numbers = #tpu.dot_dimension_numbers<[1], [0], [0], [1], [0, 0, 1, 1], [], []>} : vector<128x32xf32>, vector<32x32xf32>, vector<128x32xf32> -> vector<128x32xf32>
    %34 = vector.broadcast %4 : vector<1x32xf32> to vector<128x32xf32>
    %35 = arith.addf %33, %34 : vector<128x32xf32>
    %cst_25 = arith.constant dense<0.000000e+00> : vector<128x32xf32>
    %36 = tpu.matmul %29, %2, %cst_25 {dimension_numbers = #tpu.dot_dimension_numbers<[1], [0], [0], [1], [0, 0, 1, 1], [], []>} : vector<128x32xf32>, vector<32x32xf32>, vector<128x32xf32> -> vector<128x32xf32>
    %37 = vector.broadcast %5 : vector<1x32xf32> to vector<128x32xf32>
    %38 = arith.addf %36, %37 : vector<128x32xf32>
    %39 = arith.mulf %10, %13 : vector<128x32xf32>
    %cst_26 = arith.constant dense<0.000000e+00> : vector<128xf32>
    %40 = vector.multi_reduction <add>, %39, %cst_26 [1] : vector<128x32xf32> to vector<128xf32>
    %41 = vector.shape_cast %40 : vector<128xf32> to vector<128x1xf32>
    %cst_27 = arith.constant 0.176776692 : f32
    %42 = vector.broadcast %cst_27 : f32 to vector<128x1xf32>
    %43 = arith.mulf %41, %42 : vector<128x1xf32>
    %44 = arith.mulf %10, %24 : vector<128x32xf32>
    %cst_28 = arith.constant dense<0.000000e+00> : vector<128xf32>
    %45 = vector.multi_reduction <add>, %44, %cst_28 [1] : vector<128x32xf32> to vector<128xf32>
    %46 = vector.shape_cast %45 : vector<128xf32> to vector<128x1xf32>
    %cst_29 = arith.constant 0.176776692 : f32
    %47 = vector.broadcast %cst_29 : f32 to vector<128x1xf32>
    %48 = arith.mulf %46, %47 : vector<128x1xf32>
    %49 = arith.mulf %10, %35 : vector<128x32xf32>
    %cst_30 = arith.constant dense<0.000000e+00> : vector<128xf32>
    %50 = vector.multi_reduction <add>, %49, %cst_30 [1] : vector<128x32xf32> to vector<128xf32>
    %51 = vector.shape_cast %50 : vector<128xf32> to vector<128x1xf32>
    %cst_31 = arith.constant 0.176776692 : f32
    %52 = vector.broadcast %cst_31 : f32 to vector<128x1xf32>
    %53 = arith.mulf %51, %52 : vector<128x1xf32>
    %54 = arith.mulf %21, %13 : vector<128x32xf32>
    %cst_32 = arith.constant dense<0.000000e+00> : vector<128xf32>
    %55 = vector.multi_reduction <add>, %54, %cst_32 [1] : vector<128x32xf32> to vector<128xf32>
    %56 = vector.shape_cast %55 : vector<128xf32> to vector<128x1xf32>
    %cst_33 = arith.constant 0.176776692 : f32
    %57 = vector.broadcast %cst_33 : f32 to vector<128x1xf32>
    %58 = arith.mulf %56, %57 : vector<128x1xf32>
    %59 = arith.mulf %21, %24 : vector<128x32xf32>
    %cst_34 = arith.constant dense<0.000000e+00> : vector<128xf32>
    %60 = vector.multi_reduction <add>, %59, %cst_34 [1] : vector<128x32xf32> to vector<128xf32>
    %61 = vector.shape_cast %60 : vector<128xf32> to vector<128x1xf32>
    %cst_35 = arith.constant 0.176776692 : f32
    %62 = vector.broadcast %cst_35 : f32 to vector<128x1xf32>
    %63 = arith.mulf %61, %62 : vector<128x1xf32>
    %64 = arith.mulf %21, %35 : vector<128x32xf32>
    %cst_36 = arith.constant dense<0.000000e+00> : vector<128xf32>
    %65 = vector.multi_reduction <add>, %64, %cst_36 [1] : vector<128x32xf32> to vector<128xf32>
    %66 = vector.shape_cast %65 : vector<128xf32> to vector<128x1xf32>
    %cst_37 = arith.constant 0.176776692 : f32
    %67 = vector.broadcast %cst_37 : f32 to vector<128x1xf32>
    %68 = arith.mulf %66, %67 : vector<128x1xf32>
    %69 = arith.mulf %32, %13 : vector<128x32xf32>
    %cst_38 = arith.constant dense<0.000000e+00> : vector<128xf32>
    %70 = vector.multi_reduction <add>, %69, %cst_38 [1] : vector<128x32xf32> to vector<128xf32>
    %71 = vector.shape_cast %70 : vector<128xf32> to vector<128x1xf32>
    %cst_39 = arith.constant 0.176776692 : f32
    %72 = vector.broadcast %cst_39 : f32 to vector<128x1xf32>
    %73 = arith.mulf %71, %72 : vector<128x1xf32>
    %74 = arith.mulf %32, %24 : vector<128x32xf32>
    %cst_40 = arith.constant dense<0.000000e+00> : vector<128xf32>
    %75 = vector.multi_reduction <add>, %74, %cst_40 [1] : vector<128x32xf32> to vector<128xf32>
    %76 = vector.shape_cast %75 : vector<128xf32> to vector<128x1xf32>
    %cst_41 = arith.constant 0.176776692 : f32
    %77 = vector.broadcast %cst_41 : f32 to vector<128x1xf32>
    %78 = arith.mulf %76, %77 : vector<128x1xf32>
    %79 = arith.mulf %32, %35 : vector<128x32xf32>
    %cst_42 = arith.constant dense<0.000000e+00> : vector<128xf32>
    %80 = vector.multi_reduction <add>, %79, %cst_42 [1] : vector<128x32xf32> to vector<128xf32>
    %81 = vector.shape_cast %80 : vector<128xf32> to vector<128x1xf32>
    %cst_43 = arith.constant 0.176776692 : f32
    %82 = vector.broadcast %cst_43 : f32 to vector<128x1xf32>
    %83 = arith.mulf %81, %82 : vector<128x1xf32>
    %84 = arith.maximumf %43, %58 : vector<128x1xf32>
    %85 = arith.maximumf %84, %73 : vector<128x1xf32>
    %86 = arith.subf %43, %85 : vector<128x1xf32>
    %87 = math.exp %86 : vector<128x1xf32>
    %88 = arith.subf %58, %85 : vector<128x1xf32>
    %89 = math.exp %88 : vector<128x1xf32>
    %90 = arith.subf %73, %85 : vector<128x1xf32>
    %91 = math.exp %90 : vector<128x1xf32>
    %92 = arith.addf %87, %89 : vector<128x1xf32>
    %93 = arith.addf %92, %91 : vector<128x1xf32>
    %cst_44 = arith.constant 1.000000e+00 : f32
    %94 = vector.broadcast %cst_44 : f32 to vector<128x1xf32>
    %95 = arith.divf %94, %93 : vector<128x1xf32>
    %96 = arith.mulf %87, %95 : vector<128x1xf32>
    %97 = arith.mulf %89, %95 : vector<128x1xf32>
    %98 = arith.mulf %91, %95 : vector<128x1xf32>
    %99 = arith.maximumf %48, %63 : vector<128x1xf32>
    %100 = arith.maximumf %99, %78 : vector<128x1xf32>
    %101 = arith.subf %48, %100 : vector<128x1xf32>
    %102 = math.exp %101 : vector<128x1xf32>
    %103 = arith.subf %63, %100 : vector<128x1xf32>
    %104 = math.exp %103 : vector<128x1xf32>
    %105 = arith.subf %78, %100 : vector<128x1xf32>
    %106 = math.exp %105 : vector<128x1xf32>
    %107 = arith.addf %102, %104 : vector<128x1xf32>
    %108 = arith.addf %107, %106 : vector<128x1xf32>
    %cst_45 = arith.constant 1.000000e+00 : f32
    %109 = vector.broadcast %cst_45 : f32 to vector<128x1xf32>
    %110 = arith.divf %109, %108 : vector<128x1xf32>
    %111 = arith.mulf %102, %110 : vector<128x1xf32>
    %112 = arith.mulf %104, %110 : vector<128x1xf32>
    %113 = arith.mulf %106, %110 : vector<128x1xf32>
    %114 = arith.maximumf %53, %68 : vector<128x1xf32>
    %115 = arith.maximumf %114, %83 : vector<128x1xf32>
    %116 = arith.subf %53, %115 : vector<128x1xf32>
    %117 = math.exp %116 : vector<128x1xf32>
    %118 = arith.subf %68, %115 : vector<128x1xf32>
    %119 = math.exp %118 : vector<128x1xf32>
    %120 = arith.subf %83, %115 : vector<128x1xf32>
    %121 = math.exp %120 : vector<128x1xf32>
    %122 = arith.addf %117, %119 : vector<128x1xf32>
    %123 = arith.addf %122, %121 : vector<128x1xf32>
    %cst_46 = arith.constant 1.000000e+00 : f32
    %124 = vector.broadcast %cst_46 : f32 to vector<128x1xf32>
    %125 = arith.divf %124, %123 : vector<128x1xf32>
    %126 = arith.mulf %117, %125 : vector<128x1xf32>
    %127 = arith.mulf %119, %125 : vector<128x1xf32>
    %128 = arith.mulf %121, %125 : vector<128x1xf32>
    %cst_47 = arith.constant 0.000000e+00 : f32
    %129 = vector.broadcast %cst_47 : f32 to vector<128x32xf32>
    %130 = vector.broadcast %96 : vector<128x1xf32> to vector<128x32xf32>
    %131 = arith.mulf %130, %16 : vector<128x32xf32>
    %132 = vector.broadcast %111 : vector<128x1xf32> to vector<128x32xf32>
    %133 = arith.mulf %132, %27 : vector<128x32xf32>
    %134 = arith.addf %131, %133 : vector<128x32xf32>
    %135 = vector.broadcast %126 : vector<128x1xf32> to vector<128x32xf32>
    %136 = arith.mulf %135, %38 : vector<128x32xf32>
    %137 = arith.addf %134, %136 : vector<128x32xf32>
    %c0_48 = arith.constant 0 : index
    %c0_49 = arith.constant 0 : index
    %138 = vector.load %arg8[%c0_48, %c0_49] : memref<3x32xf32, #tpu.memory_space<vmem>>, vector<1x32xf32>
    %139 = vector.broadcast %138 : vector<1x32xf32> to vector<128x32xf32>
    %140 = arith.mulf %139, %137 : vector<128x32xf32>
    %141 = arith.addf %129, %140 : vector<128x32xf32>
    %142 = vector.broadcast %97 : vector<128x1xf32> to vector<128x32xf32>
    %143 = arith.mulf %142, %16 : vector<128x32xf32>
    %144 = vector.broadcast %112 : vector<128x1xf32> to vector<128x32xf32>
    %145 = arith.mulf %144, %27 : vector<128x32xf32>
    %146 = arith.addf %143, %145 : vector<128x32xf32>
    %147 = vector.broadcast %127 : vector<128x1xf32> to vector<128x32xf32>
    %148 = arith.mulf %147, %38 : vector<128x32xf32>
    %149 = arith.addf %146, %148 : vector<128x32xf32>
    %c1_50 = arith.constant 1 : index
    %c0_51 = arith.constant 0 : index
    %150 = vector.load %arg8[%c1_50, %c0_51] : memref<3x32xf32, #tpu.memory_space<vmem>>, vector<1x32xf32>
    %151 = vector.broadcast %150 : vector<1x32xf32> to vector<128x32xf32>
    %152 = arith.mulf %151, %149 : vector<128x32xf32>
    %153 = arith.addf %141, %152 : vector<128x32xf32>
    %154 = vector.broadcast %98 : vector<128x1xf32> to vector<128x32xf32>
    %155 = arith.mulf %154, %16 : vector<128x32xf32>
    %156 = vector.broadcast %113 : vector<128x1xf32> to vector<128x32xf32>
    %157 = arith.mulf %156, %27 : vector<128x32xf32>
    %158 = arith.addf %155, %157 : vector<128x32xf32>
    %159 = vector.broadcast %128 : vector<128x1xf32> to vector<128x32xf32>
    %160 = arith.mulf %159, %38 : vector<128x32xf32>
    %161 = arith.addf %158, %160 : vector<128x32xf32>
    %c2_52 = arith.constant 2 : index
    %c0_53 = arith.constant 0 : index
    %162 = vector.load %arg8[%c2_52, %c0_53] : memref<3x32xf32, #tpu.memory_space<vmem>>, vector<1x32xf32>
    %163 = vector.broadcast %162 : vector<1x32xf32> to vector<128x32xf32>
    %164 = arith.mulf %163, %161 : vector<128x32xf32>
    %165 = arith.addf %153, %164 : vector<128x32xf32>
    %c0_54 = arith.constant 0 : index
    %c0_55 = arith.constant 0 : index
    %166 = vector.load %arg9[%c0_54, %c0_55] : memref<1x32xf32, #tpu.memory_space<vmem>>, vector<1x32xf32>
    %167 = vector.broadcast %166 : vector<1x32xf32> to vector<128x32xf32>
    %168 = arith.addf %165, %167 : vector<128x32xf32>
    %c0_56 = arith.constant 0 : index
    %c0_57 = arith.constant 0 : index
    %169 = vector.load %arg10[%c0_56, %c0_57] : memref<128x32xf32, #tpu.memory_space<vmem>>, vector<128x32xf32>
    tpu.vector_store %arg10[%c0_56, %c0_57], %168 {strides = array<i32>} : memref<128x32xf32, #tpu.memory_space<vmem>>, vector<128x32xf32>,
    return
  }
  func.func @transform_0(%arg0: i32) -> (i32, i32, i32) {
    %c0_i32 = arith.constant 0 : i32
    %c0_i32_0 = arith.constant 0 : i32
    %c0_i32_1 = arith.constant 0 : i32
    return %c0_i32, %arg0, %c0_i32_0 : i32, i32, i32
  }
  func.func @transform_1(%arg0: i32) -> (i32, i32) {
    %c0_i32 = arith.constant 0 : i32
    %c0_i32_0 = arith.constant 0 : i32
    %c0_i32_1 = arith.constant 0 : i32
    return %c0_i32, %c0_i32_0 : i32, i32
  }
  func.func @transform_2(%arg0: i32) -> (i32, i32) {
    %c0_i32 = arith.constant 0 : i32
    %c0_i32_0 = arith.constant 0 : i32
    %c0_i32_1 = arith.constant 0 : i32
    return %c0_i32, %c0_i32_0 : i32, i32
  }
  func.func @transform_3(%arg0: i32) -> (i32, i32) {
    %c0_i32 = arith.constant 0 : i32
    %c0_i32_0 = arith.constant 0 : i32
    %c0_i32_1 = arith.constant 0 : i32
    return %c0_i32, %c0_i32_0 : i32, i32
  }
  func.func @transform_4(%arg0: i32) -> (i32, i32) {
    %c0_i32 = arith.constant 0 : i32
    %c0_i32_0 = arith.constant 0 : i32
    %c0_i32_1 = arith.constant 0 : i32
    return %c0_i32, %c0_i32_0 : i32, i32
  }
  func.func @transform_5(%arg0: i32) -> (i32, i32) {
    %c0_i32 = arith.constant 0 : i32
    %c0_i32_0 = arith.constant 0 : i32
    %c0_i32_1 = arith.constant 0 : i32
    return %c0_i32, %c0_i32_0 : i32, i32
  }
  func.func @transform_6(%arg0: i32) -> (i32, i32) {
    %c0_i32 = arith.constant 0 : i32
    %c0_i32_0 = arith.constant 0 : i32
    %c0_i32_1 = arith.constant 0 : i32
    return %c0_i32, %c0_i32_0 : i32, i32
  }
  func.func @transform_7(%arg0: i32) -> (i32, i32) {
    %c0_i32 = arith.constant 0 : i32
    %c0_i32_0 = arith.constant 0 : i32
    %c0_i32_1 = arith.constant 0 : i32
    return %c0_i32, %c0_i32_0 : i32, i32
  }
  func.func @transform_8(%arg0: i32) -> (i32, i32) {
    %c0_i32 = arith.constant 0 : i32
    %c0_i32_0 = arith.constant 0 : i32
    %c0_i32_1 = arith.constant 0 : i32
    return %c0_i32, %c0_i32_0 : i32, i32
  }
  func.func @transform_9(%arg0: i32) -> (i32, i32) {
    %c0_i32 = arith.constant 0 : i32
    %c0_i32_0 = arith.constant 0 : i32
    return %arg0, %c0_i32 : i32, i32
  }
}

</mosaic_0001>

<bundles_post_ra>
// kernel: tpu_custom_call.1
= control target key start
LH: loop header
LB: loop body
LE: loop exit
PB: predicated region body
PF: predicated region fallthrough
CT: control target
= control target key end

     0   :  { %s5356_s30 = smov 0   ;;  %s5358_s10 = smov 0   ;;  %s9060_s0 = inlined_call_operand.vmem [shape: f32[3,256,32], index: 0, kind: input, shape index: {}]   ;;  %s9061_s1 = inlined_call_operand.vmem [shape: f32[32,32], index: 1, kind: input, shape index: {}]   ;;  %s9062_s2 = inlined_call_operand.vmem [shape: f32[32,32], index: 2, kind: input, shape index: {}]   ;;  %s9063_s3 = inlined_call_operand.vmem [shape: f32[32,32], index: 3, kind: input, shape index: {}]   ;;  %s9064_s4 = inlined_call_operand.vmem [shape: f32[1,32], index: 4, kind: input, shape index: {}]   ;;  %s9065_s5 = inlined_call_operand.vmem [shape: f32[1,32], index: 5, kind: input, shape index: {}]   ;;  %s9066_s6 = inlined_call_operand.vmem [shape: f32[1,32], index: 6, kind: input, shape index: {}]   ;;  %s9067_s7 = inlined_call_operand.vmem [shape: f32[3,32], index: 7, kind: input, shape index: {}]   ;;  %s9068_s8 = inlined_call_operand.vmem [shape: f32[1,32], index: 8, kind: input, shape index: {}]   ;;  %s9069_s9 = inlined_call_operand.vmem [shape: f32[256,32], index: 9, kind: output, shape index: {}]  }
   0x1   :  { %s5360_s11 = smov 0  }
   0x2 LB: > { %s4127_s12 = sadd.s32 4294967295, %s5304_s11   ;;  %s5373_s13 = sadd.s32 1, %s5304_s11   ;;  %s5304_s11 = sphi %s5360_s11, %s9914_s11   ;;  %s5300_s10 = sphi %s5358_s10, %s9913_s10   ;;  %s5296_s30 = sphi %s5356_s30, %s9912_s30  }
   0x3   : > { %s23_s14 = ssub.s32 %s5304_s11, %s5373_s13  ;;  %s26_s15 = sadd.s32 1, %s5300_s10 }
   0x4   : > { %p24_p0 = scmp.eq.s32.totalorder %s23_s14, 0  ;;  %p33_p1 = scmp.ne.s32.totalorder %s5300_s10, %s5296_s30 }
   0x5   : > { %p34_p2 = scmp.eq.s32.totalorder %s5304_s11, 0  ;;  %p4130_p4 = scmp.ge.s32.totalorder %s5304_s11, 2 }
   0x6   : > { %s5382_s16 = scalar_select %p24_p0, %s5300_s10, %s26_s15  }
   0x7   : > { %p35_p3 = por %p34_p2, %p33_p1  ;;  %277 = sbr.rel (%p4130_p4) target bundleno = 43 (0x2b), region = 48 }
   0xe   : > { %280 = sbr.rel (!%p35_p3) target bundleno = 43 (0x2b), region = 52  ;;  %s282_s17 = sand.u32 (%p35_p3), 1, %s5300_s10  }
   0xf   : > { %s4321_s18 = sshll.u32 (%p35_p3), %s5304_s11, 7  ;;  %s4866_s19 = smul.u32 (%p35_p3), 384, %s282_s17 }
  0x10   : > { %s5390_s22 = scalar_lea.vmem (%p35_p3), %s9060_s0, %s4321_s18 }
  0x11   : > { %v409_v0 = vld [vmem:[%s5390_s22] sm:$0xff] (%p35_p3)  ;;  %v411_v1 = vld [vmem:[%s5390_s22 + $0x8] sm:$0xff] (%p35_p3)  ;;  %v413_v2 = vld [vmem:[%s5390_s22 + $0x10] sm:$0xff] (%p35_p3)  ;;  %s5398_s23 = scalar_lea.vmem (%p35_p3), [#allocation2], %s4866_s19 }
  0x12   : > { %v415_v3 = vld [vmem:[%s5390_s22 + $0x18] sm:$0xff] (%p35_p3)  ;;  %v417_v4 = vld [vmem:[%s5390_s22 + $0x20] sm:$0xff] (%p35_p3)  ;;  %v419_v5 = vld [vmem:[%s5390_s22 + $0x28] sm:$0xff] (%p35_p3)  ;;  %410 = vst [vmem:[%s5398_s23] sm:$0xff] (%p35_p3), %v409_v0 }
  0x13   : > { %412 = vst [vmem:[%s5398_s23 + $0x8] sm:$0xff] (%p35_p3), %v411_v1  ;;  %414 = vst [vmem:[%s5398_s23 + $0x10] sm:$0xff] (%p35_p3), %v413_v2  ;;  %v421_v6 = vld [vmem:[%s5390_s22 + $0x30] sm:$0xff] (%p35_p3)  ;;  %v423_v7 = vld [vmem:[%s5390_s22 + $0x38] sm:$0xff] (%p35_p3) }
  0x14   : > { %416 = vst [vmem:[%s5398_s23 + $0x18] sm:$0xff] (%p35_p3), %v415_v3  ;;  %418 = vst [vmem:[%s5398_s23 + $0x20] sm:$0xff] (%p35_p3), %v417_v4  ;;  %v425_v8 = vld [vmem:[%s5390_s22 + $0x40] sm:$0xff] (%p35_p3)  ;;  %v427_v9 = vld [vmem:[%s5390_s22 + $0x48] sm:$0xff] (%p35_p3) }
  0x15   : > { %420 = vst [vmem:[%s5398_s23 + $0x28] sm:$0xff] %v419_v5  ;;  %422 = vst [vmem:[%s5398_s23 + $0x30] sm:$0xff] %v421_v6  ;;  %v429_v10 = vld [vmem:[%s5390_s22 + $0x50] sm:$0xff]  ;;  %v431_v11 = vld [vmem:[%s5390_s22 + $0x58] sm:$0xff] }
  0x16   : > { %424 = vst [vmem:[%s5398_s23 + $0x38] sm:$0xff] %v423_v7  ;;  %426 = vst [vmem:[%s5398_s23 + $0x40] sm:$0xff] %v425_v8  ;;  %v433_v12 = vld [vmem:[%s5390_s22 + $0x60] sm:$0xff]  ;;  %v435_v13 = vld [vmem:[%s5390_s22 + $0x68] sm:$0xff] }
  0x17   : > { %428 = vst [vmem:[%s5398_s23 + $0x48] sm:$0xff] %v427_v9  ;;  %430 = vst [vmem:[%s5398_s23 + $0x50] sm:$0xff] %v429_v10  ;;  %v437_v14 = vld [vmem:[%s5390_s22 + $0x70] sm:$0xff]  ;;  %v439_v15 = vld [vmem:[%s5390_s22 + $0x78] sm:$0xff] }
  0x18   : > { %432 = vst [vmem:[%s5398_s23 + $0x58] sm:$0xff] %v431_v11  ;;  %434 = vst [vmem:[%s5398_s23 + $0x60] sm:$0xff] %v433_v12  ;;  %v441_v16 = vld [vmem:[%s5390_s22 + $0x100] sm:$0xff]  ;;  %v443_v17 = vld [vmem:[%s5390_s22 + $0x108] sm:$0xff] }
  0x19   : > { %436 = vst [vmem:[%s5398_s23 + $0x68] sm:$0xff] %v435_v13  ;;  %438 = vst [vmem:[%s5398_s23 + $0x70] sm:$0xff] %v437_v14  ;;  %v445_v18 = vld [vmem:[%s5390_s22 + $0x110] sm:$0xff]  ;;  %v447_v19 = vld [vmem:[%s5390_s22 + $0x118] sm:$0xff] }
  0x1a   : > { %440 = vst [vmem:[%s5398_s23 + $0x78] sm:$0xff] %v439_v15  ;;  %442 = vst [vmem:[%s5398_s23 + $0x80] sm:$0xff] %v441_v16  ;;  %v449_v20 = vld [vmem:[%s5390_s22 + $0x120] sm:$0xff]  ;;  %v451_v21 = vld [vmem:[%s5390_s22 + $0x128] sm:$0xff] }
  0x1b   : > { %444 = vst [vmem:[%s5398_s23 + $0x88] sm:$0xff] %v443_v17  ;;  %446 = vst [vmem:[%s5398_s23 + $0x90] sm:$0xff] %v445_v18  ;;  %v453_v22 = vld [vmem:[%s5390_s22 + $0x130] sm:$0xff]  ;;  %v455_v23 = vld [vmem:[%s5390_s22 + $0x138] sm:$0xff] }
  0x1c   : > { %448 = vst [vmem:[%s5398_s23 + $0x98] sm:$0xff] %v447_v19  ;;  %450 = vst [vmem:[%s5398_s23 + $0xa0] sm:$0xff] %v449_v20  ;;  %v457_v24 = vld [vmem:[%s5390_s22 + $0x140] sm:$0xff]  ;;  %v459_v25 = vld [vmem:[%s5390_s22 + $0x148] sm:$0xff] }
  0x1d   : > { %452 = vst [vmem:[%s5398_s23 + $0xa8] sm:$0xff] %v451_v21  ;;  %454 = vst [vmem:[%s5398_s23 + $0xb0] sm:$0xff] %v453_v22  ;;  %v461_v26 = vld [vmem:[%s5390_s22 + $0x150] sm:$0xff]  ;;  %v463_v27 = vld [vmem:[%s5390_s22 + $0x158] sm:$0xff] }
  0x1e   : > { %456 = vst [vmem:[%s5398_s23 + $0xb8] sm:$0xff] %v455_v23  ;;  %458 = vst [vmem:[%s5398_s23 + $0xc0] sm:$0xff] %v457_v24  ;;  %v465_v28 = vld [vmem:[%s5390_s22 + $0x160] sm:$0xff]  ;;  %v467_v29 = vld [vmem:[%s5390_s22 + $0x168] sm:$0xff] }
  0x1f   : > { %460 = vst [vmem:[%s5398_s23 + $0xc8] sm:$0xff] %v459_v25  ;;  %462 = vst [vmem:[%s5398_s23 + $0xd0] sm:$0xff] %v461_v26  ;;  %v469_v30 = vld [vmem:[%s5390_s22 + $0x170] sm:$0xff]  ;;  %v471_v31 = vld [vmem:[%s5390_s22 + $0x178] sm:$0xff] }
  0x20   : > { %464 = vst [vmem:[%s5398_s23 + $0xd8] sm:$0xff] %v463_v27  ;;  %466 = vst [vmem:[%s5398_s23 + $0xe0] sm:$0xff] %v465_v28  ;;  %v473_v32 = vld [vmem:[%s5390_s22 + $0x200] sm:$0xff]  ;;  %v475_v33 = vld [vmem:[%s5390_s22 + $0x208] sm:$0xff] }
  0x21   : > { %468 = vst [vmem:[%s5398_s23 + $0xe8] sm:$0xff] %v467_v29  ;;  %470 = vst [vmem:[%s5398_s23 + $0xf0] sm:$0xff] %v469_v30  ;;  %v477_v34 = vld [vmem:[%s5390_s22 + $0x210] sm:$0xff]  ;;  %v479_v35 = vld [vmem:[%s5390_s22 + $0x218] sm:$0xff] }
  0x22   : > { %472 = vst [vmem:[%s5398_s23 + $0xf8] sm:$0xff] %v471_v31  ;;  %474 = vst [vmem:[%s5398_s23 + $0x100] sm:$0xff] %v473_v32  ;;  %v481_v36 = vld [vmem:[%s5390_s22 + $0x220] sm:$0xff]  ;;  %v483_v37 = vld [vmem:[%s5390_s22 + $0x228] sm:$0xff] }
  0x23   : > { %476 = vst [vmem:[%s5398_s23 + $0x108] sm:$0xff] %v475_v33  ;;  %478 = vst [vmem:[%s5398_s23 + $0x110] sm:$0xff] %v477_v34  ;;  %v485_v38 = vld [vmem:[%s5390_s22 + $0x230] sm:$0xff]  ;;  %v487_v39 = vld [vmem:[%s5390_s22 + $0x238] sm:$0xff] }
  0x24   : > { %480 = vst [vmem:[%s5398_s23 + $0x118] sm:$0xff] %v479_v35  ;;  %482 = vst [vmem:[%s5398_s23 + $0x120] sm:$0xff] %v481_v36  ;;  %v489_v40 = vld [vmem:[%s5390_s22 + $0x240] sm:$0xff]  ;;  %v491_v41 = vld [vmem:[%s5390_s22 + $0x248] sm:$0xff] }
  0x25   : > { %484 = vst [vmem:[%s5398_s23 + $0x128] sm:$0xff] %v483_v37  ;;  %486 = vst [vmem:[%s5398_s23 + $0x130] sm:$0xff] %v485_v38  ;;  %v493_v42 = vld [vmem:[%s5390_s22 + $0x250] sm:$0xff]  ;;  %v495_v43 = vld [vmem:[%s5390_s22 + $0x258] sm:$0xff] }
  0x26   : > { %488 = vst [vmem:[%s5398_s23 + $0x138] sm:$0xff] %v487_v39  ;;  %490 = vst [vmem:[%s5398_s23 + $0x140] sm:$0xff] %v489_v40  ;;  %v497_v44 = vld [vmem:[%s5390_s22 + $0x260] sm:$0xff]  ;;  %v499_v45 = vld [vmem:[%s5390_s22 + $0x268] sm:$0xff] }
  0x27   : > { %492 = vst [vmem:[%s5398_s23 + $0x148] sm:$0xff] %v491_v41  ;;  %494 = vst [vmem:[%s5398_s23 + $0x150] sm:$0xff] %v493_v42  ;;  %v501_v46 = vld [vmem:[%s5390_s22 + $0x270] sm:$0xff]  ;;  %v503_v47 = vld [vmem:[%s5390_s22 + $0x278] sm:$0xff] }
  0x28   : > { %496 = vst [vmem:[%s5398_s23 + $0x158] sm:$0xff] %v495_v43  ;;  %498 = vst [vmem:[%s5398_s23 + $0x160] sm:$0xff] %v497_v44 }
  0x29   : > { %500 = vst [vmem:[%s5398_s23 + $0x168] sm:$0xff] %v499_v45  ;;  %502 = vst [vmem:[%s5398_s23 + $0x170] sm:$0xff] %v501_v46 }
  0x2a   : > { %504 = vst [vmem:[%s5398_s23 + $0x178] sm:$0xff] %v503_v47 }
  0x2b PF: > { %p4133_p5 = scmp.ge.s32.totalorder %s5304_s11, 1  ;;  %p509_p6 = scmp.lt.s32.totalorder %s5304_s11, 3 }
  0x2d   : > { %p510_p7 = pnand %p4133_p5, %p509_p6 }
  0x2f   : > { %513 = sbr.rel (%p510_p7) target bundleno = 904 (0x388), region = 90 }
  0x36   : > { %v558_v48 = vld [vmem:[%s9061_s1] sm:$0xff]  ;;  %v559_v49 = vld [vmem:[%s9061_s1 + $0x8] sm:$0xff]  ;;  %v560_v50 = vld [vmem:[%s9061_s1 + $0x10] sm:$0xff]  ;;  %s516_s14 = sand.u32 1, %s5296_s30   ;;  %vm595_vm0 = vcmask 261120   ;;  %s8322_s27 = sshll.u32 %s4127_s12, 4 }
  0x37   : > { %v5502_v51 = vpack.c.bf16 %v559_v49, %v558_v48  ;;  %v561_v52 = vld [vmem:[%s9061_s1 + $0x18] sm:$0xff]  ;;  %s4867_s18 = smul.u32 384, %s516_s14  ;;  %v562_v53 = vld [vmem:[%s9062_s2] sm:$0xff]  ;;  %v563_v55 = vld [vmem:[%s9062_s2 + $0x8] sm:$0xff]  ;;  %p553_p8 = scmp.lt.s32.totalorder %s8322_s27, 31 }
  0x38   : > { %v5510_v54 = vpack.c.bf16 %v561_v52, %v560_v50  ;;  %v566_v56 = vld [vmem:[%s9063_s3] sm:$0xff]  ;;  %v567_v57 = vld [vmem:[%s9063_s3 + $0x8] sm:$0xff]  ;;  %v5533_v60 = vpack.c.bf16 %v563_v55, %v562_v53  ;;  %v564_v62 = vld [vmem:[%s9062_s2 + $0x10] sm:$0xff] }
  0x39   : > { %4791 = vmatprep.subr.bf16.mxu0 %v5502_v51  ;;  %4862 = vmatprep.subr.bf16.mxu1 %v5502_v51  ;;  %s5525_s26 = scalar_lea.vmem [#allocation2], %s4867_s18  ;;  %v5535_v61 = vpack.c.bf16 %v567_v57, %v566_v56  ;;  %v565_v63 = vld [vmem:[%s9062_s2 + $0x18] sm:$0xff]  ;;  %v568_v0 = vld [vmem:[%s9063_s3 + $0x10] sm:$0xff]  ;;  %s9916_s27 = smov (!%p553_p8, %s8322_s27), 31 }
  0x3a   : > { %4793 = vmatpush3.bf16.msra.mxu0 %v5502_v51  ;;  %4864 = vmatpush3.bf16.msra.mxu1 %v5502_v51  ;;  %v573_v58 = vld [vmem:[%s5525_s26] sm:$0xff]  ;;  %v569_v1 = vld [vmem:[%s9063_s3 + $0x18] sm:$0xff]  ;;  %v574_v2 = vld [vmem:[%s5525_s26 + $0x8] sm:$0xff]  ;;  %v5564_v6 = vpack.c.bf16 %v565_v63, %v564_v62  ;;  %s4135_s17 = sshll.u32 %s9916_s27, 3 }
  0x3b   : > { %v5529_v59 = vld [vmem:[%s5525_s26 + $0x40] sm:$0xff]  ;;  %4795 = vmatprep.subr.bf16.mxu0 %v5510_v54  ;;  %4863 = vmatprep.subr.bf16.mxu1 %v5510_v54  ;;  %v5556_v3 = vld [vmem:[%s5525_s26 + $0x48] sm:$0xff]  ;;  %v575_v4 = vld [vmem:[%s5525_s26 + $0x10] sm:$0xff]  ;;  %v5566_v7 = vpack.c.bf16 %v569_v1, %v568_v0  ;;  %s8452_s22 = scalar_lea.vmem %s9069_s9, %s4135_s17 }
  0x3c   : > { %4510 = vmatprep.mubr.msk.f32.mxu0 %vm595_vm0, %v573_v58  ;;  %4522 = vmatprep.mubr.msk.f32.mxu1 %vm595_vm0, %v5529_v59  ;;  %v5562_v5 = vld [vmem:[%s5525_s26 + $0x50] sm:$0xff]  ;;  %v576_v8 = vld [vmem:[%s5525_s26 + $0x18] sm:$0xff]  ;;  %v577_v10 = vld [vmem:[%s5525_s26 + $0x20] sm:$0xff] }
  0x3d   : > { %v584_v9 = vld [vmem:[%s5525_s26 + $0x58] sm:$0xff]  ;;  %v585_v11 = vld [vmem:[%s5525_s26 + $0x60] sm:$0xff]  ;;  %v578_v12 = vld [vmem:[%s5525_s26 + $0x28] sm:$0xff] }
  0x3e   : > { %4797 = vmatpush3.bf16.msra.mxu0 %v5510_v54  ;;  %4865 = vmatpush3.bf16.msra.mxu1 %v5510_v54  ;;  %v586_v13 = vld [vmem:[%s5525_s26 + $0x68] sm:$0xff]  ;;  %v579_v14 = vld [vmem:[%s5525_s26 + $0x30] sm:$0xff]  ;;  %v580_v16 = vld [vmem:[%s5525_s26 + $0x38] sm:$0xff] }
  0x3f   : > { %4799 = vmatprep.subr.bf16.mxu1 %v5533_v60  ;;  %4807 = vmatprep.subr.bf16.mxu0 %v5535_v61  ;;  %v587_v15 = vld [vmem:[%s5525_s26 + $0x70] sm:$0xff]  ;;  %v588_v17 = vld [vmem:[%s5525_s26 + $0x78] sm:$0xff]  ;;  %v4187_v18 = vld [vmem:[%s5525_s26 + $0x80] sm:$0xff] }
  0x40   : > { %v4188_v19 = vld [vmem:[%s5525_s26 + $0x88] sm:$0xff]  ;;  %v4189_v20 = vld [vmem:[%s5525_s26 + $0x90] sm:$0xff]  ;;  %v4190_v21 = vld [vmem:[%s5525_s26 + $0x98] sm:$0xff] }
  0x41   : > { %4511 = vmatmul.mubr.msk.f32.vlgmr.msra.gmra.mrb[0].mxu0 %vm595_vm0, %v574_v2  ;;  %4523 = vmatmul.mubr.msk.f32.vlgmr.msra.gmra.mrb[0].mxu1 %vm595_vm0, %v5556_v3  ;;  %v5659_v22 = vld [vmem:[%s5525_s26 + $0xa0] sm:$0xff]  ;;  %v4192_v23 = vld [vmem:[%s5525_s26 + $0xa8] sm:$0xff]  ;;  %v4193_v24 = vld [vmem:[%s5525_s26 + $0xb0] sm:$0xff] }
  0x42   : > { %4801 = vmatpush3.bf16.msra.mxu1 %v5533_v60  ;;  %4513 = vmatprep.mubr.msk.f32.mxu0 %vm595_vm0, %v575_v4  ;;  %v4194_v25 = vld [vmem:[%s5525_s26 + $0xb8] sm:$0xff]  ;;  %v4195_v26 = vld [vmem:[%s5525_s26 + $0xc0] sm:$0xff]  ;;  %v4196_v27 = vld [vmem:[%s5525_s26 + $0xc8] sm:$0xff] }
  0x43   : > { %4525 = vmatprep.mubr.msk.f32.mxu1 %vm595_vm0, %v5562_v5  ;;  %4809 = vmatpush3.bf16.msra.mxu0 %v5535_v61  ;;  %v4197_v28 = vld [vmem:[%s5525_s26 + $0xd0] sm:$0xff]  ;;  %v4198_v29 = vld [vmem:[%s5525_s26 + $0xd8] sm:$0xff]  ;;  %v4199_v30 = vld [vmem:[%s5525_s26 + $0xe0] sm:$0xff] }
  0x44   : > { %4803 = vmatprep.subr.bf16.mxu1 %v5564_v6  ;;  %4811 = vmatprep.subr.bf16.mxu0 %v5566_v7  ;;  %v4200_v31 = vld [vmem:[%s5525_s26 + $0xe8] sm:$0xff]  ;;  %v4201_v32 = vld [vmem:[%s5525_s26 + $0xf0] sm:$0xff]  ;;  %v4202_v33 = vld [vmem:[%s5525_s26 + $0xf8] sm:$0xff] }
  0x45   : > { %4514 = vmatmul.mubr.msk.f32.gmra.mrb[2].mxu0 %vm595_vm0, %v576_v8  ;;  %4526 = vmatmul.mubr.msk.f32.gmra.mrb[2].mxu1 %vm595_vm0, %v584_v9  ;;  %v4251_v34 = vld [vmem:[%s5525_s26 + $0x100] sm:$0xff]  ;;  %v4252_v35 = vld [vmem:[%s5525_s26 + $0x108] sm:$0xff]  ;;  %v4253_v36 = vld [vmem:[%s5525_s26 + $0x110] sm:$0xff] }
  0x46   : > { %4516 = vmatprep.mubr.msk.f32.mxu0 %vm595_vm0, %v577_v10  ;;  %4528 = vmatprep.mubr.msk.f32.mxu1 %vm595_vm0, %v585_v11  ;;  %v4254_v37 = vld [vmem:[%s5525_s26 + $0x118] sm:$0xff]  ;;  %v4255_v38 = vld [vmem:[%s5525_s26 + $0x120] sm:$0xff]  ;;  %v4256_v39 = vld [vmem:[%s5525_s26 + $0x128] sm:$0xff] }
  0x47   : > { %4805 = vmatpush3.bf16.msra.mxu1 %v5564_v6  ;;  %4813 = vmatpush3.bf16.msra.mxu0 %v5566_v7  ;;  %v4257_v40 = vld [vmem:[%s5525_s26 + $0x130] sm:$0xff]  ;;  %v4258_v41 = vld [vmem:[%s5525_s26 + $0x138] sm:$0xff]  ;;  %v4259_v42 = vld [vmem:[%s5525_s26 + $0x140] sm:$0xff] }
  0x48   : > { %4823 = vmatprep.subr.bf16.mxu0 %v5533_v60  ;;  %4815 = vmatprep.subr.bf16.mxu1 %v5502_v51  ;;  %v4260_v43 = vld [vmem:[%s5525_s26 + $0x148] sm:$0xff]  ;;  %v4261_v44 = vld [vmem:[%s5525_s26 + $0x150] sm:$0xff]  ;;  %v4262_v45 = vld [vmem:[%s5525_s26 + $0x158] sm:$0xff] }
  0x49   : > { %4517 = vmatmul.mubr.msk.f32.gmra.mrb[4].mxu0 %vm595_vm0, %v578_v12  ;;  %4529 = vmatmul.mubr.msk.f32.gmra.mrb[4].mxu1 %vm595_vm0, %v586_v13  ;;  %v4263_v46 = vld [vmem:[%s5525_s26 + $0x160] sm:$0xff]  ;;  %v4264_v47 = vld [vmem:[%s5525_s26 + $0x168] sm:$0xff]  ;;  %v4265_v48 = vld [vmem:[%s5525_s26 + $0x170] sm:$0xff] }
  0x4a   : > { %4519 = vmatprep.mubr.msk.f32.mxu0 %vm595_vm0, %v579_v14  ;;  %4531 = vmatprep.mubr.msk.f32.mxu1 %vm595_vm0, %v587_v15  ;;  %v4266_v49 = vld [vmem:[%s5525_s26 + $0x178] sm:$0xff] }
  0x4d   : > { %4520 = vmatmul.mubr.msk.f32.gmra.mrb[6].mxu0 %vm595_vm0, %v580_v16  ;;  %4532 = vmatmul.mubr.msk.f32.gmra.mrb[6].mxu1 %vm595_vm0, %v588_v17 }
  0x4e   : > { %4542 = vmatprep.mubr.msk.f32.mxu1 %vm595_vm0, %v573_v58  ;;  %4574 = vmatprep.mubr.msk.f32.mxu0 %vm595_vm0, %v573_v58 }
  0x51   : > { %4543 = vmatmul.mubr.msk.f32.vlgmr.msra.gmra.mrb[8].mxu1 %vm595_vm0, %v574_v2  ;;  %4575 = vmatmul.mubr.msk.f32.vlgmr.msra.gmra.mrb[8].mxu0 %vm595_vm0, %v574_v2  ;;  %v5814_v2 = vld [vmem:[%s9065_s5] ss:$0 sm:$0xff] }
  0x52   : > { %4545 = vmatprep.mubr.msk.f32.mxu1 %vm595_vm0, %v575_v4  ;;  %4577 = vmatprep.mubr.msk.f32.mxu0 %vm595_vm0, %v575_v4 }
  0x53   : > { %4825 = vmatpush3.bf16.msra.mxu0 %v5533_v60  ;;  %4817 = vmatpush3.bf16.msra.mxu1 %v5502_v51 }
  0x54   : > { %4827 = vmatprep.subr.bf16.mxu0 %v5564_v6  ;;  %4819 = vmatprep.subr.bf16.mxu1 %v5510_v54 }
  0x55   : > { %4546 = vmatmul.mubr.msk.f32.gmra.mrb[10].mxu1 %vm595_vm0, %v576_v8  ;;  %4578 = vmatmul.mubr.msk.f32.gmra.mrb[10].mxu0 %vm595_vm0, %v576_v8 }
  0x56   : > { %4548 = vmatprep.mubr.msk.f32.mxu1 %vm595_vm0, %v577_v10  ;;  %4580 = vmatprep.mubr.msk.f32.mxu0 %vm595_vm0, %v577_v10 }
  0x57   : > { %4829 = vmatpush3.bf16.msra.mxu0 %v5564_v6  ;;  %4821 = vmatpush3.bf16.msra.mxu1 %v5510_v54 }
  0x58   : > { %4831 = vmatprep.subr.bf16.mxu1 %v5535_v61  ;;  %4839 = vmatprep.subr.bf16.mxu0 %v5502_v51 }
  0x59   : > { %4549 = vmatmul.mubr.msk.f32.gmra.mrb[12].mxu1 %vm595_vm0, %v578_v12  ;;  %4581 = vmatmul.mubr.msk.f32.gmra.mrb[12].mxu0 %vm595_vm0, %v578_v12 }
  0x5a   : > { %4551 = vmatprep.mubr.msk.f32.mxu1 %vm595_vm0, %v579_v14  ;;  %4583 = vmatprep.mubr.msk.f32.mxu0 %vm595_vm0, %v579_v14 }
  0x5d   : > { %4552 = vmatmul.mubr.msk.f32.gmra.mrb[14].mxu1 %vm595_vm0, %v580_v16  ;;  %4584 = vmatmul.mubr.msk.f32.gmra.mrb[14].mxu0 %vm595_vm0, %v580_v16 }
  0x5e   : > { %4554 = vmatprep.mubr.msk.f32.mxu1 %vm595_vm0, %v5529_v59  ;;  %4586 = vmatprep.mubr.msk.f32.mxu0 %vm595_vm0, %v5529_v59 }
  0x61   : > { %4555 = vmatmul.mubr.msk.f32.gmra.mrb[16].mxu1 %vm595_vm0, %v5556_v3  ;;  %4587 = vmatmul.mubr.msk.f32.gmra.mrb[16].mxu0 %vm595_vm0, %v5556_v3  ;;  %v5819_v3 = vld [vmem:[%s9064_s4] ss:$0 sm:$0xff] }
  0x62   : > { %4557 = vmatprep.mubr.msk.f32.mxu1 %vm595_vm0, %v5562_v5  ;;  %4589 = vmatprep.mubr.msk.f32.mxu0 %vm595_vm0, %v5562_v5 }
  0x65   : > { %4558 = vmatmul.mubr.msk.f32.gmra.mrb[18].mxu1 %vm595_vm0, %v584_v9  ;;  %4590 = vmatmul.mubr.msk.f32.gmra.mrb[18].mxu0 %vm595_vm0, %v584_v9 }
  0x66   : > { %4560 = vmatprep.mubr.msk.f32.mxu1 %vm595_vm0, %v585_v11  ;;  %4592 = vmatprep.mubr.msk.f32.mxu0 %vm595_vm0, %v585_v11 }
  0x69   : > { %4561 = vmatmul.mubr.msk.f32.gmra.mrb[20].mxu1 %vm595_vm0, %v586_v13  ;;  %4593 = vmatmul.mubr.msk.f32.gmra.mrb[20].mxu0 %vm595_vm0, %v586_v13 }
  0x6a   : > { %4563 = vmatprep.mubr.msk.f32.mxu1 %vm595_vm0, %v587_v15  ;;  %4595 = vmatprep.mubr.msk.f32.mxu0 %vm595_vm0, %v587_v15 }
  0x6d   : > { %4564 = vmatmul.mubr.msk.f32.gmra.mrb[22].mxu1 %vm595_vm0, %v588_v17  ;;  %4596 = vmatmul.mubr.msk.f32.gmra.mrb[22].mxu0 %vm595_vm0, %v588_v17 }
  0x6e   : > { %4606 = vmatprep.mubr.msk.f32.mxu1 %vm595_vm0, %v4187_v18  ;;  %4638 = vmatprep.mubr.msk.f32.mxu0 %vm595_vm0, %v4187_v18 }
  0x71   : > { %4607 = vmatmul.mubr.msk.f32.vlgmr.msra.gmra.mrb[24].mxu1 %vm595_vm0, %v4188_v19  ;;  %4639 = vmatmul.mubr.msk.f32.vlgmr.msra.gmra.mrb[24].mxu0 %vm595_vm0, %v4188_v19 }
  0x72   : > { %4609 = vmatprep.mubr.msk.f32.mxu1 %vm595_vm0, %v4189_v20  ;;  %4641 = vmatprep.mubr.msk.f32.mxu0 %vm595_vm0, %v4189_v20 }
  0x73   : > { %4833 = vmatpush3.bf16.msra.mxu1 %v5535_v61  ;;  %4841 = vmatpush3.bf16.msra.mxu0 %v5502_v51 }
  0x74   : > { %4835 = vmatprep.subr.bf16.mxu1 %v5566_v7  ;;  %4843 = vmatprep.subr.bf16.mxu0 %v5510_v54 }
  0x75   : > { %4610 = vmatmul.mubr.msk.f32.gmra.mrb[26].mxu1 %vm595_vm0, %v4190_v21  ;;  %4642 = vmatmul.mubr.msk.f32.gmra.mrb[26].mxu0 %vm595_vm0, %v4190_v21 }
  0x76   : > { %4612 = vmatprep.mubr.msk.f32.mxu1 %vm595_vm0, %v5659_v22  ;;  %4644 = vmatprep.mubr.msk.f32.mxu0 %vm595_vm0, %v5659_v22 }
  0x77   : > { %4837 = vmatpush3.bf16.msra.mxu1 %v5566_v7  ;;  %4845 = vmatpush3.bf16.msra.mxu0 %v5510_v54 }
  0x78   : > { %4847 = vmatprep.subr.bf16.mxu1 %v5533_v60  ;;  %4855 = vmatprep.subr.bf16.mxu0 %v5535_v61 }
  0x79   : > { %4613 = vmatmul.mubr.msk.f32.gmra.mrb[28].mxu1 %vm595_vm0, %v4192_v23  ;;  %4645 = vmatmul.mubr.msk.f32.gmra.mrb[28].mxu0 %vm595_vm0, %v4192_v23 }
  0x7a   : > { %4615 = vmatprep.mubr.msk.f32.mxu1 %vm595_vm0, %v4193_v24  ;;  %4647 = vmatprep.mubr.msk.f32.mxu0 %vm595_vm0, %v4193_v24 }
  0x7d   : > { %4616 = vmatmul.mubr.msk.f32.gmra.mrb[30].mxu1 %vm595_vm0, %v4194_v25  ;;  %4648 = vmatmul.mubr.msk.f32.gmra.mrb[30].mxu0 %vm595_vm0, %v4194_v25 }
  0x7e   : > { %4618 = vmatprep.mubr.msk.f32.mxu1 %vm595_vm0, %v4195_v26  ;;  %4650 = vmatprep.mubr.msk.f32.mxu0 %vm595_vm0, %v4195_v26 }
  0x81   : > { %4619 = vmatmul.mubr.msk.f32.gmra.mrb[32].mxu1 %vm595_vm0, %v4196_v27  ;;  %4651 = vmatmul.mubr.msk.f32.gmra.mrb[32].mxu0 %vm595_vm0, %v4196_v27 }
  0x82   : > { %4621 = vmatprep.mubr.msk.f32.mxu1 %vm595_vm0, %v4197_v28  ;;  %4653 = vmatprep.mubr.msk.f32.mxu0 %vm595_vm0, %v4197_v28 }
  0x85   : > { %4622 = vmatmul.mubr.msk.f32.gmra.mrb[34].mxu1 %vm595_vm0, %v4198_v29  ;;  %4654 = vmatmul.mubr.msk.f32.gmra.mrb[34].mxu0 %vm595_vm0, %v4198_v29 }
  0x86   : > { %4624 = vmatprep.mubr.msk.f32.mxu1 %vm595_vm0, %v4199_v30  ;;  %4656 = vmatprep.mubr.msk.f32.mxu0 %vm595_vm0, %v4199_v30 }
  0x89   : > { %4625 = vmatmul.mubr.msk.f32.gmra.mrb[36].mxu1 %vm595_vm0, %v4200_v31  ;;  %4657 = vmatmul.mubr.msk.f32.gmra.mrb[36].mxu0 %vm595_vm0, %v4200_v31 }
  0x8a   : > { %4627 = vmatprep.mubr.msk.f32.mxu1 %vm595_vm0, %v4201_v32  ;;  %4659 = vmatprep.mubr.msk.f32.mxu0 %vm595_vm0, %v4201_v32 }
  0x8d   : > { %4628 = vmatmul.mubr.msk.f32.gmra.mrb[38].mxu1 %vm595_vm0, %v4202_v33  ;;  %4660 = vmatmul.mubr.msk.f32.gmra.mrb[38].mxu0 %vm595_vm0, %v4202_v33 }
  0x8e   : > { %4670 = vmatprep.mubr.msk.f32.mxu1 %vm595_vm0, %v4187_v18  ;;  %4702 = vmatprep.mubr.msk.f32.mxu0 %vm595_vm0, %v4251_v34 }
  0x91   : > { %4671 = vmatmul.mubr.msk.f32.vlgmr.msra.gmra.mrb[40].mxu1 %vm595_vm0, %v4188_v19  ;;  %4703 = vmatmul.mubr.msk.f32.vlgmr.msra.gmra.mrb[40].mxu0 %vm595_vm0, %v4252_v35 }
  0x92   : > { %4673 = vmatprep.mubr.msk.f32.mxu1 %vm595_vm0, %v4189_v20  ;;  %4705 = vmatprep.mubr.msk.f32.mxu0 %vm595_vm0, %v4253_v36 }
  0x93   : > { %4849 = vmatpush3.bf16.msra.mxu1 %v5533_v60  ;;  %4857 = vmatpush3.bf16.msra.mxu0 %v5535_v61 }
  0x94   : > { %4851 = vmatprep.subr.bf16.mxu1 %v5564_v6  ;;  %4859 = vmatprep.subr.bf16.mxu0 %v5566_v7 }
  0x95   : > { %4674 = vmatmul.mubr.msk.f32.gmra.mrb[42].mxu1 %vm595_vm0, %v4190_v21  ;;  %4706 = vmatmul.mubr.msk.f32.gmra.mrb[42].mxu0 %vm595_vm0, %v4254_v37 }
  0x96   : > { %4676 = vmatprep.mubr.msk.f32.mxu1 %vm595_vm0, %v5659_v22  ;;  %4708 = vmatprep.mubr.msk.f32.mxu0 %vm595_vm0, %v4255_v38 }
  0x97   : > { %4853 = vmatpush3.bf16.msra.mxu1 %v5564_v6  ;;  %4861 = vmatpush3.bf16.msra.mxu0 %v5566_v7 }
  0x99   : > { %4677 = vmatmul.mubr.msk.f32.gmra.mrb[44].mxu1 %vm595_vm0, %v4192_v23  ;;  %4709 = vmatmul.mubr.msk.f32.gmra.mrb[44].mxu0 %vm595_vm0, %v4256_v39 }
  0x9a   : > { %4679 = vmatprep.mubr.msk.f32.mxu1 %vm595_vm0, %v4193_v24  ;;  %4711 = vmatprep.mubr.msk.f32.mxu0 %vm595_vm0, %v4257_v40 }
  0x9d   : > { %4680 = vmatmul.mubr.msk.f32.gmra.mrb[46].mxu1 %vm595_vm0, %v4194_v25  ;;  %4712 = vmatmul.mubr.msk.f32.gmra.mrb[46].mxu0 %vm595_vm0, %v4258_v41 }
  0x9e   : > { %4682 = vmatprep.mubr.msk.f32.mxu1 %vm595_vm0, %v4195_v26  ;;  %4714 = vmatprep.mubr.msk.f32.mxu0 %vm595_vm0, %v4259_v42 }
  0xa1   : > { %4683 = vmatmul.mubr.msk.f32.gmra.mrb[48].mxu1 %vm595_vm0, %v4196_v27  ;;  %4715 = vmatmul.mubr.msk.f32.gmra.mrb[48].mxu0 %vm595_vm0, %v4260_v43 }
  0xa2   : > { %4685 = vmatprep.mubr.msk.f32.mxu1 %vm595_vm0, %v4197_v28  ;;  %4717 = vmatprep.mubr.msk.f32.mxu0 %vm595_vm0, %v4261_v44 }
  0xa5   : > { %4686 = vmatmul.mubr.msk.f32.gmra.mrb[50].mxu1 %vm595_vm0, %v4198_v29  ;;  %4718 = vmatmul.mubr.msk.f32.gmra.mrb[50].mxu0 %vm595_vm0, %v4262_v45 }
  0xa6   : > { %4688 = vmatprep.mubr.msk.f32.mxu1 %vm595_vm0, %v4199_v30  ;;  %4720 = vmatprep.mubr.msk.f32.mxu0 %vm595_vm0, %v4263_v46 }
  0xa9   : > { %4689 = vmatmul.mubr.msk.f32.gmra.mrb[52].mxu1 %vm595_vm0, %v4200_v31  ;;  %4721 = vmatmul.mubr.msk.f32.gmra.mrb[52].mxu0 %vm595_vm0, %v4264_v47 }
  0xaa   : > { %4691 = vmatprep.mubr.msk.f32.mxu1 %vm595_vm0, %v4201_v32  ;;  %4723 = vmatprep.mubr.msk.f32.mxu0 %vm595_vm0, %v4265_v48 }
  0xad   : > { %4692 = vmatmul.mubr.msk.f32.gmra.mrb[54].mxu1 %vm595_vm0, %v4202_v33  ;;  %4724 = vmatmul.mubr.msk.f32.gmra.mrb[54].mxu0 %vm595_vm0, %v4266_v49 }
  0xae   : > { %4734 = vmatprep.mubr.msk.f32.mxu1 %vm595_vm0, %v4251_v34  ;;  %4766 = vmatprep.mubr.msk.f32.mxu0 %vm595_vm0, %v4251_v34 }
  0xb1   : > { %4735 = vmatmul.mubr.msk.f32.vlgmr.msra.gmra.mrb[56].mxu1 %vm595_vm0, %v4252_v35  ;;  %4767 = vmatmul.mubr.msk.f32.vlgmr.msra.gmra.mrb[56].mxu0 %vm595_vm0, %v4252_v35 }
  0xb2   : > { %4737 = vmatprep.mubr.msk.f32.mxu1 %vm595_vm0, %v4253_v36  ;;  %4769 = vmatprep.mubr.msk.f32.mxu0 %vm595_vm0, %v4253_v36 }
  0xb5   : > { %4738 = vmatmul.mubr.msk.f32.gmra.mrb[58].mxu1 %vm595_vm0, %v4254_v37  ;;  %4770 = vmatmul.mubr.msk.f32.gmra.mrb[58].mxu0 %vm595_vm0, %v4254_v37 }
  0xb6   : > { %4740 = vmatprep.mubr.msk.f32.mxu1 %vm595_vm0, %v4255_v38  ;;  %4772 = vmatprep.mubr.msk.f32.mxu0 %vm595_vm0, %v4255_v38 }
  0xb9   : > { %4741 = vmatmul.mubr.msk.f32.gmra.mrb[60].mxu1 %vm595_vm0, %v4256_v39  ;;  %4773 = vmatmul.mubr.msk.f32.gmra.mrb[60].mxu0 %vm595_vm0, %v4256_v39 }
  0xba   : > { %4743 = vmatprep.mubr.msk.f32.mxu1 %vm595_vm0, %v4257_v40  ;;  %4775 = vmatprep.mubr.msk.f32.mxu0 %vm595_vm0, %v4257_v40 }
  0xbd   : > { %4744 = vmatmul.mubr.msk.f32.gmra.mrb[62].mxu1 %vm595_vm0, %v4258_v41  ;;  %4776 = vmatmul.mubr.msk.f32.gmra.mrb[62].mxu0 %vm595_vm0, %v4258_v41 }
  0xbe   : > { %4746 = vmatprep.mubr.msk.f32.mxu1 %vm595_vm0, %v4259_v42  ;;  %4778 = vmatprep.mubr.msk.f32.mxu0 %vm595_vm0, %v4259_v42 }
  0xc1   : > { %4747 = vmatmul.mubr.msk.f32.gmra.mrb[64].mxu1 %vm595_vm0, %v4260_v43  ;;  %4779 = vmatmul.mubr.msk.f32.gmra.mrb[64].mxu0 %vm595_vm0, %v4260_v43 }
  0xc2   : > { %4749 = vmatprep.mubr.msk.f32.mxu1 %vm595_vm0, %v4261_v44  ;;  %4781 = vmatprep.mubr.msk.f32.mxu0 %vm595_vm0, %v4261_v44 }
  0xc5   : > { %4750 = vmatmul.mubr.msk.f32.gmra.mrb[66].mxu1 %vm595_vm0, %v4262_v45  ;;  %4782 = vmatmul.mubr.msk.f32.gmra.mrb[66].mxu0 %vm595_vm0, %v4262_v45 }
  0xc6   : > { %4752 = vmatprep.mubr.msk.f32.mxu1 %vm595_vm0, %v4263_v46  ;;  %4784 = vmatprep.mubr.msk.f32.mxu0 %vm595_vm0, %v4263_v46 }
  0xc9   : > { %4753 = vmatmul.mubr.msk.f32.gmra.mrb[68].mxu1 %vm595_vm0, %v4264_v47  ;;  %4785 = vmatmul.mubr.msk.f32.gmra.mrb[68].mxu0 %vm595_vm0, %v4264_v47 }
  0xca   : > { %4755 = vmatprep.mubr.msk.f32.mxu1 %vm595_vm0, %v4265_v48  ;;  %4787 = vmatprep.mubr.msk.f32.mxu0 %vm595_vm0, %v4265_v48 }
  0xcd   : > { %4756 = vmatmul.mubr.msk.f32.gmra.mrb[70].mxu1 %vm595_vm0, %v4266_v49  ;;  %4788 = vmatmul.mubr.msk.f32.gmra.mrb[70].mxu0 %vm595_vm0, %v4266_v49 }
 0x114   : > { %v5795_v50 = vpop.f32.mrb[0].mxu1  ;;  %v4512_v51 = vpop.f32.mrb[0].mxu0 }
 0x115   : > { %v5797_v52 = vpop.f32.mrb[1].mxu1  ;;  %v710_v53 = vpop.f32.mrb[1].mxu0  ;;  %v5824_v6 = vadd.f32 %v4512_v51, %v5819_v3 }
 0x116   : > { %v5835_v11 = vadd.f32 %v5819_v3, %v710_v53 }
 0x117   : > { %9307 = vst [vmem:[#allocation4_spill] sm:$0xff] %v5824_v6 }
 0x118   : > { %v5799_v54 = vpop.f32.mrb[2].mxu1  ;;  %v4515_v55 = vpop.f32.mrb[2].mxu0  ;;  %9309 = vst [vmem:[#allocation6_spill] sm:$0xff] %v5835_v11 }
 0x119   : > { %v5801_v56 = vpop.f32.mrb[3].mxu1  ;;  %v720_v57 = vpop.f32.mrb[3].mxu0  ;;  %v5842_v15 = vadd.f32 %v4515_v55, %v5819_v3 }
 0x11a   : > { %v5856_v22 = vadd.f32 %v5819_v3, %v720_v57 }
 0x11b   : > { %9311 = vst [vmem:[#allocation8_spill] sm:$0xff] %v5842_v15 }
 0x11c   : > { %v5803_v58 = vpop.f32.mrb[4].mxu1  ;;  %v4518_v59 = vpop.f32.mrb[4].mxu0  ;;  %9313 = vst [vmem:[#allocation10_spill] sm:$0xff] %v5856_v22 }
 0x11d   : > { %v5805_v60 = vpop.f32.mrb[5].mxu1  ;;  %v730_v61 = vpop.f32.mrb[5].mxu0  ;;  %v5878_v34 = vadd.f32 %v4518_v59, %v5819_v3 }
 0x11e   : > { %v5872_v32 = vadd.f32 %v5819_v3, %v730_v61  ;;  %v5916_v61 = vadd.f32 %v5819_v3, %v5797_v52 }
 0x11f   : > { %9317 = vst [vmem:[#allocation14_spill] sm:$0xff] %v5878_v34 }
 0x120   : > { %v5807_v62 = vpop.f32.mrb[6].mxu1  ;;  %v4521_v63 = vpop.f32.mrb[6].mxu0  ;;  %9316 = vst [vmem:[#allocation13_spill] sm:$0xff] %v5872_v32  ;;  %9324 = vst [vmem:[#allocation21_spill] sm:$0xff] %v5916_v61 }
 0x121   : > { %v5809_v0 = vpop.f32.mrb[7].mxu1  ;;  %v740_v1 = vpop.f32.mrb[7].mxu0  ;;  %v5900_v46 = vadd.f32 %v4521_v63, %v5819_v3 }
 0x122   : > { %v5893_v43 = vadd.f32 %v5819_v3, %v740_v1 }
 0x123   : > { %9321 = vst [vmem:[#allocation18_spill] sm:$0xff] %v5900_v46 }
 0x124   : > { %v4544_v4 = vpop.f32.mrb[8].mxu1  ;;  %v5821_v5 = vpop.f32.mrb[8].mxu0  ;;  %9320 = vst [vmem:[#allocation17_spill] sm:$0xff] %v5893_v43 }
 0x125   : > { %9306 = vst [vmem:[#allocation3_spill] sm:$0xff] %v5821_v5  ;;  %v5827_v7 = vadd.f32 %v4544_v4, %v5814_v2  ;;  %v861_v8 = vpop.f32.mrb[9].mxu1  ;;  %v5829_v9 = vpop.f32.mrb[9].mxu0  ;;  %v5924_v4 = vadd.f32 %v5795_v50, %v5819_v3  ;;  %v5940_v50 = vadd.f32 %v5819_v3, %v5801_v56 }
 0x126   : > { %9308 = vst [vmem:[#allocation5_spill] sm:$0xff] %v5829_v9  ;;  %v5832_v10 = vadd.f32 %v5814_v2, %v861_v8 }
 0x127   : > { %v2092_v12 = vmul.f32 %v5827_v7, %v5824_v6  ;;  %9325 = vst [vmem:[#allocation22_spill] sm:$0xff] %v5924_v4  ;;  %9328 = vst [vmem:[#allocation25_spill] sm:$0xff] %v5940_v50 }
 0x128   : > { %v4547_v13 = vpop.f32.mrb[10].mxu1  ;;  %v5839_v14 = vpop.f32.mrb[10].mxu0  ;;  %v2091_v20 = vmul.f32 %v5832_v10, %v5835_v11 }
 0x129   : > { %9310 = vst [vmem:[#allocation7_spill] sm:$0xff] %v5839_v14  ;;  %v5845_v16 = vadd.f32 %v4547_v13, %v5814_v2  ;;  %v871_v17 = vpop.f32.mrb[11].mxu1  ;;  %v2110_v18 = vsel %vm595_vm0, %v2092_v12, 0.0  ;;  %v5848_v19 = vpop.f32.mrb[11].mxu0 }
 0x12a   : > { %9312 = vst [vmem:[#allocation9_spill] sm:$0xff] %v5848_v19  ;;  %v5853_v21 = vadd.f32 %v5814_v2, %v871_v17  ;;  %2111 = vadd.xlane.f32.xlu0 %v2110_v18  ;;  %v2107_v29 = vsel %vm595_vm0, %v2091_v20, 0.0 }
 0x12b   : > { %v2094_v23 = vmul.f32 %v5845_v16, %v5842_v15 }
 0x12c   : > { %v4550_v24 = vpop.f32.mrb[12].mxu1  ;;  %v5860_v25 = vpop.f32.mrb[12].mxu0  ;;  %v2093_v31 = vmul.f32 %v5853_v21, %v5856_v22 }
 0x12d   : > { %9314 = vst [vmem:[#allocation11_spill] sm:$0xff] %v5860_v25  ;;  %v5863_v26 = vadd.f32 %v4550_v24, %v5814_v2  ;;  %v881_v27 = vpop.f32.mrb[13].mxu1  ;;  %v2116_v28 = vsel %vm595_vm0, %v2094_v23, 0.0  ;;  %v5867_v30 = vpop.f32.mrb[13].mxu0 }
 0x12e   : > { %9315 = vst [vmem:[#allocation12_spill] sm:$0xff] %v5867_v30  ;;  %v5875_v33 = vadd.f32 %v5814_v2, %v881_v27  ;;  %2117 = vadd.xlane.f32.xlu1 %v2116_v28  ;;  %2108 = vadd.xlane.f32.xlu0 %v2107_v29  ;;  %v2113_v40 = vsel %vm595_vm0, %v2093_v31, 0.0  ;;  %v5948_v28 = vadd.f32 %v5799_v54, %v5819_v3 }
 0x12f   : > { %v2096_v42 = vmul.f32 %v5863_v26, %v5878_v34  ;;  %v5964_v54 = vadd.f32 %v5819_v3, %v5805_v60 }
 0x130   : > { %v4553_v35 = vpop.f32.mrb[14].mxu1  ;;  %v5880_v36 = vpop.f32.mrb[14].mxu0  ;;  %v2095_v37 = vmul.f32 %v5875_v33, %v5872_v32  ;;  %9329 = vst [vmem:[#allocation26_spill] sm:$0xff] %v5948_v28 }
 0x131   : > { %9318 = vst [vmem:[#allocation15_spill] sm:$0xff] %v5880_v36  ;;  %v5885_v38 = vadd.f32 %v4553_v35, %v5814_v2  ;;  %v891_v39 = vpop.f32.mrb[15].mxu1  ;;  %v5888_v41 = vpop.f32.mrb[15].mxu0  ;;  %v2122_v55 = vsel %vm595_vm0, %v2096_v42, 0.0  ;;  %9332 = vst [vmem:[#allocation29_spill] sm:$0xff] %v5964_v54 }
 0x132   : > { %9319 = vst [vmem:[#allocation16_spill] sm:$0xff] %v5888_v41  ;;  %v5896_v44 = vadd.f32 %v5814_v2, %v891_v39  ;;  %2114 = vadd.xlane.f32.xlu1 %v2113_v40  ;;  %v2119_v45 = vsel %vm595_vm0, %v2095_v37, 0.0 }
 0x133   : > { %2120 = vadd.xlane.f32.xlu0 %v2119_v45  ;;  %v2098_v59 = vmul.f32 %v5885_v38, %v5900_v46 }
 0x134   : > { %v4556_v47 = vpop.f32.mrb[16].mxu1  ;;  %v5902_v48 = vpop.f32.mrb[16].mxu0  ;;  %v2097_v49 = vmul.f32 %v5896_v44, %v5893_v43 }
 0x135   : > { %9322 = vst [vmem:[#allocation19_spill] sm:$0xff] %v5902_v48  ;;  %v5907_v51 = vadd.f32 %v4556_v47, %v5814_v2  ;;  %v901_v53 = vpop.f32.mrb[17].mxu1  ;;  %v5910_v57 = vpop.f32.mrb[17].mxu0  ;;  %v2128_v18 = vsel %vm595_vm0, %v2098_v59, 0.0 }
 0x136   : > { %9323 = vst [vmem:[#allocation20_spill] sm:$0xff] %v5910_v57  ;;  %v5919_v63 = vadd.f32 %v5814_v2, %v901_v53  ;;  %2123 = vadd.xlane.f32.xlu1 %v2122_v55  ;;  %v2125_v1 = vsel %vm595_vm0, %v2097_v49, 0.0  ;;  %v5972_v49 = vadd.f32 %v5803_v58, %v5819_v3  ;;  %v5988_v58 = vadd.f32 %v5819_v3, %v5809_v0 }
 0x137   : > { %2126 = vadd.xlane.f32.xlu0 %v2125_v1  ;;  %v2100_v23 = vmul.f32 %v5907_v51, %v5924_v4 }
 0x138   : > { %v4559_v8 = vpop.f32.mrb[18].mxu1  ;;  %v5926_v12 = vpop.f32.mrb[18].mxu0  ;;  %v2099_v13 = vmul.f32 %v5919_v63, %v5916_v61  ;;  %9333 = vst [vmem:[#allocation30_spill] sm:$0xff] %v5972_v49  ;;  %9336 = vst [vmem:[#allocation33_spill] sm:$0xff] %v5988_v58 }
 0x139   : > { %9326 = vst [vmem:[#allocation23_spill] sm:$0xff] %v5926_v12  ;;  %v5931_v52 = vadd.f32 %v4559_v8, %v5814_v2  ;;  %v911_v17 = vpop.f32.mrb[19].mxu1  ;;  %v5934_v20 = vpop.f32.mrb[19].mxu0  ;;  %v2134_v39 = vsel %vm595_vm0, %v2100_v23, 0.0 }
 0x13a   : > { %9327 = vst [vmem:[#allocation24_spill] sm:$0xff] %v5934_v20  ;;  %v5943_v24 = vadd.f32 %v5814_v2, %v911_v17  ;;  %2129 = vadd.xlane.f32.xlu1 %v2128_v18  ;;  %v2131_v27 = vsel %vm595_vm0, %v2099_v13, 0.0 }
 0x13b   : > { %2132 = vadd.xlane.f32.xlu0 %v2131_v27  ;;  %v2102_v42 = vmul.f32 %v5931_v52, %v5948_v28  ;;  %v5996_v27 = vadd.f32 %v5807_v62, %v5819_v3 }
 0x13c   : > { %v4562_v29 = vpop.f32.mrb[20].mxu1  ;;  %v5950_v31 = vpop.f32.mrb[20].mxu0  ;;  %v2101_v35 = vmul.f32 %v5943_v24, %v5940_v50 }
 0x13d   : > { %9330 = vst [vmem:[#allocation27_spill] sm:$0xff] %v5950_v31  ;;  %v5955_v56 = vadd.f32 %v4562_v29, %v5814_v2  ;;  %v921_v37 = vpop.f32.mrb[21].mxu1  ;;  %v5958_v40 = vpop.f32.mrb[21].mxu0  ;;  %v2140_v8 = vsel %vm595_vm0, %v2102_v42, 0.0  ;;  %9337 = vst [vmem:[#allocation34_spill] sm:$0xff] %v5996_v27 }
 0x13e   : > { %9331 = vst [vmem:[#allocation28_spill] sm:$0xff] %v5958_v40  ;;  %v5967_v45 = vadd.f32 %v5814_v2, %v921_v37  ;;  %2135 = vadd.xlane.f32.xlu1 %v2134_v39  ;;  %v2137_v47 = vsel %vm595_vm0, %v2101_v35, 0.0 }
 0x13f   : > { %2138 = vadd.xlane.f32.xlu0 %v2137_v47  ;;  %v2104_v17 = vmul.f32 %v5955_v56, %v5972_v49 }
 0x140   : > { %v4565_v53 = vpop.f32.mrb[22].mxu1  ;;  %v5974_v55 = vpop.f32.mrb[22].mxu0  ;;  %v2103_v59 = vmul.f32 %v5967_v45, %v5964_v54 }
 0x141   : > { %9334 = vst [vmem:[#allocation31_spill] sm:$0xff] %v5974_v55  ;;  %v5979_v60 = vadd.f32 %v4565_v53, %v5814_v2  ;;  %v931_v1 = vpop.f32.mrb[23].mxu1  ;;  %v5982_v13 = vpop.f32.mrb[23].mxu0  ;;  %v2146_v53 = vsel %vm595_vm0, %v2104_v17, 0.0 }
 0x142   : > { %9335 = vst [vmem:[#allocation32_spill] sm:$0xff] %v5982_v13  ;;  %v5991_v18 = vadd.f32 %v5814_v2, %v931_v1  ;;  %2141 = vadd.xlane.f32.xlu1 %v2140_v8  ;;  %v2143_v23 = vsel %vm595_vm0, %v2103_v59, 0.0 }
 0x143   : > { %2144 = vadd.xlane.f32.xlu0 %v2143_v23  ;;  %v2106_v62 = vmul.f32 %v5979_v60, %v5996_v27 }
 0x144   : > { %v4608_v29 = vpop.f32.mrb[24].mxu1  ;;  %v4640_v35 = vpop.f32.mrb[24].mxu0  ;;  %v2105_v37 = vmul.f32 %v5991_v18, %v5988_v58 }
 0x145   : > { %v6001_v39 = vadd.f32 %v4608_v29, %v5819_v3  ;;  %v6004_v0 = vadd.f32 %v4640_v35, %v5814_v2  ;;  %v1222_v42 = vpop.f32.mrb[25].mxu1  ;;  %v1367_v47 = vpop.f32.mrb[25].mxu0  ;;  %v2152_v55 = vsel %vm595_vm0, %v2106_v62, 0.0 }
 0x146   : > { %v6010_v59 = vadd.f32 %v5819_v3, %v1222_v42  ;;  %v6013_v1 = vadd.f32 %v5814_v2, %v1367_v47  ;;  %2147 = vadd.xlane.f32.xlu1 %v2146_v53  ;;  %v2149_v8 = vsel %vm595_vm0, %v2105_v37, 0.0 }
 0x147   : > { %9338 = vst [vmem:[#allocation35_spill] sm:$0xff] %v6001_v39  ;;  %2150 = vadd.xlane.f32.xlu0 %v2149_v8  ;;  %v2332_v23 = vmul.f32 %v6001_v39, %v5827_v7  ;;  %v2412_v29 = vmul.f32 %v6004_v0, %v6001_v39  ;;  %v2172_v40 = vmul.f32 %v6004_v0, %v5824_v6 }
 0x148   : > { %9339 = vst [vmem:[#allocation36_spill] sm:$0xff] %v6010_v59  ;;  %v4611_v17 = vpop.f32.mrb[26].mxu1  ;;  %v4643_v35 = vpop.f32.mrb[26].mxu0  ;;  %v2171_v13 = vmul.f32 %v6013_v1, %v5835_v11  ;;  %v2331_v42 = vmul.f32 %v6010_v59, %v5832_v10  ;;  %v2411_v47 = vmul.f32 %v6013_v1, %v6010_v59 }
 0x149   : > { %v6027_v37 = vadd.f32 %v4611_v17, %v5819_v3  ;;  %v1232_v53 = vpop.f32.mrb[27].mxu1  ;;  %v1377_v8 = vpop.f32.mrb[27].mxu0  ;;  %v6033_v31 = vadd.f32 %v4643_v35, %v5814_v2  ;;  %v2190_v41 = vsel %vm595_vm0, %v2172_v40, 0.0  ;;  %v2430_v49 = vsel %vm595_vm0, %v2412_v29, 0.0 }
 0x14a   : > { %v6036_v20 = vadd.f32 %v5819_v3, %v1232_v53  ;;  %v6039_v12 = vadd.f32 %v5814_v2, %v1377_v8  ;;  %2153 = vadd.xlane.f32.xlu1 %v2152_v55  ;;  %v2187_v17 = vsel %vm595_vm0, %v2171_v13, 0.0  ;;  %v2347_v19 = vsel %vm595_vm0, %v2331_v42, 0.0 }
 0x14b   : > { %9340 = vst [vmem:[#allocation37_spill] sm:$0xff] %v6027_v37  ;;  %2188 = vadd.xlane.f32.xlu0 %v2187_v17  ;;  %v6044_v57 = vmul.f32 %v6027_v37, %v5845_v16  ;;  %v6054_v8 = vmul.f32 %v6033_v31, %v6027_v37  ;;  %v2427_v5 = vsel %vm595_vm0, %v2411_v47, 0.0 }
 0x14c   : > { %9341 = vst [vmem:[#allocation38_spill] sm:$0xff] %v6036_v20  ;;  %v4614_v62 = vpop.f32.mrb[28].mxu1  ;;  %v4646_v48 = vpop.f32.mrb[28].mxu0  ;;  %v2333_v35 = vmul.f32 %v6036_v20, %v5853_v21  ;;  %v6050_v53 = vmul.f32 %v6039_v12, %v6036_v20 }
 0x14d   : > { %v6057_v55 = vadd.f32 %v4614_v62, %v5819_v3  ;;  %v1242_v13 = vpop.f32.mrb[29].mxu1  ;;  %v1387_v17 = vpop.f32.mrb[29].mxu0  ;;  %v6061_v36 = vadd.f32 %v4646_v48, %v5814_v2 }
 0x14e   : > { %v6064_v30 = vadd.f32 %v5819_v3, %v1242_v13  ;;  %v6067_v25 = vadd.f32 %v5814_v2, %v1387_v17  ;;  %2191 = vadd.xlane.f32.xlu1 %v2190_v41  ;;  %v2350_v17 = vsel %vm595_vm0, %v2332_v23, 0.0 }
 0x14f   : > { %9342 = vst [vmem:[#allocation39_spill] sm:$0xff] %v6057_v55  ;;  %2348 = vadd.xlane.f32.xlu0 %v2347_v19  ;;  %v6072_v62 = vmul.f32 %v6057_v55, %v5863_v26  ;;  %v6084_v41 = vmul.f32 %v6061_v36, %v6057_v55 }
 0x150   : > { %9343 = vst [vmem:[#allocation40_spill] sm:$0xff] %v6064_v30  ;;  %v4617_v14 = vpop.f32.mrb[30].mxu1  ;;  %v4649_v9 = vpop.f32.mrb[30].mxu0  ;;  %v6076_v48 = vmul.f32 %v6064_v30, %v5875_v33  ;;  %v6080_v40 = vmul.f32 %v6067_v25, %v6064_v30  ;;  %v2174_v30 = vmul.f32 %v6033_v31, %v5842_v15 }
 0x151   : > { %v6087_v19 = vadd.f32 %v4617_v14, %v5819_v3  ;;  %v1252_v42 = vpop.f32.mrb[31].mxu1  ;;  %v1397_v13 = vpop.f32.mrb[31].mxu0  ;;  %v6092_v6 = vadd.f32 %v4649_v9, %v5814_v2  ;;  %v2173_v14 = vmul.f32 %v6039_v12, %v5856_v22 }
 0x152   : > { %v6095_v11 = vadd.f32 %v5819_v3, %v1252_v42  ;;  %v6098_v27 = vadd.f32 %v5814_v2, %v1397_v13  ;;  %2351 = vadd.xlane.f32.xlu1 %v2350_v17  ;;  %v2196_v15 = vsel %vm595_vm0, %v2174_v30, 0.0 }
 0x153   : > { %9344 = vst [vmem:[#allocation41_spill] sm:$0xff] %v6087_v19  ;;  %2428 = vadd.xlane.f32.xlu0 %v2427_v5  ;;  %v6104_v58 = vmul.f32 %v6087_v19, %v5885_v38  ;;  %v6116_v13 = vmul.f32 %v6092_v6, %v6087_v19 }
 0x154   : > { %9345 = vst [vmem:[#allocation42_spill] sm:$0xff] %v6095_v11  ;;  %v4620_v23 = vpop.f32.mrb[32].mxu1  ;;  %v4652_v47 = vpop.f32.mrb[32].mxu0  ;;  %v6108_v9 = vmul.f32 %v6095_v11, %v5896_v44  ;;  %v6112_v42 = vmul.f32 %v6098_v27, %v6095_v11 }
 0x155   : > { %v6119_v5 = vadd.f32 %v4620_v23, %v5819_v3  ;;  %v1262_v17 = vpop.f32.mrb[33].mxu1  ;;  %v1407_v22 = vpop.f32.mrb[33].mxu0  ;;  %v6125_v55 = vadd.f32 %v4652_v47, %v5814_v2  ;;  %v2193_v23 = vsel %vm595_vm0, %v2173_v14, 0.0 }
 0x156   : > { %v6128_v11 = vadd.f32 %v5819_v3, %v1262_v17  ;;  %v6131_v54 = vadd.f32 %v5814_v2, %v1407_v22  ;;  %2431 = vadd.xlane.f32.xlu1 %v2430_v49 }
 0x157   : > { %9346 = vst [vmem:[#allocation43_spill] sm:$0xff] %v6119_v5  ;;  %2194 = vadd.xlane.f32.xlu0 %v2193_v23  ;;  %v6136_v19 = vmul.f32 %v6119_v5, %v5907_v51  ;;  %v6148_v22 = vmul.f32 %v6125_v55, %v6119_v5  ;;  %v2353_v5 = vsel %vm595_vm0, %v2333_v35, 0.0 }
 0x158   : > { %9347 = vst [vmem:[#allocation44_spill] sm:$0xff] %v6128_v11  ;;  %v4623_v29 = vpop.f32.mrb[34].mxu1  ;;  %v4655_v20 = vpop.f32.mrb[34].mxu0  ;;  %v6140_v47 = vmul.f32 %v6128_v11, %v5919_v63  ;;  %v6144_v17 = vmul.f32 %v6131_v54, %v6128_v11 }
 0x159   : > { %v6151_v49 = vadd.f32 %v4623_v29, %v5819_v3  ;;  %v1272_v14 = vpop.f32.mrb[35].mxu1  ;;  %v1417_v23 = vpop.f32.mrb[35].mxu0  ;;  %v6155_v37 = vadd.f32 %v4655_v20, %v5814_v2 }
 0x15a   : > { %v6158_v59 = vadd.f32 %v5819_v3, %v1272_v14  ;;  %v6161_v11 = vadd.f32 %v5814_v2, %v1417_v23  ;;  %2197 = vadd.xlane.f32.xlu1 %v2196_v15  ;;  %v2356_v23 = vsel %vm595_vm0, %v6044_v57, 0.0 }
 0x15b   : > { %9348 = vst [vmem:[#allocation45_spill] sm:$0xff] %v6151_v49  ;;  %2354 = vadd.xlane.f32.xlu0 %v2353_v5  ;;  %v6166_v29 = vmul.f32 %v6151_v49, %v5931_v52  ;;  %v6178_v15 = vmul.f32 %v6155_v37, %v6151_v49 }
 0x15c   : > { %9349 = vst [vmem:[#allocation46_spill] sm:$0xff] %v6158_v59  ;;  %v4626_v39 = vpop.f32.mrb[36].mxu1  ;;  %v4658_v28 = vpop.f32.mrb[36].mxu0  ;;  %v6170_v30 = vmul.f32 %v6158_v59, %v5943_v24  ;;  %v6174_v20 = vmul.f32 %v6161_v11, %v6158_v59 }
 0x15d   : > { %9350 = vst [vmem:[#allocation47_spill] sm:$0xff] %v6166_v29  ;;  %9353 = vst [vmem:[#allocation50_spill] sm:$0xff] %v6178_v15  ;;  %v6181_v35 = vadd.f32 %v4626_v39, %v5819_v3  ;;  %v1282_v5 = vpop.f32.mrb[37].mxu1  ;;  %v1427_v14 = vpop.f32.mrb[37].mxu0  ;;  %v2433_v29 = vsel %vm595_vm0, %v6050_v53, 0.0  ;;  %v2175_v39 = vmul.f32 %v6067_v25, %v5872_v32 }
 0x15e   : > { %9351 = vst [vmem:[#allocation48_spill] sm:$0xff] %v6170_v30  ;;  %9352 = vst [vmem:[#allocation49_spill] sm:$0xff] %v6174_v20  ;;  %v6188_v30 = vadd.f32 %v4658_v28, %v5814_v2  ;;  %v6191_v59 = vadd.f32 %v5819_v3, %v1282_v5  ;;  %v6194_v49 = vadd.f32 %v5814_v2, %v1427_v14  ;;  %2357 = vadd.xlane.f32.xlu1 %v2356_v23 }
 0x15f   : > { %9354 = vst [vmem:[#allocation51_spill] sm:$0xff] %v6181_v35  ;;  %2434 = vadd.xlane.f32.xlu0 %v2433_v29  ;;  %v6200_v57 = vmul.f32 %v6181_v35, %v5955_v56  ;;  %v2176_v20 = vmul.f32 %v6061_v36, %v5878_v34 }
 0x160   : > { %9355 = vst [vmem:[#allocation52_spill] sm:$0xff] %v6191_v59  ;;  %v4629_v15 = vpop.f32.mrb[38].mxu1  ;;  %v4661_v53 = vpop.f32.mrb[38].mxu0  ;;  %v6204_v28 = vmul.f32 %v6191_v59, %v5967_v45  ;;  %v6208_v5 = vmul.f32 %v6194_v49, %v6191_v59  ;;  %v6212_v14 = vmul.f32 %v6188_v30, %v6181_v35 }
 0x161   : > { %9356 = vst [vmem:[#allocation53_spill] sm:$0xff] %v6200_v57  ;;  %v6215_v29 = vadd.f32 %v4629_v15, %v5819_v3  ;;  %v1292_v23 = vpop.f32.mrb[39].mxu1  ;;  %v1437_v32 = vpop.f32.mrb[39].mxu0  ;;  %v2436_v57 = vsel %vm595_vm0, %v6054_v8, 0.0  ;;  %v2199_v15 = vsel %vm595_vm0, %v2175_v39, 0.0 }
 0x162   : > { %9357 = vst [vmem:[#allocation54_spill] sm:$0xff] %v6204_v28  ;;  %9358 = vst [vmem:[#allocation55_spill] sm:$0xff] %v6208_v5  ;;  %v6222_v28 = vadd.f32 %v4661_v53, %v5814_v2  ;;  %v6225_v59 = vadd.f32 %v5819_v3, %v1292_v23  ;;  %v6228_v35 = vadd.f32 %v5814_v2, %v1437_v32  ;;  %2437 = vadd.xlane.f32.xlu1 %v2436_v57 }
 0x163   : > { %9359 = vst [vmem:[#allocation56_spill] sm:$0xff] %v6212_v14  ;;  %2200 = vadd.xlane.f32.xlu0 %v2199_v15  ;;  %v6233_v14 = vmul.f32 %v6215_v29, %v5979_v60  ;;  %v2202_v15 = vsel %vm595_vm0, %v2176_v20, 0.0 }
 0x164   : > { %v4704_v8 = vpop.f32.mrb[40].mxu0  ;;  %v6235_v5 = vpop.f32.mrb[40].mxu1  ;;  %v6239_v53 = vmul.f32 %v6225_v59, %v5991_v18  ;;  %v6243_v23 = vmul.f32 %v6228_v35, %v6225_v59  ;;  %v6247_v32 = vmul.f32 %v6222_v28, %v6215_v29 }
 0x165   : > { %9360 = vst [vmem:[#allocation57_spill] sm:$0xff] %v6233_v14  ;;  %9361 = vst [vmem:[#allocation58_spill] sm:$0xff] %v6235_v5  ;;  %v6250_v39 = vadd.f32 %v4704_v8, %v5819_v3  ;;  %v1722_v57 = vpop.f32.mrb[41].mxu0  ;;  %v6253_v34 = vpop.f32.mrb[41].mxu1  ;;  %v2359_v14 = vsel %vm595_vm0, %v6076_v48, 0.0 }
 0x166   : > { %9362 = vst [vmem:[#allocation59_spill] sm:$0xff] %v6243_v23  ;;  %9363 = vst [vmem:[#allocation60_spill] sm:$0xff] %v6247_v32  ;;  %v6256_v5 = vadd.f32 %v5819_v3, %v1722_v57  ;;  %2203 = vadd.xlane.f32.xlu1 %v2202_v15 }
 0x167   : > { %9364 = vst [vmem:[#allocation61_spill] sm:$0xff] %v6253_v34  ;;  %2360 = vadd.xlane.f32.xlu0 %v2359_v14  ;;  %v6262_v23 = vmul.f32 %v6250_v39, %v5827_v7  ;;  %v6266_v8 = vmul.f32 %v6250_v39, %v6004_v0  ;;  %v2362_v14 = vsel %vm595_vm0, %v6072_v62, 0.0 }
 0x168   : > { %v4707_v32 = vpop.f32.mrb[42].mxu0  ;;  %v6268_v20 = vpop.f32.mrb[42].mxu1  ;;  %v6272_v57 = vmul.f32 %v6256_v5, %v5832_v10  ;;  %v6276_v15 = vmul.f32 %v6256_v5, %v6013_v1  ;;  %v2439_v10 = vsel %vm595_vm0, %v6080_v40, 0.0  ;;  %v2177_v1 = vmul.f32 %v6098_v27, %v5893_v43 }
 0x169   : > { %9365 = vst [vmem:[#allocation62_spill] sm:$0xff] %v6268_v20  ;;  %v6279_v48 = vadd.f32 %v4707_v32, %v5819_v3  ;;  %v1732_v7 = vpop.f32.mrb[43].mxu0  ;;  %v6283_v0 = vpop.f32.mrb[43].mxu1 }
 0x16a   : > { %9366 = vst [vmem:[#allocation63_spill] sm:$0xff] %v6283_v0  ;;  %v6286_v34 = vadd.f32 %v5819_v3, %v1732_v7  ;;  %2363 = vadd.xlane.f32.xlu1 %v2362_v14 }
 0x16b   : > { %2440 = vadd.xlane.f32.xlu0 %v2439_v10  ;;  %v6294_v32 = vmul.f32 %v6279_v48, %v5845_v16  ;;  %v6298_v62 = vmul.f32 %v6279_v48, %v6033_v31  ;;  %v2442_v10 = vsel %vm595_vm0, %v6084_v41, 0.0  ;;  %v2178_v31 = vmul.f32 %v6092_v6, %v5900_v46 }
 0x16c   : > { %v4710_v0 = vpop.f32.mrb[44].mxu0  ;;  %v6300_v20 = vpop.f32.mrb[44].mxu1  ;;  %v6304_v7 = vmul.f32 %v6286_v34, %v5853_v21  ;;  %v6308_v40 = vmul.f32 %v6286_v34, %v6039_v12  ;;  %v2205_v21 = vsel %vm595_vm0, %v2177_v1, 0.0 }
 0x16d   : > { %9367 = vst [vmem:[#allocation64_spill] sm:$0xff] %v6298_v62  ;;  %9368 = vst [vmem:[#allocation65_spill] sm:$0xff] %v6300_v20  ;;  %v6311_v14 = vadd.f32 %v4710_v0, %v5819_v3  ;;  %v1742_v16 = vpop.f32.mrb[45].mxu0  ;;  %v6317_v43 = vpop.f32.mrb[45].mxu1 }
 0x16e   : > { %9369 = vst [vmem:[#allocation66_spill] sm:$0xff] %v6317_v43  ;;  %v6320_v20 = vadd.f32 %v5819_v3, %v1742_v16  ;;  %2443 = vadd.xlane.f32.xlu1 %v2442_v10  ;;  %v2208_v10 = vsel %vm595_vm0, %v2178_v31, 0.0 }
 0x16f   : > { %2206 = vadd.xlane.f32.xlu0 %v2205_v21  ;;  %v6325_v12 = vmul.f32 %v6311_v14, %v5863_v26  ;;  %v6329_v0 = vmul.f32 %v6311_v14, %v6061_v36 }
 0x170   : > { %v4713_v41 = vpop.f32.mrb[46].mxu0  ;;  %v6331_v62 = vpop.f32.mrb[46].mxu1  ;;  %v6335_v43 = vmul.f32 %v6320_v20, %v5875_v33  ;;  %v6339_v16 = vmul.f32 %v6320_v20, %v6067_v25  ;;  %v2365_v33 = vsel %vm595_vm0, %v6108_v9, 0.0 }
 0x171   : > { %9370 = vst [vmem:[#allocation67_spill] sm:$0xff] %v6331_v62  ;;  %v6342_v1 = vadd.f32 %v4713_v41, %v5819_v3  ;;  %v1752_v26 = vpop.f32.mrb[47].mxu0  ;;  %v6345_v21 = vpop.f32.mrb[47].mxu1 }
 0x172   : > { %9371 = vst [vmem:[#allocation68_spill] sm:$0xff] %v6345_v21  ;;  %v6348_v36 = vadd.f32 %v5819_v3, %v1752_v26  ;;  %2209 = vadd.xlane.f32.xlu1 %v2208_v10 }
 0x173   : > { %2366 = vadd.xlane.f32.xlu0 %v2365_v33  ;;  %v6354_v25 = vmul.f32 %v6342_v1, %v5885_v38  ;;  %v6358_v41 = vmul.f32 %v6342_v1, %v6092_v6  ;;  %v2368_v33 = vsel %vm595_vm0, %v6104_v58, 0.0 }
 0x174   : > { %v4716_v62 = vpop.f32.mrb[48].mxu0  ;;  %v6360_v31 = vpop.f32.mrb[48].mxu1  ;;  %v6364_v26 = vmul.f32 %v6348_v36, %v5896_v44  ;;  %v6368_v10 = vmul.f32 %v6348_v36, %v6098_v27  ;;  %v2445_v44 = vsel %vm595_vm0, %v6112_v42, 0.0  ;;  %v2179_v27 = vmul.f32 %v6131_v54, %v5916_v61 }
 0x175   : > { %9372 = vst [vmem:[#allocation69_spill] sm:$0xff] %v6360_v31  ;;  %v6371_v9 = vadd.f32 %v4716_v62, %v5819_v3  ;;  %v1762_v38 = vpop.f32.mrb[49].mxu0  ;;  %v6375_v6 = vpop.f32.mrb[49].mxu1  ;;  %v2180_v61 = vmul.f32 %v6125_v55, %v5924_v4 }
 0x176   : > { %9373 = vst [vmem:[#allocation70_spill] sm:$0xff] %v6375_v6  ;;  %v6378_v21 = vadd.f32 %v5819_v3, %v1762_v38  ;;  %2369 = vadd.xlane.f32.xlu1 %v2368_v33 }
 0x177   : > { %2446 = vadd.xlane.f32.xlu0 %v2445_v44  ;;  %v6386_v62 = vmul.f32 %v6371_v9, %v5907_v51  ;;  %v6390_v58 = vmul.f32 %v6371_v9, %v6125_v55  ;;  %v2448_v44 = vsel %vm595_vm0, %v6116_v13, 0.0 }
 0x178   : > { %v4719_v6 = vpop.f32.mrb[50].mxu0  ;;  %v6392_v31 = vpop.f32.mrb[50].mxu1  ;;  %v6396_v38 = vmul.f32 %v6378_v21, %v5919_v63  ;;  %v6400_v42 = vmul.f32 %v6378_v21, %v6131_v54  ;;  %v2211_v63 = vsel %vm595_vm0, %v2179_v27, 0.0 }
 0x179   : > { %9374 = vst [vmem:[#allocation71_spill] sm:$0xff] %v6390_v58  ;;  %9375 = vst [vmem:[#allocation72_spill] sm:$0xff] %v6392_v31  ;;  %v6403_v33 = vadd.f32 %v4719_v6, %v5819_v3  ;;  %v1772_v51 = vpop.f32.mrb[51].mxu0  ;;  %v6409_v46 = vpop.f32.mrb[51].mxu1 }
 0x17a   : > { %9376 = vst [vmem:[#allocation73_spill] sm:$0xff] %v6409_v46  ;;  %v6412_v31 = vadd.f32 %v5819_v3, %v1772_v51  ;;  %2449 = vadd.xlane.f32.xlu1 %v2448_v44  ;;  %v2214_v44 = vsel %vm595_vm0, %v2180_v61, 0.0 }
 0x17b   : > { %2212 = vadd.xlane.f32.xlu0 %v2211_v63  ;;  %v6417_v54 = vmul.f32 %v6403_v33, %v5931_v52  ;;  %v6421_v6 = vmul.f32 %v6403_v33, %v6155_v37 }
 0x17c   : > { %v4722_v13 = vpop.f32.mrb[52].mxu0  ;;  %v6423_v58 = vpop.f32.mrb[52].mxu1  ;;  %v6427_v55 = vmul.f32 %v6412_v31, %v5943_v24  ;;  %v6431_v51 = vmul.f32 %v6412_v31, %v6161_v11  ;;  %v2371_v24 = vsel %vm595_vm0, %v6140_v47, 0.0 }
 0x17d   : > { %9377 = vst [vmem:[#allocation74_spill] sm:$0xff] %v6423_v58  ;;  %v6434_v27 = vadd.f32 %v4722_v13, %v5819_v3  ;;  %v1782_v52 = vpop.f32.mrb[53].mxu0  ;;  %v6437_v63 = vpop.f32.mrb[53].mxu1 }
 0x17e   : > { %9378 = vst [vmem:[#allocation75_spill] sm:$0xff] %v6437_v63  ;;  %v6440_v46 = vadd.f32 %v5819_v3, %v1782_v52  ;;  %2215 = vadd.xlane.f32.xlu1 %v2214_v44 }
 0x17f   : > { %2372 = vadd.xlane.f32.xlu0 %v2371_v24  ;;  %v6446_v58 = vmul.f32 %v6434_v27, %v5955_v56  ;;  %v6450_v13 = vmul.f32 %v6434_v27, %v6188_v30  ;;  %v2374_v24 = vsel %vm595_vm0, %v6136_v19, 0.0 }
 0x180   : > { %v4725_v4 = vpop.f32.mrb[54].mxu0  ;;  %v6452_v61 = vpop.f32.mrb[54].mxu1  ;;  %v6456_v52 = vmul.f32 %v6440_v46, %v5967_v45  ;;  %v6460_v44 = vmul.f32 %v6440_v46, %v6194_v49  ;;  %v2451_v45 = vsel %vm595_vm0, %v6144_v17, 0.0 }
 0x181   : > { %9379 = vst [vmem:[#allocation76_spill] sm:$0xff] %v6450_v13  ;;  %9380 = vst [vmem:[#allocation77_spill] sm:$0xff] %v6452_v61  ;;  %v6463_v47 = vadd.f32 %v4725_v4, %v5819_v3  ;;  %v1792_v56 = vpop.f32.mrb[55].mxu0  ;;  %v6467_v63 = vpop.f32.mrb[55].mxu1  ;;  %v2181_v61 = vmul.f32 %v6161_v11, %v5940_v50 }
 0x182   : > { %9381 = vst [vmem:[#allocation78_spill] sm:$0xff] %v6467_v63  ;;  %v6470_v13 = vadd.f32 %v5819_v3, %v1792_v56  ;;  %2375 = vadd.xlane.f32.xlu1 %v2374_v24  ;;  %v9386_v24 = vld [vmem:[#allocation26_spill] sm:$0xff] }
 0x183   : > { %2452 = vadd.xlane.f32.xlu0 %v2451_v45  ;;  %v6478_v4 = vmul.f32 %v6463_v47, %v5979_v60  ;;  %v6482_v19 = vmul.f32 %v6463_v47, %v6222_v28  ;;  %v2454_v60 = vsel %vm595_vm0, %v6148_v22, 0.0  ;;  %v2182_v45 = vmul.f32 %v6155_v37, %v9386_v24  ;;  %v9389_v22 = vld [vmem:[#allocation36_spill] sm:$0xff] }
 0x184   : > { %v4736_v63 = vpop.f32.mrb[56].mxu1  ;;  %v6486_v3 = vmul.f32 %v6470_v13, %v5991_v18  ;;  %v6490_v17 = vmul.f32 %v6470_v13, %v6228_v35  ;;  %v2217_v18 = vsel %vm595_vm0, %v2181_v61, 0.0 }
 0x185   : > { %9382 = vst [vmem:[#allocation79_spill] sm:$0xff] %v6478_v4  ;;  %9383 = vst [vmem:[#allocation80_spill] sm:$0xff] %v6482_v19  ;;  %v6493_v11 = vadd.f32 %v4736_v63, %v5814_v2  ;;  %v1867_v56 = vpop.f32.mrb[57].mxu1  ;;  %v9387_v19 = vld [vmem:[#allocation35_spill] sm:$0xff] }
 0x186   : > { %9384 = vst [vmem:[#allocation81_spill] sm:$0xff] %v6486_v3  ;;  %9385 = vst [vmem:[#allocation82_spill] sm:$0xff] %v6490_v17  ;;  %v6500_v50 = vadd.f32 %v5814_v2, %v1867_v56  ;;  %2455 = vadd.xlane.f32.xlu1 %v2454_v60 }
 0x187   : > { %2218 = vadd.xlane.f32.xlu0 %v2217_v18  ;;  %v6505_v17 = vmul.f32 %v6493_v11, %v9387_v19  ;;  %v6509_v63 = vmul.f32 %v6493_v11, %v6250_v39  ;;  %v2220_v19 = vsel %vm595_vm0, %v2182_v45, 0.0  ;;  %v9391_v39 = vld [vmem:[#allocation48_spill] sm:$0xff] }
 0x188   : > { %v4739_v4 = vpop.f32.mrb[58].mxu1  ;;  %v6513_v3 = vmul.f32 %v6500_v50, %v9389_v22  ;;  %v6517_v37 = vmul.f32 %v6500_v50, %v6256_v5  ;;  %v2377_v18 = vsel %vm595_vm0, %v9391_v39, 0.0  ;;  %v9392_v22 = vld [vmem:[#allocation37_spill] sm:$0xff] }
 0x189   : > { %9388 = vst [vmem:[#allocation35_spill] sm:$0xff] %v6509_v63  ;;  %v6520_v61 = vadd.f32 %v4739_v4, %v5814_v2  ;;  %v1877_v56 = vpop.f32.mrb[59].mxu1  ;;  %v9395_v63 = vld [vmem:[#allocation38_spill] sm:$0xff] }
 0x18a   : > { %v6524_v60 = vadd.f32 %v5814_v2, %v1877_v56  ;;  %2221 = vadd.xlane.f32.xlu1 %v2220_v19 }
 0x18b   : > { %9390 = vst [vmem:[#allocation36_spill] sm:$0xff] %v6520_v61  ;;  %2378 = vadd.xlane.f32.xlu0 %v2377_v18  ;;  %v6530_v24 = vmul.f32 %v6520_v61, %v9392_v22  ;;  %v6534_v5 = vmul.f32 %v6520_v61, %v6279_v48  ;;  %v9398_v18 = vld [vmem:[#allocation47_spill] sm:$0xff]  ;;  %v9399_v48 = vld [vmem:[#allocation49_spill] sm:$0xff]  ;;  %v9404_v61 = vld [vmem:[#allocation40_spill] sm:$0xff] }
 0x18c   : > { %v4742_v4 = vpop.f32.mrb[60].mxu1  ;;  %v6538_v45 = vmul.f32 %v6524_v60, %v9395_v63  ;;  %v6542_v56 = vmul.f32 %v6524_v60, %v6286_v34  ;;  %v2380_v22 = vsel %vm595_vm0, %v9398_v18, 0.0  ;;  %v9400_v63 = vld [vmem:[#allocation29_spill] sm:$0xff]  ;;  %v9401_v34 = vld [vmem:[#allocation39_spill] sm:$0xff] }
 0x18d   : > { %9393 = vst [vmem:[#allocation48_spill] sm:$0xff] %v6530_v24  ;;  %9394 = vst [vmem:[#allocation37_spill] sm:$0xff] %v6534_v5  ;;  %v6545_v19 = vadd.f32 %v4742_v4, %v5814_v2  ;;  %v1887_v39 = vpop.f32.mrb[61].mxu1  ;;  %v2457_v5 = vsel %vm595_vm0, %v9399_v48, 0.0  ;;  %v9407_v48 = vld [vmem:[#allocation50_spill] sm:$0xff] }
 0x18e   : > { %9396 = vst [vmem:[#allocation38_spill] sm:$0xff] %v6538_v45  ;;  %9397 = vst [vmem:[#allocation83_spill] sm:$0xff] %v6542_v56  ;;  %v6550_v24 = vadd.f32 %v5814_v2, %v1887_v39  ;;  %2381 = vadd.xlane.f32.xlu1 %v2380_v22  ;;  %v2183_v45 = vmul.f32 %v6194_v49, %v9400_v63  ;;  %v9408_v63 = vld [vmem:[#allocation30_spill] sm:$0xff] }
 0x18f   : > { %2458 = vadd.xlane.f32.xlu0 %v2457_v5  ;;  %v6558_v56 = vmul.f32 %v6545_v19, %v9401_v34  ;;  %v6562_v4 = vmul.f32 %v6545_v19, %v6311_v14  ;;  %v2460_v34 = vsel %vm595_vm0, %v9407_v48, 0.0  ;;  %v2184_v14 = vmul.f32 %v6188_v30, %v9408_v63  ;;  %v9411_v48 = vld [vmem:[#allocation42_spill] sm:$0xff] }
 0x190   : > { %v4745_v18 = vpop.f32.mrb[62].mxu1  ;;  %v6566_v39 = vmul.f32 %v6550_v24, %v9404_v61  ;;  %v6570_v22 = vmul.f32 %v6550_v24, %v6320_v20  ;;  %v2223_v61 = vsel %vm595_vm0, %v2183_v45, 0.0 }
 0x191   : > { %9402 = vst [vmem:[#allocation47_spill] sm:$0xff] %v6558_v56  ;;  %9403 = vst [vmem:[#allocation49_spill] sm:$0xff] %v6562_v4  ;;  %v6573_v49 = vadd.f32 %v4745_v18, %v5814_v2  ;;  %v1897_v5 = vpop.f32.mrb[63].mxu1  ;;  %v9409_v56 = vld [vmem:[#allocation41_spill] sm:$0xff] }
 0x192   : > { %9405 = vst [vmem:[#allocation39_spill] sm:$0xff] %v6566_v39  ;;  %9406 = vst [vmem:[#allocation40_spill] sm:$0xff] %v6570_v22  ;;  %v6580_v4 = vadd.f32 %v5814_v2, %v1897_v5  ;;  %2461 = vadd.xlane.f32.xlu1 %v2460_v34 }
 0x193   : > { %2224 = vadd.xlane.f32.xlu0 %v2223_v61  ;;  %v6585_v20 = vmul.f32 %v6573_v49, %v9409_v56  ;;  %v6589_v18 = vmul.f32 %v6573_v49, %v6342_v1  ;;  %v2226_v56 = vsel %vm595_vm0, %v2184_v14, 0.0  ;;  %v9413_v1 = vld [vmem:[#allocation54_spill] sm:$0xff] }
 0x194   : > { %v4748_v22 = vpop.f32.mrb[64].mxu1  ;;  %v6593_v39 = vmul.f32 %v6580_v4, %v9411_v48  ;;  %v6597_v30 = vmul.f32 %v6580_v4, %v6348_v36  ;;  %v2383_v61 = vsel %vm595_vm0, %v9413_v1, 0.0  ;;  %v9414_v48 = vld [vmem:[#allocation43_spill] sm:$0xff] }
 0x195   : > { %9410 = vst [vmem:[#allocation50_spill] sm:$0xff] %v6589_v18  ;;  %v6600_v45 = vadd.f32 %v4748_v22, %v5814_v2  ;;  %v1907_v5 = vpop.f32.mrb[65].mxu1  ;;  %v9417_v18 = vld [vmem:[#allocation44_spill] sm:$0xff] }
 0x196   : > { %v6604_v34 = vadd.f32 %v5814_v2, %v1907_v5  ;;  %2227 = vadd.xlane.f32.xlu1 %v2226_v56 }
 0x197   : > { %9412 = vst [vmem:[#allocation41_spill] sm:$0xff] %v6600_v45  ;;  %2384 = vadd.xlane.f32.xlu0 %v2383_v61  ;;  %v6610_v63 = vmul.f32 %v6600_v45, %v9414_v48  ;;  %v6614_v36 = vmul.f32 %v6600_v45, %v6371_v9  ;;  %v9420_v61 = vld [vmem:[#allocation53_spill] sm:$0xff]  ;;  %v9421_v9 = vld [vmem:[#allocation55_spill] sm:$0xff]  ;;  %v9426_v45 = vld [vmem:[#allocation46_spill] sm:$0xff] }
 0x198   : > { %v4751_v22 = vpop.f32.mrb[66].mxu1  ;;  %v6618_v14 = vmul.f32 %v6604_v34, %v9417_v18  ;;  %v6622_v5 = vmul.f32 %v6604_v34, %v6378_v21  ;;  %v2386_v48 = vsel %vm595_vm0, %v9420_v61, 0.0  ;;  %v9422_v18 = vld [vmem:[#allocation33_spill] sm:$0xff] }
 0x199   : > { %9415 = vst [vmem:[#allocation42_spill] sm:$0xff] %v6610_v63  ;;  %9416 = vst [vmem:[#allocation54_spill] sm:$0xff] %v6614_v36  ;;  %v6625_v56 = vadd.f32 %v4751_v22, %v5814_v2  ;;  %v1917_v1 = vpop.f32.mrb[67].mxu1  ;;  %v2463_v36 = vsel %vm595_vm0, %v9421_v9, 0.0  ;;  %v9423_v21 = vld [vmem:[#allocation45_spill] sm:$0xff]  ;;  %v9429_v9 = vld [vmem:[#allocation56_spill] sm:$0xff] }
 0x19a   : > { %9418 = vst [vmem:[#allocation43_spill] sm:$0xff] %v6618_v14  ;;  %9419 = vst [vmem:[#allocation44_spill] sm:$0xff] %v6622_v5  ;;  %v6630_v63 = vadd.f32 %v5814_v2, %v1917_v1  ;;  %2387 = vadd.xlane.f32.xlu1 %v2386_v48  ;;  %v2185_v14 = vmul.f32 %v6228_v35, %v9422_v18  ;;  %v9430_v18 = vld [vmem:[#allocation34_spill] sm:$0xff] }
 0x19b   : > { %2464 = vadd.xlane.f32.xlu0 %v2463_v36  ;;  %v6638_v5 = vmul.f32 %v6625_v56, %v9423_v21  ;;  %v6642_v22 = vmul.f32 %v6625_v56, %v6403_v33  ;;  %v2466_v21 = vsel %vm595_vm0, %v9429_v9, 0.0  ;;  %v2186_v33 = vmul.f32 %v6222_v28, %v9430_v18  ;;  %v9432_v9 = vld [vmem:[#allocation52_spill] sm:$0xff] }
 0x19c   : > { %v4754_v61 = vpop.f32.mrb[68].mxu1  ;;  %v6646_v1 = vmul.f32 %v6630_v63, %v9426_v45  ;;  %v6650_v48 = vmul.f32 %v6630_v63, %v6412_v31  ;;  %v2229_v45 = vsel %vm595_vm0, %v2185_v14, 0.0 }
 0x19d   : > { %9424 = vst [vmem:[#allocation53_spill] sm:$0xff] %v6638_v5  ;;  %9425 = vst [vmem:[#allocation55_spill] sm:$0xff] %v6642_v22  ;;  %v6653_v35 = vadd.f32 %v4754_v61, %v5814_v2  ;;  %v1927_v36 = vpop.f32.mrb[69].mxu1  ;;  %v9431_v5 = vld [vmem:[#allocation51_spill] sm:$0xff] }
 0x19e   : > { %9427 = vst [vmem:[#allocation45_spill] sm:$0xff] %v6646_v1  ;;  %9428 = vst [vmem:[#allocation46_spill] sm:$0xff] %v6650_v48  ;;  %v6660_v22 = vadd.f32 %v5814_v2, %v1927_v36  ;;  %2467 = vadd.xlane.f32.xlu1 %v2466_v21 }
 0x19f   : > { %2230 = vadd.xlane.f32.xlu0 %v2229_v45  ;;  %v6665_v31 = vmul.f32 %v6653_v35, %v9431_v5  ;;  %v6669_v61 = vmul.f32 %v6653_v35, %v6434_v27  ;;  %v2232_v5 = vsel %vm595_vm0, %v2186_v33, 0.0  ;;  %v2389_v27 = vsel %vm595_vm0, %v6239_v53, 0.0  ;;  %v9434_v33 = vld [vmem:[#allocation57_spill] sm:$0xff] }
 0x1a0   : > { %v4757_v48 = vpop.f32.mrb[70].mxu1  ;;  %v6673_v1 = vmul.f32 %v6660_v22, %v9432_v9  ;;  %v6677_v28 = vmul.f32 %v6660_v22, %v6440_v46  ;;  %v2392_v53 = vsel %vm595_vm0, %v9434_v33, 0.0  ;;  %v9435_v9 = vld [vmem:[#allocation59_spill] sm:$0xff]  ;;  %v2593_v33 = vsel %vm595_vm0, %v6304_v7, 0.0 }
 0x1a1   : > { %v6680_v14 = vadd.f32 %v4757_v48, %v5814_v2  ;;  %v1937_v36 = vpop.f32.mrb[71].mxu1 }
 0x1a2   : > { %v6684_v21 = vadd.f32 %v5814_v2, %v1937_v36  ;;  %2233 = vadd.xlane.f32.xlu1 %v2232_v5  ;;  %v9436_v36 = vld [vmem:[#allocation60_spill] sm:$0xff]  ;;  %v2667_v5 = vsel %vm595_vm0, %v6276_v15, 0.0 }
 0x1a3   : > { %2390 = vadd.xlane.f32.xlu0 %v2389_v27  ;;  %v6690_v45 = vmul.f32 %v6680_v14, %v6215_v29  ;;  %v6694_v46 = vmul.f32 %v6680_v14, %v6463_v47  ;;  %v2469_v29 = vsel %vm595_vm0, %v9435_v9, 0.0  ;;  %v2472_v47 = vsel %vm595_vm0, %v9436_v36, 0.0  ;;  %v9437_v15 = vld [vmem:[#allocation64_spill] sm:$0xff] }
 0x1a4   : > { %v6698_v48 = vmul.f32 %v6684_v21, %v6225_v59  ;;  %v6702_v2 = vmul.f32 %v6684_v21, %v6470_v13  ;;  %v2587_v59 = vsel %vm595_vm0, %v6272_v57, 0.0  ;;  %v2590_v13 = vsel %vm595_vm0, %v6262_v23, 0.0 }
 0x1a5   : > { %v2670_v27 = vsel %vm595_vm0, %v6266_v8, 0.0  ;;  %v2596_v57 = vsel %vm595_vm0, %v6294_v32, 0.0  ;;  %v2673_v23 = vsel %vm595_vm0, %v6308_v40, 0.0  ;;  %v2676_v9 = vsel %vm595_vm0, %v9437_v15, 0.0 }
 0x1a6   : > { %9433 = vst [vmem:[#allocation56_spill] sm:$0xff] %v6702_v2  ;;  %2393 = vadd.xlane.f32.xlu1 %v2392_v53  ;;  %v2599_v8 = vsel %vm595_vm0, %v6335_v43, 0.0  ;;  %v2602_v32 = vsel %vm595_vm0, %v6325_v12, 0.0  ;;  %v2679_v40 = vsel %vm595_vm0, %v6339_v16, 0.0  ;;  %v2605_v43 = vsel %vm595_vm0, %v6364_v26, 0.0  ;;  %v9445_v2 = vld [vmem:[#allocation4_spill] sm:$0xff] }
 0x1a7   : > { %2470 = vadd.xlane.f32.xlu0 %v2469_v29  ;;  %v2608_v16 = vsel %vm595_vm0, %v6354_v25, 0.0  ;;  %v2688_v26 = vsel %vm595_vm0, %v6358_v41, 0.0 }
 0x1aa   : > { %2473 = vadd.xlane.f32.xlu1 %v2472_v47 }
 0x1ab   : > { %2588 = vadd.xlane.f32.xlu0 %v2587_v59  ;;  %v2682_v59 = vsel %vm595_vm0, %v6329_v0, 0.0 }
 0x1ae   : > { %2591 = vadd.xlane.f32.xlu1 %v2590_v13 }
 0x1af   : > { %2668 = vadd.xlane.f32.xlu0 %v2667_v5  ;;  %v2685_v5 = vsel %vm595_vm0, %v6368_v10, 0.0  ;;  %v2614_v10 = vsel %vm595_vm0, %v6386_v62, 0.0 }
 0x1b2   : > { %2671 = vadd.xlane.f32.xlu1 %v2670_v27 }
 0x1b3   : > { %2594 = vadd.xlane.f32.xlu0 %v2593_v33  ;;  %v2611_v33 = vsel %vm595_vm0, %v6396_v38, 0.0 }
 0x1b6   : > { %2597 = vadd.xlane.f32.xlu1 %v2596_v57 }
 0x1b7   : > { %v6724_v53 = vpop.xlane.xlu0 %2111  ;;  %2674 = vadd.xlane.f32.xlu0 %v2673_v23  ;;  %v2691_v23 = vsel %vm595_vm0, %v6400_v42, 0.0  ;;  %v2620_v42 = vsel %vm595_vm0, %v6417_v54, 0.0 }
 0x1ba   : > { %2677 = vadd.xlane.f32.xlu1 %v2676_v9  ;;  %v9438_v9 = vld [vmem:[#allocation71_spill] sm:$0xff] }
 0x1bb   : > { %v6730_v29 = vpop.xlane.xlu1 %2117  ;;  %2600 = vadd.xlane.f32.xlu0 %v2599_v8  ;;  %v2109_v7 = vpop.xlane.xlu0 %2108  ;;  %v2694_v38 = vsel %vm595_vm0, %v9438_v9, 0.0  ;;  %v2617_v8 = vsel %vm595_vm0, %v6427_v55, 0.0  ;;  %v2623_v55 = vsel %vm595_vm0, %v6456_v52, 0.0  ;;  %v6801_v52 = vmul.f32 0.17677669, %v6724_v53 }
 0x1be   : > { %2603 = vadd.xlane.f32.xlu1 %v2602_v32 }
 0x1bf   : > { %v6736_v36 = vpop.xlane.xlu1 %2114  ;;  %2680 = vadd.xlane.f32.xlu0 %v2679_v40  ;;  %v2697_v40 = vsel %vm595_vm0, %v6431_v51, 0.0  ;;  %v2626_v51 = vsel %vm595_vm0, %v6446_v58, 0.0  ;;  %v9439_v58 = vld [vmem:[#allocation76_spill] sm:$0xff] }
 0x1c0   : > { %v6738_v47 = vpop.xlane.xlu0 %2120 }
 0x1c2   : > { %2683 = vadd.xlane.f32.xlu1 %v2682_v59 }
 0x1c3   : > { %v6744_v13 = vpop.xlane.xlu1 %2123  ;;  %2606 = vadd.xlane.f32.xlu0 %v2605_v43 }
 0x1c4   : > { %v6746_v12 = vpop.xlane.xlu0 %2126 }
 0x1c6   : > { %2609 = vadd.xlane.f32.xlu1 %v2608_v16  ;;  %v2700_v16 = vsel %vm595_vm0, %v6421_v6, 0.0  ;;  %v9444_v6 = vld [vmem:[#allocation80_spill] sm:$0xff] }
 0x1c7   : > { %v6752_v27 = vpop.xlane.xlu1 %2129  ;;  %2686 = vadd.xlane.f32.xlu0 %v2685_v5 }
 0x1c8   : > { %v6754_v0 = vpop.xlane.xlu0 %2132 }
 0x1ca   : > { %2689 = vadd.xlane.f32.xlu1 %v2688_v26 }
 0x1cb   : > { %v6760_v57 = vpop.xlane.xlu1 %2135  ;;  %2612 = vadd.xlane.f32.xlu0 %v2611_v33  ;;  %v6790_v33 = vmul.f32 0.17677669, %v2109_v7 }
 0x1cc   : > { %v6762_v25 = vpop.xlane.xlu0 %2138 }
 0x1ce   : > { %2615 = vadd.xlane.f32.xlu1 %v2614_v10  ;;  %v2703_v10 = vsel %vm595_vm0, %v6460_v44, 0.0 }
 0x1cf   : > { %v6768_v15 = vpop.xlane.xlu1 %2141  ;;  %2692 = vadd.xlane.f32.xlu0 %v2691_v23 }
 0x1d0   : > { %v6770_v41 = vpop.xlane.xlu0 %2144 }
 0x1d2   : > { %2695 = vadd.xlane.f32.xlu1 %v2694_v38 }
 0x1d3   : > { %v6776_v32 = vpop.xlane.xlu1 %2147  ;;  %2618 = vadd.xlane.f32.xlu0 %v2617_v8 }
 0x1d4   : > { %v6778_v62 = vpop.xlane.xlu0 %2150 }
 0x1d6   : > { %2621 = vadd.xlane.f32.xlu1 %v2620_v42  ;;  %v2706_v42 = vsel %vm595_vm0, %v9439_v58, 0.0  ;;  %v9442_v58 = vld [vmem:[#allocation82_spill] sm:$0xff] }
 0x1d7   : > { %v6784_v59 = vpop.xlane.xlu1 %2153  ;;  %2698 = vadd.xlane.f32.xlu0 %v2697_v40  ;;  %v9440_v40 = vld [vmem:[#allocation81_spill] sm:$0xff] }
 0x1d8   : > { %v2189_v43 = vpop.xlane.xlu0 %2188 }
 0x1d9   : > { %v6805_v38 = vmul.f32 0.17677669, %v2189_v43 }
 0x1da   : > { %2701 = vadd.xlane.f32.xlu1 %v2700_v16  ;;  %v2629_v16 = vsel %vm595_vm0, %v9440_v40, 0.0  ;;  %v9443_v40 = vld [vmem:[#allocation6_spill] sm:$0xff] }
 0x1db   : > { %v2192_v5 = vpop.xlane.xlu1 %2191  ;;  %2624 = vadd.xlane.f32.xlu0 %v2623_v55  ;;  %v2251_v53 = vmul.f32 %v6500_v50, %v9443_v40  ;;  %v9449_v50 = vld [vmem:[#allocation35_spill] sm:$0xff] }
 0x1dc   : > { %v2349_v26 = vpop.xlane.xlu0 %2348 }
 0x1dd   : > { %v6792_v54 = vmul.f32 0.17677669, %v2349_v26  ;;  %v6817_v26 = vmul.f32 0.17677669, %v2192_v5 }
 0x1de   : > { %2627 = vadd.xlane.f32.xlu1 %v2626_v51 }
 0x1df   : > { %v2352_v23 = vpop.xlane.xlu1 %2351  ;;  %2704 = vadd.xlane.f32.xlu0 %v2703_v10  ;;  %v9441_v10 = vld [vmem:[#allocation79_spill] sm:$0xff] }
 0x1e0   : > { %v6803_v9 = vmul.f32 0.17677669, %v2352_v23  ;;  %v2429_v7 = vpop.xlane.xlu0 %2428  ;;  %v2632_v23 = vsel %vm595_vm0, %v9441_v10, 0.0  ;;  %v2712_v10 = vsel %vm595_vm0, %v9444_v6, 0.0 }
 0x1e1   : > { %v6807_v8 = vmul.f32 0.17677669, %v2429_v7 }
 0x1e2   : > { %2707 = vadd.xlane.f32.xlu1 %v2706_v42  ;;  %v2709_v42 = vsel %vm595_vm0, %v9442_v58, 0.0  ;;  %v2267_v58 = vsel %vm595_vm0, %v2251_v53, 0.0  ;;  %v2507_v53 = vsel %vm595_vm0, %v6513_v3, 0.0  ;;  %v2747_v3 = vsel %vm595_vm0, %v6517_v37, 0.0 }
 0x1e3   : > { %v2432_v55 = vpop.xlane.xlu1 %2431  ;;  %2630 = vadd.xlane.f32.xlu0 %v2629_v16  ;;  %v6830_v16 = vmul.f32 0.17677669, %v6736_v36 }
 0x1e4   : > { %v6819_v43 = vmul.f32 0.17677669, %v2432_v55  ;;  %v2195_v51 = vpop.xlane.xlu0 %2194 }
 0x1e5   : > { %v6846_v7 = vmul.f32 0.17677669, %v2195_v51 }
 0x1e6   : > { %2633 = vadd.xlane.f32.xlu1 %v2632_v23  ;;  %v2252_v23 = vmul.f32 %v6493_v11, %v9445_v2 }
 0x1e7   : > { %v2198_v44 = vpop.xlane.xlu1 %2197  ;;  %2710 = vadd.xlane.f32.xlu0 %v2709_v42  ;;  %v6842_v42 = vmul.f32 0.17677669, %v6730_v29 }
 0x1e8   : > { %v2355_v5 = vpop.xlane.xlu0 %2354  ;;  %v2270_v11 = vsel %vm595_vm0, %v2252_v23, 0.0  ;;  %v2510_v23 = vsel %vm595_vm0, %v6505_v17, 0.0  ;;  %v2750_v17 = vsel %vm595_vm0, %v9449_v50, 0.0 }
 0x1e9   : > { %v6832_v55 = vmul.f32 0.17677669, %v2355_v5 }
 0x1ea   : > { %2713 = vadd.xlane.f32.xlu1 %v2712_v10 }
 0x1eb   : > { %v2358_v40 = vpop.xlane.xlu1 %2357  ;;  %2268 = vadd.xlane.f32.xlu0 %v2267_v58  ;;  %v6857_v58 = vmul.f32 0.17677669, %v2198_v44 }
 0x1ec   : > { %v6844_v36 = vmul.f32 0.17677669, %v2358_v40  ;;  %v2435_v5 = vpop.xlane.xlu0 %2434 }
 0x1ed   : > { %v6848_v6 = vmul.f32 0.17677669, %v2435_v5  ;;  %v9451_v5 = vld [vmem:[#allocation36_spill] sm:$0xff] }
 0x1ee   : > { %2271 = vadd.xlane.f32.xlu1 %v2270_v11  ;;  %v9448_v11 = vld [vmem:[#allocation10_spill] sm:$0xff] }
 0x1ef   : > { %9446 = vst [vmem:[#allocation34_spill] sm:$0xff] %v6848_v6  ;;  %v2438_v10 = vpop.xlane.xlu1 %2437  ;;  %2508 = vadd.xlane.f32.xlu0 %v2507_v53  ;;  %v2253_v29 = vmul.f32 %v6524_v60, %v9448_v11  ;;  %v6870_v53 = vmul.f32 0.17677669, %v6738_v47  ;;  %v9450_v6 = vld [vmem:[#allocation8_spill] sm:$0xff] }
 0x1f0   : > { %v6859_v51 = vmul.f32 0.17677669, %v2438_v10  ;;  %v2201_v40 = vpop.xlane.xlu0 %2200  ;;  %v9457_v60 = vld [vmem:[#allocation48_spill] sm:$0xff] }
 0x1f1   : > { %v2273_v37 = vsel %vm595_vm0, %v2253_v29, 0.0 }
 0x1f2   : > { %9447 = vst [vmem:[#allocation51_spill] sm:$0xff] %v6859_v51  ;;  %2511 = vadd.xlane.f32.xlu1 %v2510_v23  ;;  %v2254_v23 = vmul.f32 %v9451_v5, %v9450_v6  ;;  %v6886_v51 = vmul.f32 0.17677669, %v2201_v40  ;;  %v9456_v5 = vld [vmem:[#allocation38_spill] sm:$0xff] }
 0x1f3   : > { %v2204_v2 = vpop.xlane.xlu1 %2203  ;;  %2748 = vadd.xlane.f32.xlu0 %v2747_v3  ;;  %v6882_v3 = vmul.f32 0.17677669, %v6744_v13 }
 0x1f4   : > { %v2361_v44 = vpop.xlane.xlu0 %2360  ;;  %9454 = vst [vmem:[#allocation59_spill] sm:$0xff] %v6886_v51  ;;  %v2276_v6 = vsel %vm595_vm0, %v2254_v23, 0.0  ;;  %v2516_v23 = vsel %vm595_vm0, %v9457_v60, 0.0  ;;  %v9460_v51 = vld [vmem:[#allocation37_spill] sm:$0xff] }
 0x1f5   : > { %v6872_v10 = vmul.f32 0.17677669, %v2361_v44  ;;  %9452 = vst [vmem:[#allocation52_spill] sm:$0xff] %v6882_v3  ;;  %v2756_v60 = vsel %vm595_vm0, %v9460_v51, 0.0  ;;  %v9461_v3 = vld [vmem:[#allocation14_spill] sm:$0xff] }
 0x1f6   : > { %2751 = vadd.xlane.f32.xlu1 %v2750_v17  ;;  %v2513_v17 = vsel %vm595_vm0, %v9456_v5, 0.0 }
 0x1f7   : > { %v2364_v11 = vpop.xlane.xlu1 %2363  ;;  %2274 = vadd.xlane.f32.xlu0 %v2273_v37 }
 0x1f8   : > { %v6884_v47 = vmul.f32 0.17677669, %v2364_v11  ;;  %v2441_v44 = vpop.xlane.xlu0 %2440  ;;  %v6897_v11 = vmul.f32 0.17677669, %v2204_v2 }
 0x1f9   : > { %v6888_v50 = vmul.f32 0.17677669, %v2441_v44 }
 0x1fa   : > { %9453 = vst [vmem:[#allocation57_spill] sm:$0xff] %v6884_v47  ;;  %2277 = vadd.xlane.f32.xlu1 %v2276_v6  ;;  %v9458_v6 = vld [vmem:[#allocation83_spill] sm:$0xff]  ;;  %v9459_v47 = vld [vmem:[#allocation13_spill] sm:$0xff] }
 0x1fb   : > { %9455 = vst [vmem:[#allocation60_spill] sm:$0xff] %v6888_v50  ;;  %v2444_v37 = vpop.xlane.xlu1 %2443  ;;  %2514 = vadd.xlane.f32.xlu0 %v2513_v17  ;;  %v2753_v5 = vsel %vm595_vm0, %v9458_v6, 0.0  ;;  %v2255_v13 = vmul.f32 %v6550_v24, %v9459_v47  ;;  %v6910_v17 = vmul.f32 0.17677669, %v6746_v12  ;;  %v9467_v24 = vld [vmem:[#allocation47_spill] sm:$0xff] }
 0x1fc   : > { %v6899_v40 = vmul.f32 0.17677669, %v2444_v37  ;;  %v2207_v44 = vpop.xlane.xlu0 %2206 }
 0x1fd   : > { %v2279_v6 = vsel %vm595_vm0, %v2255_v13, 0.0  ;;  %v6926_v29 = vmul.f32 0.17677669, %v2207_v44  ;;  %v9466_v13 = vld [vmem:[#allocation39_spill] sm:$0xff] }
 0x1fe   : > { %2517 = vadd.xlane.f32.xlu1 %v2516_v23  ;;  %v2256_v23 = vmul.f32 %v6545_v19, %v9461_v3 }
 0x1ff   : > { %v2210_v50 = vpop.xlane.xlu1 %2209  ;;  %2754 = vadd.xlane.f32.xlu0 %v2753_v5  ;;  %v6922_v5 = vmul.f32 0.17677669, %v6752_v27  ;;  %9464 = vst [vmem:[#allocation76_spill] sm:$0xff] %v6926_v29  ;;  %v9470_v29 = vld [vmem:[#allocation49_spill] sm:$0xff] }
 0x200   : > { %v2367_v2 = vpop.xlane.xlu0 %2366  ;;  %v2282_v19 = vsel %vm595_vm0, %v2256_v23, 0.0  ;;  %v2522_v23 = vsel %vm595_vm0, %v9467_v24, 0.0  ;;  %v2762_v24 = vsel %vm595_vm0, %v9470_v29, 0.0 }
 0x201   : > { %v6912_v37 = vmul.f32 0.17677669, %v2367_v2  ;;  %9462 = vst [vmem:[#allocation64_spill] sm:$0xff] %v6922_v5  ;;  %v9471_v5 = vld [vmem:[#allocation18_spill] sm:$0xff] }
 0x202   : > { %2757 = vadd.xlane.f32.xlu1 %v2756_v60  ;;  %v2519_v60 = vsel %vm595_vm0, %v9466_v13, 0.0 }
 0x203   : > { %v2370_v47 = vpop.xlane.xlu1 %2369  ;;  %2280 = vadd.xlane.f32.xlu0 %v2279_v6 }
 0x204   : > { %v6924_v12 = vmul.f32 0.17677669, %v2370_v47  ;;  %v2447_v2 = vpop.xlane.xlu0 %2446  ;;  %v6937_v47 = vmul.f32 0.17677669, %v2210_v50 }
 0x205   : > { %v6928_v51 = vmul.f32 0.17677669, %v2447_v2 }
 0x206   : > { %9463 = vst [vmem:[#allocation71_spill] sm:$0xff] %v6924_v12  ;;  %2283 = vadd.xlane.f32.xlu1 %v2282_v19  ;;  %v9468_v19 = vld [vmem:[#allocation40_spill] sm:$0xff]  ;;  %v9469_v12 = vld [vmem:[#allocation17_spill] sm:$0xff] }
 0x207   : > { %9465 = vst [vmem:[#allocation81_spill] sm:$0xff] %v6928_v51  ;;  %v2450_v6 = vpop.xlane.xlu1 %2449  ;;  %2520 = vadd.xlane.f32.xlu0 %v2519_v60  ;;  %v2759_v13 = vsel %vm595_vm0, %v9468_v19, 0.0  ;;  %v2257_v27 = vmul.f32 %v6580_v4, %v9469_v12  ;;  %v6950_v60 = vmul.f32 0.17677669, %v6754_v0  ;;  %v9475_v4 = vld [vmem:[#allocation50_spill] sm:$0xff] }
 0x208   : > { %v6939_v44 = vmul.f32 0.17677669, %v2450_v6  ;;  %v2213_v2 = vpop.xlane.xlu0 %2212 }
 0x209   : > { %v2285_v19 = vsel %vm595_vm0, %v2257_v27, 0.0  ;;  %v6966_v3 = vmul.f32 0.17677669, %v2213_v2  ;;  %v2525_v27 = vsel %vm595_vm0, %v6593_v39, 0.0  ;;  %v2765_v39 = vsel %vm595_vm0, %v6597_v30, 0.0 }
 0x20a   : > { %2523 = vadd.xlane.f32.xlu1 %v2522_v23  ;;  %v2258_v23 = vmul.f32 %v6573_v49, %v9471_v5 }
 0x20b   : > { %v2216_v51 = vpop.xlane.xlu1 %2215  ;;  %2760 = vadd.xlane.f32.xlu0 %v2759_v13  ;;  %v6962_v13 = vmul.f32 0.17677669, %v6760_v57 }
 0x20c   : > { %v2373_v50 = vpop.xlane.xlu0 %2372  ;;  %v2288_v49 = vsel %vm595_vm0, %v2258_v23, 0.0  ;;  %v2528_v23 = vsel %vm595_vm0, %v6585_v20, 0.0  ;;  %v2768_v20 = vsel %vm595_vm0, %v9475_v4, 0.0 }
 0x20d   : > { %v6952_v6 = vmul.f32 0.17677669, %v2373_v50 }
 0x20e   : > { %2763 = vadd.xlane.f32.xlu1 %v2762_v24 }
 0x20f   : > { %v2376_v12 = vpop.xlane.xlu1 %2375  ;;  %2286 = vadd.xlane.f32.xlu0 %v2285_v19  ;;  %v6977_v19 = vmul.f32 0.17677669, %v2216_v51 }
 0x210   : > { %v6964_v0 = vmul.f32 0.17677669, %v2376_v12  ;;  %v2453_v50 = vpop.xlane.xlu0 %2452 }
 0x211   : > { %v6968_v29 = vmul.f32 0.17677669, %v2453_v50  ;;  %v9477_v50 = vld [vmem:[#allocation41_spill] sm:$0xff] }
 0x212   : > { %2289 = vadd.xlane.f32.xlu1 %v2288_v49  ;;  %v9474_v49 = vld [vmem:[#allocation21_spill] sm:$0xff] }
 0x213   : > { %9472 = vst [vmem:[#allocation79_spill] sm:$0xff] %v6968_v29  ;;  %v2456_v24 = vpop.xlane.xlu1 %2455  ;;  %2526 = vadd.xlane.f32.xlu0 %v2525_v27  ;;  %v2259_v57 = vmul.f32 %v6604_v34, %v9474_v49  ;;  %v6990_v27 = vmul.f32 0.17677669, %v6762_v25  ;;  %v9476_v29 = vld [vmem:[#allocation22_spill] sm:$0xff] }
 0x214   : > { %v6979_v2 = vmul.f32 0.17677669, %v2456_v24  ;;  %v2219_v12 = vpop.xlane.xlu0 %2218  ;;  %v9483_v34 = vld [vmem:[#allocation42_spill] sm:$0xff] }
 0x215   : > { %v2291_v30 = vsel %vm595_vm0, %v2259_v57, 0.0 }
 0x216   : > { %9473 = vst [vmem:[#allocation82_spill] sm:$0xff] %v6979_v2  ;;  %2529 = vadd.xlane.f32.xlu1 %v2528_v23  ;;  %v2260_v23 = vmul.f32 %v9477_v50, %v9476_v29  ;;  %v7006_v2 = vmul.f32 0.17677669, %v2219_v12  ;;  %v9482_v50 = vld [vmem:[#allocation43_spill] sm:$0xff] }
 0x217   : > { %v2222_v5 = vpop.xlane.xlu1 %2221  ;;  %2766 = vadd.xlane.f32.xlu0 %v2765_v39  ;;  %v7002_v39 = vmul.f32 0.17677669, %v6768_v15 }
 0x218   : > { %v2379_v51 = vpop.xlane.xlu0 %2378  ;;  %9480 = vst [vmem:[#allocation4_spill] sm:$0xff] %v7006_v2  ;;  %v2294_v29 = vsel %vm595_vm0, %v2260_v23, 0.0  ;;  %v2534_v23 = vsel %vm595_vm0, %v9483_v34, 0.0  ;;  %v9488_v2 = vld [vmem:[#allocation54_spill] sm:$0xff] }
 0x219   : > { %v6992_v24 = vmul.f32 0.17677669, %v2379_v51  ;;  %9478 = vst [vmem:[#allocation6_spill] sm:$0xff] %v7002_v39  ;;  %v2774_v34 = vsel %vm595_vm0, %v9488_v2, 0.0  ;;  %v9489_v39 = vld [vmem:[#allocation26_spill] sm:$0xff] }
 0x21a   : > { %2769 = vadd.xlane.f32.xlu1 %v2768_v20  ;;  %v2531_v20 = vsel %vm595_vm0, %v9482_v50, 0.0 }
 0x21b   : > { %v2382_v49 = vpop.xlane.xlu1 %2381  ;;  %2292 = vadd.xlane.f32.xlu0 %v2291_v30 }
 0x21c   : > { %v7004_v25 = vmul.f32 0.17677669, %v2382_v49  ;;  %v2459_v51 = vpop.xlane.xlu0 %2458  ;;  %v7017_v49 = vmul.f32 0.17677669, %v2222_v5 }
 0x21d   : > { %v7008_v4 = vmul.f32 0.17677669, %v2459_v51 }
 0x21e   : > { %9479 = vst [vmem:[#allocation80_spill] sm:$0xff] %v7004_v25  ;;  %2295 = vadd.xlane.f32.xlu1 %v2294_v29  ;;  %v9484_v29 = vld [vmem:[#allocation44_spill] sm:$0xff]  ;;  %v9485_v25 = vld [vmem:[#allocation25_spill] sm:$0xff] }
 0x21f   : > { %9481 = vst [vmem:[#allocation10_spill] sm:$0xff] %v7008_v4  ;;  %v2462_v30 = vpop.xlane.xlu1 %2461  ;;  %2532 = vadd.xlane.f32.xlu0 %v2531_v20  ;;  %v2771_v50 = vsel %vm595_vm0, %v9484_v29, 0.0  ;;  %v2261_v15 = vmul.f32 %v6630_v63, %v9485_v25  ;;  %v7030_v20 = vmul.f32 0.17677669, %v6770_v41  ;;  %v9495_v63 = vld [vmem:[#allocation3_spill] sm:$0xff] }
 0x220   : > { %v7019_v12 = vmul.f32 0.17677669, %v2462_v30  ;;  %v2225_v51 = vpop.xlane.xlu0 %2224 }
 0x221   : > { %9486 = vst [vmem:[#allocation35_spill] sm:$0xff] %v7030_v20  ;;  %v2297_v29 = vsel %vm595_vm0, %v2261_v15, 0.0  ;;  %v7046_v57 = vmul.f32 0.17677669, %v2225_v51  ;;  %v9497_v20 = vld [vmem:[#allocation53_spill] sm:$0xff]  ;;  %v9508_v51 = vld [vmem:[#allocation12_spill] sm:$0xff] }
 0x222   : > { %2535 = vadd.xlane.f32.xlu1 %v2534_v23  ;;  %v2262_v23 = vmul.f32 %v6625_v56, %v9489_v39  ;;  %v7054_v39 = vld [vmem:[%s9066_s6] ss:$0 sm:$0xff]  ;;  %v9498_v15 = vld [vmem:[#allocation5_spill] sm:$0xff] }
 0x223   : > { %v2228_v4 = vpop.xlane.xlu1 %2227  ;;  %2772 = vadd.xlane.f32.xlu0 %v2771_v50  ;;  %v7042_v50 = vmul.f32 0.17677669, %v6776_v32  ;;  %9490 = vst [vmem:[#allocation36_spill] sm:$0xff] %v7046_v57  ;;  %v9492_v32 = vld [vmem:[#allocation45_spill] sm:$0xff] }
 0x224   : > { %v2385_v5 = vpop.xlane.xlu0 %2384  ;;  %v2300_v56 = vsel %vm595_vm0, %v2262_v23, 0.0  ;;  %v9504_v57 = vld [vmem:[#allocation9_spill] sm:$0xff] }
 0x225   : > { %v7032_v30 = vmul.f32 0.17677669, %v2385_v5 }
 0x226   : > { %2775 = vadd.xlane.f32.xlu1 %v2774_v34  ;;  %v2537_v34 = vsel %vm595_vm0, %v9492_v32, 0.0  ;;  %v7074_v32 = vadd.f32 %v7054_v39, %v9498_v15  ;;  %v9506_v15 = vld [vmem:[#allocation11_spill] sm:$0xff] }
 0x227   : > { %9487 = vst [vmem:[#allocation8_spill] sm:$0xff] %v7032_v30  ;;  %v2388_v25 = vpop.xlane.xlu1 %2387  ;;  %2298 = vadd.xlane.f32.xlu0 %v2297_v29  ;;  %v7068_v30 = vadd.f32 %v9495_v63, %v7054_v39  ;;  %v9502_v63 = vld [vmem:[#allocation7_spill] sm:$0xff] }
 0x228   : > { %v7044_v41 = vmul.f32 0.17677669, %v2388_v25  ;;  %v2465_v5 = vpop.xlane.xlu0 %2464  ;;  %v7062_v25 = vmul.f32 0.17677669, %v2228_v4  ;;  %9499 = vst [vmem:[#allocation37_spill] sm:$0xff] %v7074_v32  ;;  %v9500_v4 = vld [vmem:[#allocation46_spill] sm:$0xff]  ;;  %v7092_v32 = vadd.f32 %v9506_v15, %v7054_v39 }
 0x229   : > { %v7048_v2 = vmul.f32 0.17677669, %v2465_v5  ;;  %9496 = vst [vmem:[#allocation13_spill] sm:$0xff] %v7068_v30  ;;  %v7084_v30 = vadd.f32 %v9502_v63, %v7054_v39  ;;  %v9512_v63 = vld [vmem:[#allocation16_spill] sm:$0xff] }
 0x22a   : > { %2301 = vadd.xlane.f32.xlu1 %v2300_v56  ;;  %9493 = vst [vmem:[#allocation48_spill] sm:$0xff] %v7062_v25  ;;  %v2540_v56 = vsel %vm595_vm0, %v9497_v20, 0.0  ;;  %v7088_v20 = vadd.f32 %v7054_v39, %v9504_v57  ;;  %9507 = vst [vmem:[#allocation47_spill] sm:$0xff] %v7092_v32  ;;  %v9514_v57 = vld [vmem:[#allocation19_spill] sm:$0xff]  ;;  %v9516_v15 = vld [vmem:[#allocation20_spill] sm:$0xff] }
 0x22b   : > { %9491 = vst [vmem:[#allocation38_spill] sm:$0xff] %v7048_v2  ;;  %v2468_v29 = vpop.xlane.xlu1 %2467  ;;  %2538 = vadd.xlane.f32.xlu0 %v2537_v34  ;;  %v2777_v34 = vsel %vm595_vm0, %v9500_v4, 0.0  ;;  %9503 = vst [vmem:[#allocation14_spill] sm:$0xff] %v7084_v30  ;;  %v7104_v30 = vadd.f32 %v7054_v39, %v9512_v63  ;;  %v7112_v32 = vadd.f32 %v7054_v39, %v9516_v15  ;;  %v9526_v25 = vld [vmem:[#allocation28_spill] sm:$0xff] }
 0x22c   : > { %v7064_v23 = vmul.f32 0.17677669, %v2468_v29  ;;  %v2231_v5 = vpop.xlane.xlu0 %2230  ;;  %v9501_v29 = vld [vmem:[#allocation29_spill] sm:$0xff]  ;;  %9505 = vst [vmem:[#allocation39_spill] sm:$0xff] %v7088_v20  ;;  %v7108_v20 = vadd.f32 %v9514_v57, %v7054_v39 }
 0x22d   : > { %v2263_v2 = vmul.f32 %v6660_v22, %v9501_v29  ;;  %v9510_v22 = vld [vmem:[#allocation15_spill] sm:$0xff]  ;;  %9513 = vst [vmem:[#allocation49_spill] sm:$0xff] %v7104_v30  ;;  %9517 = vst [vmem:[#allocation21_spill] sm:$0xff] %v7112_v32 }
 0x22e   : > { %9494 = vst [vmem:[#allocation83_spill] sm:$0xff] %v7064_v23  ;;  %2541 = vadd.xlane.f32.xlu1 %v2540_v56  ;;  %v7096_v56 = vadd.f32 %v7054_v39, %v9508_v51  ;;  %v7100_v29 = vadd.f32 %v9510_v22, %v7054_v39  ;;  %9515 = vst [vmem:[#allocation18_spill] sm:$0xff] %v7108_v20  ;;  %v9518_v22 = vld [vmem:[#allocation55_spill] sm:$0xff]  ;;  %v9519_v23 = vld [vmem:[#allocation30_spill] sm:$0xff] }
 0x22f   : > { %v2234_v4 = vpop.xlane.xlu1 %2233  ;;  %2778 = vadd.xlane.f32.xlu0 %v2777_v34  ;;  %v2264_v63 = vmul.f32 %v6653_v35, %v9519_v23  ;;  %v9520_v30 = vld [vmem:[#allocation23_spill] sm:$0xff]  ;;  %v9522_v20 = vld [vmem:[#allocation24_spill] sm:$0xff] }
 0x230   : > { %9509 = vst [vmem:[#allocation40_spill] sm:$0xff] %v7096_v56  ;;  %9511 = vst [vmem:[#allocation17_spill] sm:$0xff] %v7100_v29  ;;  %v2391_v51 = vpop.xlane.xlu0 %2390  ;;  %v7115_v56 = vmul.f32 0.17677669, %v6778_v62  ;;  %v2780_v29 = vsel %vm595_vm0, %v9518_v22, 0.0  ;;  %v7125_v57 = vadd.f32 %v9520_v30, %v7054_v39  ;;  %v7129_v15 = vadd.f32 %v7054_v39, %v9522_v20  ;;  %v9524_v32 = vld [vmem:[#allocation27_spill] sm:$0xff] }
 0x231   : > { %v7117_v34 = vmul.f32 0.17677669, %v2391_v51  ;;  %v7133_v62 = vadd.f32 %v9524_v32, %v7054_v39  ;;  %v2303_v51 = vsel %vm595_vm0, %v2263_v2, 0.0  ;;  %v7138_v22 = vadd.f32 %v7054_v39, %v9526_v25  ;;  %v9528_v35 = vld [vmem:[#allocation31_spill] sm:$0xff]  ;;  %v9530_v30 = vld [vmem:[#allocation32_spill] sm:$0xff] }
 0x232   : > { %9521 = vst [vmem:[#allocation50_spill] sm:$0xff] %v7125_v57  ;;  %9523 = vst [vmem:[#allocation22_spill] sm:$0xff] %v7129_v15  ;;  %2781 = vadd.xlane.f32.xlu1 %v2780_v29  ;;  %v7142_v23 = vadd.f32 %v9528_v35, %v7054_v39  ;;  %v7146_v57 = vadd.f32 %v7054_v39, %v9530_v30  ;;  %v9532_v29 = vld [vmem:[#allocation58_spill] sm:$0xff]  ;;  %v7159_v35 = vmul.f32 0.17677669, %v6784_v59  ;;  %v9538_v15 = vld [vmem:[#allocation63_spill] sm:$0xff] }
 0x233   : > { %9525 = vst [vmem:[#allocation41_spill] sm:$0xff] %v7133_v62  ;;  %9527 = vst [vmem:[#allocation43_spill] sm:$0xff] %v7138_v22  ;;  %v2394_v32 = vpop.xlane.xlu1 %2393  ;;  %2304 = vadd.xlane.f32.xlu0 %v2303_v51  ;;  %v7152_v2 = vadd.f32 %v9532_v29, %v7054_v39  ;;  %v9534_v62 = vld [vmem:[#allocation61_spill] sm:$0xff]  ;;  %v7167_v20 = vmul.f32 0.17677669, %v2231_v5  ;;  %v2306_v29 = vsel %vm595_vm0, %v2264_v63, 0.0 }
 0x234   : > { %9529 = vst [vmem:[#allocation42_spill] sm:$0xff] %v7142_v23  ;;  %9531 = vst [vmem:[#allocation44_spill] sm:$0xff] %v7146_v57  ;;  %v7156_v25 = vadd.f32 %v7054_v39, %v9534_v62  ;;  %v7161_v23 = vmul.f32 0.17677669, %v2394_v32  ;;  %v2471_v30 = vpop.xlane.xlu0 %2470  ;;  %v9536_v57 = vld [vmem:[#allocation62_spill] sm:$0xff]  ;;  %v7174_v62 = vadd.f32 %v7054_v39, %v9538_v15  ;;  %v9540_v59 = vld [vmem:[#allocation65_spill] sm:$0xff] }
 0x235   : > { %9533 = vst [vmem:[#allocation25_spill] sm:$0xff] %v7152_v2  ;;  %v7165_v22 = vadd.f32 %v9536_v57, %v7054_v39  ;;  %v7169_v51 = vmul.f32 0.17677669, %v2471_v30  ;;  %v2543_v5 = vsel %vm595_vm0, %v6673_v1, 0.0  ;;  %v9542_v57 = vld [vmem:[#allocation66_spill] sm:$0xff]  ;;  %v9544_v63 = vld [vmem:[#allocation67_spill] sm:$0xff] }
 0x236   : > { %9535 = vst [vmem:[#allocation54_spill] sm:$0xff] %v7156_v25  ;;  %9539 = vst [vmem:[#allocation45_spill] sm:$0xff] %v7174_v62  ;;  %v7178_v25 = vadd.f32 %v9540_v59, %v7054_v39  ;;  %2307 = vadd.xlane.f32.xlu1 %v2306_v29  ;;  %v7186_v30 = vadd.f32 %v7054_v39, %v9542_v57  ;;  %v9546_v15 = vld [vmem:[#allocation68_spill] sm:$0xff]  ;;  %v9548_v29 = vld [vmem:[#allocation69_spill] sm:$0xff] }
 0x237   : > { %9537 = vst [vmem:[#allocation26_spill] sm:$0xff] %v7165_v22  ;;  %v7190_v22 = vadd.f32 %v9544_v63, %v7054_v39  ;;  %v7194_v62 = vadd.f32 %v7054_v39, %v9546_v15  ;;  %v2474_v32 = vpop.xlane.xlu1 %2473  ;;  %2544 = vadd.xlane.f32.xlu0 %v2543_v5  ;;  %v7200_v1 = vadd.f32 %v9548_v29, %v7054_v39  ;;  %v9553_v59 = vld [vmem:[#allocation72_spill] sm:$0xff]  ;;  %v2546_v29 = vsel %vm595_vm0, %v6665_v31, 0.0 }
 0x238   : > { %9541 = vst [vmem:[#allocation3_spill] sm:$0xff] %v7178_v25  ;;  %9543 = vst [vmem:[#allocation53_spill] sm:$0xff] %v7186_v30  ;;  %v7202_v25 = vmul.f32 0.17677669, %v2234_v4  ;;  %v7204_v57 = vmul.f32 0.17677669, %v2474_v32  ;;  %v2589_v30 = vpop.xlane.xlu0 %2588  ;;  %v2266_v63 = vmul.f32 %v6680_v14, %v9430_v18 }
 0x239   : > { %9545 = vst [vmem:[#allocation5_spill] sm:$0xff] %v7190_v22  ;;  %9547 = vst [vmem:[#allocation46_spill] sm:$0xff] %v7194_v62  ;;  %v9551_v22 = vld [vmem:[#allocation70_spill] sm:$0xff]  ;;  %v7214_v62 = vadd.f32 %v9553_v59, %v7054_v39  ;;  %v2635_v5 = vmul.f32 0.17677669, %v2589_v30  ;;  %v9555_v4 = vld [vmem:[#allocation73_spill] sm:$0xff] }
 0x23a   : > { %9549 = vst [vmem:[#allocation29_spill] sm:$0xff] %v7200_v1  ;;  %9550 = vst [vmem:[#allocation7_spill] sm:$0xff] %v7204_v57  ;;  %v7210_v15 = vadd.f32 %v7054_v39, %v9551_v22  ;;  %v7220_v32 = vadd.f32 %v7054_v39, %v9555_v4  ;;  %2547 = vadd.xlane.f32.xlu1 %v2546_v29  ;;  %v2783_v18 = vsel %vm595_vm0, %v6677_v28, 0.0  ;;  %v9557_v14 = vld [vmem:[#allocation33_spill] sm:$0xff]  ;;  %v9558_v59 = vld [vmem:[#allocation74_spill] sm:$0xff] }
 0x23b   : > { %9554 = vst [vmem:[#allocation11_spill] sm:$0xff] %v7214_v62  ;;  %v2265_v22 = vmul.f32 %v6684_v21, %v9557_v14  ;;  %v7230_v30 = vadd.f32 %v9558_v59, %v7054_v39  ;;  %v9560_v62 = vld [vmem:[#allocation75_spill] sm:$0xff]  ;;  %v9562_v4 = vld [vmem:[#allocation77_spill] sm:$0xff]  ;;  %v9564_v29 = vmax.f32 %v6790_v33, %v6792_v54  ;;  %v2592_v28 = vpop.xlane.xlu1 %2591  ;;  %2784 = vadd.xlane.f32.xlu0 %v2783_v18 }
 0x23c   : > { %9552 = vst [vmem:[#allocation9_spill] sm:$0xff] %v7210_v15  ;;  %9556 = vst [vmem:[#allocation12_spill] sm:$0xff] %v7220_v32  ;;  %v7234_v31 = vadd.f32 %v7054_v39, %v9560_v62  ;;  %v7238_v32 = vadd.f32 %v9562_v4, %v7054_v39  ;;  %v9565_v15 = vld [vmem:[#allocation78_spill] sm:$0xff]  ;;  %v2636_v14 = vmul.f32 0.17677669, %v2592_v28  ;;  %v2669_v59 = vpop.xlane.xlu0 %2668  ;;  %v2786_v62 = vsel %vm595_vm0, %v6669_v61, 0.0 }
 0x23d   : > { %9559 = vst [vmem:[#allocation15_spill] sm:$0xff] %v7230_v30  ;;  %v2827_v1 = vmax.f32 %v9564_v29, %v2635_v5  ;;  %v7245_v21 = vadd.f32 %v7054_v39, %v9565_v15  ;;  %v2715_v2 = vmul.f32 0.17677669, %v2669_v59  ;;  %v9567_v18 = vmax.f32 %v6801_v52, %v6803_v9 }
 0x23e   : > { %9561 = vst [vmem:[#allocation16_spill] sm:$0xff] %v7234_v31  ;;  %9563 = vst [vmem:[#allocation19_spill] sm:$0xff] %v7238_v32  ;;  %v2312_v31 = vsel %vm595_vm0, %v2266_v63, 0.0  ;;  %2787 = vadd.xlane.f32.xlu1 %v2786_v62  ;;  %v2309_v39 = vsel %vm595_vm0, %v2265_v22, 0.0  ;;  %v2549_v15 = vsel %vm595_vm0, %v6698_v48, 0.0  ;;  %v2552_v61 = vsel %vm595_vm0, %v6690_v45, 0.0 }
 0x23f   : > { %9566 = vst [vmem:[#allocation20_spill] sm:$0xff] %v7245_v21  ;;  %v2843_v4 = vsub.f32 %v6790_v33, %v2827_v1  ;;  %v2891_v32 = vsub.f32 %v6792_v54, %v2827_v1  ;;  %v2939_v30 = vsub.f32 %v2635_v5, %v2827_v1  ;;  %v2828_v29 = vmax.f32 %v9567_v18, %v2636_v14  ;;  %v2672_v5 = vpop.xlane.xlu1 %2671 }
 0x240   : > { %v9568_v54 = vmax.f32 %v6805_v38, %v6807_v8  ;;  %2310 = vadd.xlane.f32.xlu0 %v2309_v39  ;;  %v2716_v18 = vmul.f32 0.17677669, %v2672_v5  ;;  %v2595_v21 = vpop.xlane.xlu0 %2594  ;;  %v9571_v5 = vmax.f32 %v6830_v16, %v6832_v55 }
 0x241   : > { %v2859_v63 = vmul.f32 1.442695, %v2843_v4  ;;  %v2907_v28 = vmul.f32 1.442695, %v2891_v32  ;;  %v2955_v33 = vmul.f32 1.442695, %v2939_v30  ;;  %v2844_v59 = vsub.f32 %v6801_v52, %v2828_v29 }
 0x242   : > { %v3115_v1 = vmax.f32 %v9568_v54, %v2715_v2  ;;  %v2892_v62 = vsub.f32 %v6803_v9, %v2828_v29  ;;  %v2940_v22 = vsub.f32 %v2636_v14, %v2828_v29  ;;  %2313 = vadd.xlane.f32.xlu1 %v2312_v31  ;;  %v2792_v9 = vsel %vm595_vm0, %v6694_v46, 0.0  ;;  %v9570_v31 = vld [vmem:[#allocation56_spill] sm:$0xff] }
 0x243   : > { %4892 = vpow2.f32 %v2859_v63  ;;  %v2861_v30 = vmul.f32 1.442695, %v2844_v59  ;;  %v2598_v52 = vpop.xlane.xlu1 %2597  ;;  %v9572_v59 = vmax.f32 %v6842_v42, %v6844_v36 }
 0x244   : > { %v3131_v48 = vsub.f32 %v6805_v38, %v3115_v1  ;;  %v3179_v45 = vsub.f32 %v6807_v8, %v3115_v1  ;;  %v3227_v32 = vsub.f32 %v2715_v2, %v3115_v1  ;;  %4894 = vpow2.f32 %v2907_v28  ;;  %2550 = vadd.xlane.f32.xlu0 %v2549_v15  ;;  %v2675_v29 = vpop.xlane.xlu0 %2674 }
 0x245   : > { %v2909_v4 = vmul.f32 1.442695, %v2892_v62  ;;  %v2957_v57 = vmul.f32 1.442695, %v2940_v22  ;;  %4896 = vpow2.f32 %v2955_v33  ;;  %v9569_v38 = vmax.f32 %v6817_v26, %v6819_v43  ;;  %v9573_v22 = vld [vmem:[#allocation34_spill] sm:$0xff] }
 0x246   : > { %v3147_v39 = vmul.f32 1.442695, %v3131_v48  ;;  %v3195_v54 = vmul.f32 1.442695, %v3179_v45  ;;  %4898 = vpow2.f32 %v2861_v30  ;;  %v2637_v8 = vmul.f32 0.17677669, %v2595_v21  ;;  %2553 = vadd.xlane.f32.xlu1 %v2552_v61 }
 0x247   : > { %v3116_v14 = vmax.f32 %v9569_v38, %v2716_v18  ;;  %v2638_v2 = vmul.f32 0.17677669, %v2598_v52  ;;  %4900 = vpow2.f32 %v2909_v4  ;;  %v3243_v63 = vmul.f32 1.442695, %v3227_v32 }
 0x248   : > { %v2717_v28 = vmul.f32 0.17677669, %v2675_v29  ;;  %v2789_v33 = vsel %vm595_vm0, %v9570_v31, 0.0  ;;  %4902 = vpow2.f32 %v2957_v57  ;;  %v2829_v21 = vmax.f32 %v9571_v5, %v2637_v8  ;;  %v2678_v57 = vpop.xlane.xlu1 %2677  ;;  %v2601_v61 = vpop.xlane.xlu0 %2600 }
 0x249   : > { %v3132_v15 = vsub.f32 %v6817_v26, %v3116_v14  ;;  %v3180_v1 = vsub.f32 %v6819_v43, %v3116_v14  ;;  %v3228_v46 = vsub.f32 %v2716_v18, %v3116_v14  ;;  %4904 = vpow2.f32 %v3147_v39  ;;  %2790 = vadd.xlane.f32.xlu0 %v2789_v33 }
 0x24a   : > { %v2830_v62 = vmax.f32 %v9572_v59, %v2638_v2  ;;  %v9574_v48 = vmax.f32 %v6846_v7, %v9573_v22  ;;  %4906 = vpow2.f32 %v3195_v54  ;;  %v2845_v32 = vsub.f32 %v6830_v16, %v2829_v21  ;;  %2793 = vadd.xlane.f32.xlu1 %v2792_v9 }
 0x24b   : > { %v3149_v26 = vmul.f32 1.442695, %v3132_v15  ;;  %v3197_v43 = vmul.f32 1.442695, %v3180_v1  ;;  %v3245_v18 = vmul.f32 1.442695, %v3228_v46  ;;  %4908 = vpow2.f32 %v3243_v63 }
 0x24c   : > { %v3117_v45 = vmax.f32 %v9574_v48, %v2717_v28  ;;  %v2893_v30 = vsub.f32 %v6832_v55, %v2829_v21  ;;  %v2941_v4 = vsub.f32 %v2637_v8, %v2829_v21  ;;  %v2846_v39 = vsub.f32 %v6842_v42, %v2830_v62  ;;  %v2604_v33 = vpop.xlane.xlu1 %2603  ;;  %v2681_v15 = vpop.xlane.xlu0 %2680 }
 0x24d   : > { %4910 = vpow2.f32 %v3149_v26  ;;  %v2894_v52 = vsub.f32 %v6844_v36, %v2830_v62  ;;  %v2942_v38 = vsub.f32 %v2638_v2, %v2830_v62  ;;  %v7289_v14 = vpop.eup %4892  ;;  %v2863_v54 = vmul.f32 1.442695, %v2845_v32  ;;  %v9578_v32 = vld [vmem:[#allocation51_spill] sm:$0xff] }
 0x24e   : > { %9575 = vst [vmem:[#allocation55_spill] sm:$0xff] %v7289_v14  ;;  %4912 = vpow2.f32 %v3197_v43  ;;  %v2911_v29 = vmul.f32 1.442695, %v2893_v30  ;;  %v2959_v31 = vmul.f32 1.442695, %v2941_v4  ;;  %v7291_v63 = vpop.eup %4894  ;;  %v3133_v36 = vsub.f32 %v6846_v7, %v3117_v45 }
 0x24f   : > { %9576 = vst [vmem:[#allocation30_spill] sm:$0xff] %v7291_v63  ;;  %4914 = vpow2.f32 %v3245_v18  ;;  %v2865_v16 = vmul.f32 1.442695, %v2846_v39  ;;  %v2913_v55 = vmul.f32 1.442695, %v2894_v52  ;;  %v7293_v1 = vpop.eup %4896  ;;  %v2987_v42 = vadd.f32 %v7291_v63, %v7289_v14 }
 0x250   : > { %v2961_v8 = vmul.f32 1.442695, %v2942_v38  ;;  %9577 = vst [vmem:[#allocation23_spill] sm:$0xff] %v7293_v1  ;;  %4916 = vpow2.f32 %v2863_v54  ;;  %v3181_v9 = vsub.f32 %v9573_v22, %v3117_v45  ;;  %v7299_v2 = vpop.eup %4898  ;;  %v3229_v46 = vsub.f32 %v2717_v28, %v3117_v45  ;;  %v2684_v43 = vpop.xlane.xlu1 %2683 }
 0x251   : > { %4918 = vpow2.f32 %v2911_v29  ;;  %v2718_v5 = vmul.f32 0.17677669, %v2678_v57  ;;  %v2639_v21 = vmul.f32 0.17677669, %v2601_v61  ;;  %v7301_v59 = vpop.eup %4900  ;;  %v3003_v62 = vadd.f32 %v7293_v1, %v2987_v42  ;;  %v2607_v57 = vpop.xlane.xlu0 %2606 }
 0x252   : > { %4920 = vpow2.f32 %v2959_v31  ;;  %v3151_v48 = vmul.f32 1.442695, %v3133_v36  ;;  %v3199_v26 = vmul.f32 1.442695, %v3181_v9  ;;  %v7304_v18 = vpop.eup %4902  ;;  %v2988_v7 = vadd.f32 %v7301_v59, %v7299_v2 }
 0x253   : > { %4922 = vpow2.f32 %v2865_v16  ;;  %v3247_v22 = vmul.f32 1.442695, %v3229_v46  ;;  %v9579_v28 = vmax.f32 %v6857_v58, %v9578_v32  ;;  %v7311_v61 = vpop.eup %4904  ;;  %v9581_v30 = vmax.f32 %v6870_v53, %v6872_v10 }
 0x254   : > { %9580 = vst [vmem:[#allocation24_spill] sm:$0xff] %v7311_v61  ;;  %4924 = vrcp.f32 %v3003_v62  ;;  %v2640_v39 = vmul.f32 0.17677669, %v2604_v33  ;;  %v7316_v52 = vmul.f32 0.17677669, %v2681_v15  ;;  %v7318_v38 = vpop.eup %4906  ;;  %v3004_v54 = vadd.f32 %v7304_v18, %v2988_v7  ;;  %v2610_v15 = vpop.xlane.xlu1 %2609 }
 0x255   : > { %v3118_v45 = vmax.f32 %v9579_v28, %v2718_v5  ;;  %v2831_v4 = vmax.f32 %v9581_v30, %v2639_v21  ;;  %9582 = vst [vmem:[#allocation27_spill] sm:$0xff] %v7318_v38  ;;  %4926 = vpow2.f32 %v2913_v55  ;;  %v7323_v16 = vpop.eup %4908  ;;  %v3275_v42 = vadd.f32 %v7318_v38, %v7311_v61 }
 0x256   : > { %9583 = vst [vmem:[#allocation28_spill] sm:$0xff] %v7323_v16  ;;  %4928 = vpow2.f32 %v2961_v8 }
 0x257   : > { %v3134_v29 = vsub.f32 %v6857_v58, %v3118_v45  ;;  %v3182_v31 = vsub.f32 %v9578_v32, %v3118_v45  ;;  %v3230_v36 = vsub.f32 %v2718_v5, %v3118_v45  ;;  %v2847_v33 = vsub.f32 %v6870_v53, %v2831_v4  ;;  %v7328_v9 = vpop.eup %4910  ;;  %v2687_v58 = vpop.xlane.xlu0 %2686 }
 0x258   : > { %9584 = vst [vmem:[#allocation31_spill] sm:$0xff] %v7328_v9  ;;  %4930 = vrcp.f32 %v3004_v54  ;;  %v2895_v55 = vsub.f32 %v6872_v10, %v2831_v4  ;;  %v7331_v7 = vpop.eup %4912  ;;  %v3291_v32 = vadd.f32 %v7323_v16, %v3275_v42  ;;  %v2943_v45 = vsub.f32 %v2639_v21, %v2831_v4  ;;  %v9588_v10 = vld [vmem:[#allocation52_spill] sm:$0xff]  ;;  %v9591_v42 = vld [vmem:[#allocation59_spill] sm:$0xff]  ;;  %v7347_v61 = vpop.xlane.xlu1 %2689 }
 0x259   : > { %v3153_v46 = vmul.f32 1.442695, %v3134_v29  ;;  %v3201_v62 = vmul.f32 1.442695, %v3182_v31  ;;  %9585 = vst [vmem:[#allocation32_spill] sm:$0xff] %v7331_v7  ;;  %4932 = vpow2.f32 %v3151_v48  ;;  %v7334_v8 = vpop.eup %4914  ;;  %v3276_v53 = vadd.f32 %v7331_v7, %v7328_v9  ;;  %v9589_v29 = vld [vmem:[#allocation57_spill] sm:$0xff] }
 0x25a   : > { %v3249_v28 = vmul.f32 1.442695, %v3230_v36  ;;  %v2867_v30 = vmul.f32 1.442695, %v2847_v33  ;;  %9586 = vst [vmem:[#allocation58_spill] sm:$0xff] %v7334_v8  ;;  %4934 = vpow2.f32 %v3199_v26  ;;  %v7338_v54 = vpop.eup %4916  ;;  %v9590_v31 = vmax.f32 %v9588_v10, %v9589_v29  ;;  %v9592_v48 = vld [vmem:[#allocation60_spill] sm:$0xff] }
 0x25b   : > { %v2915_v5 = vmul.f32 1.442695, %v2895_v55  ;;  %9587 = vst [vmem:[#allocation61_spill] sm:$0xff] %v7338_v54  ;;  %4936 = vrcp.f32 %v3291_v32  ;;  %v9593_v36 = vmax.f32 %v9591_v42, %v9592_v48  ;;  %v2720_v16 = vmul.f32 0.17677669, %v2684_v43  ;;  %v7349_v1 = vpop.eup %4918  ;;  %v7354_v55 = vpop.xlane.xlu0 %2612 }
 0x25c   : > { %v2832_v38 = vmax.f32 %v9590_v31, %v2640_v39  ;;  %9594 = vst [vmem:[#allocation62_spill] sm:$0xff] %v7349_v1  ;;  %v3292_v26 = vadd.f32 %v7334_v8, %v3276_v53  ;;  %4938 = vpow2.f32 %v3247_v22  ;;  %v2963_v21 = vmul.f32 1.442695, %v2943_v45  ;;  %v7356_v32 = vpop.eup %4920 }
 0x25d   : > { %v3119_v33 = vmax.f32 %v9593_v36, %v7316_v52  ;;  %v7352_v4 = vmul.f32 0.17677669, %v2607_v57  ;;  %9595 = vst [vmem:[#allocation63_spill] sm:$0xff] %v7356_v32  ;;  %v2989_v31 = vadd.f32 %v7349_v1, %v7338_v54  ;;  %4940 = vpow2.f32 %v3153_v46  ;;  %v7362_v63 = vpop.eup %4922  ;;  %v2616_v46 = vpop.xlane.xlu1 %2615 }
 0x25e   : > { %v2848_v43 = vsub.f32 %v9588_v10, %v2832_v38  ;;  %v2896_v36 = vsub.f32 %v9589_v29, %v2832_v38  ;;  %9596 = vst [vmem:[#allocation65_spill] sm:$0xff] %v7362_v63  ;;  %4942 = vrcp.f32 %v3292_v26  ;;  %v2944_v53 = vsub.f32 %v2640_v39, %v2832_v38  ;;  %v7366_v45 = vpop.eup %4924 }
 0x25f   : > { %v3135_v22 = vsub.f32 %v9591_v42, %v3119_v33  ;;  %v3183_v57 = vsub.f32 %v9592_v48, %v3119_v33  ;;  %9597 = vst [vmem:[#allocation66_spill] sm:$0xff] %v7366_v45  ;;  %v3005_v14 = vadd.f32 %v7356_v32, %v2989_v31  ;;  %4944 = vpow2.f32 %v3201_v62  ;;  %v7369_v54 = vpop.eup %4926  ;;  %v7371_v26 = vpop.xlane.xlu0 %2692 }
 0x260   : > { %v2869_v8 = vmul.f32 1.442695, %v2848_v43  ;;  %v2917_v1 = vmul.f32 1.442695, %v2896_v36  ;;  %9598 = vst [vmem:[#allocation67_spill] sm:$0xff] %v7369_v54  ;;  %4946 = vpow2.f32 %v3249_v28  ;;  %v7373_v39 = vpop.eup %4928  ;;  %v2990_v38 = vadd.f32 %v7369_v54, %v7362_v63  ;;  %v7381_v31 = vpop.f32.mrb[56].mxu0 }
 0x261   : > { %v2965_v10 = vmul.f32 1.442695, %v2944_v53  ;;  %v3155_v29 = vmul.f32 1.442695, %v3135_v22  ;;  %v3203_v7 = vmul.f32 1.442695, %v3183_v57  ;;  %4948 = vrcp.f32 %v3005_v14 }
 0x262   : > { %9599 = vst [vmem:[#allocation68_spill] sm:$0xff] %v7373_v39  ;;  %v3231_v42 = vsub.f32 %v7316_v52, %v3119_v33  ;;  %v9600_v62 = vmax.f32 %v6897_v11, %v6899_v40  ;;  %v7383_v28 = vpop.eup %4930  ;;  %4950 = vpow2.f32 %v2867_v30  ;;  %v9601_v43 = vmax.f32 %v6910_v17, %v6912_v37 }
 0x263   : > { %v2642_v14 = vmul.f32 0.17677669, %v2610_v15  ;;  %v7389_v53 = vmul.f32 0.17677669, %v2687_v58  ;;  %v7391_v22 = vpop.eup %4932  ;;  %v3006_v52 = vadd.f32 %v7373_v39, %v2990_v38  ;;  %4952 = vpow2.f32 %v2915_v5  ;;  %v7401_v58 = vpop.xlane.xlu0 %2618 }
 0x264   : > { %v3120_v48 = vmax.f32 %v9600_v62, %v2720_v16  ;;  %v2833_v36 = vmax.f32 %v9601_v43, %v7352_v4  ;;  %9602 = vst [vmem:[#allocation69_spill] sm:$0xff] %v7391_v22  ;;  %v3251_v33 = vmul.f32 1.442695, %v3231_v42  ;;  %v7395_v62 = vpop.xlane.xlu1 %2695  ;;  %v7397_v32 = vpop.eup %4934  ;;  %4954 = vpow2.f32 %v2963_v21 }
 0x265   : > { %9603 = vst [vmem:[#allocation70_spill] sm:$0xff] %v7397_v32  ;;  %v7403_v43 = vpop.eup %4936  ;;  %4956 = vrcp.f32 %v3006_v52  ;;  %v3277_v5 = vadd.f32 %v7397_v32, %v7391_v22  ;;  %v9609_v32 = vld [vmem:[#allocation71_spill] sm:$0xff] }
 0x266   : > { %v3136_v57 = vsub.f32 %v6897_v11, %v3120_v48  ;;  %v3184_v30 = vsub.f32 %v6899_v40, %v3120_v48  ;;  %v3232_v54 = vsub.f32 %v2720_v16, %v3120_v48  ;;  %v2849_v15 = vsub.f32 %v6910_v17, %v2833_v36  ;;  %9604 = vst [vmem:[#allocation72_spill] sm:$0xff] %v7403_v43  ;;  %v7408_v42 = vpop.eup %4938 }
 0x267   : > { %v2897_v11 = vsub.f32 %v6912_v37, %v2833_v36  ;;  %9605 = vst [vmem:[#allocation73_spill] sm:$0xff] %v7408_v42  ;;  %4958 = vpow2.f32 %v2869_v8  ;;  %v7410_v16 = vpop.eup %4940  ;;  %v3293_v17 = vadd.f32 %v7408_v42, %v3277_v5  ;;  %v2945_v52 = vsub.f32 %v7352_v4, %v2833_v36  ;;  %v9608_v37 = vld [vmem:[#allocation64_spill] sm:$0xff]  ;;  %v7428_v5 = vpop.xlane.xlu0 %2698 }
 0x268   : > { %v3157_v38 = vmul.f32 1.442695, %v3136_v57  ;;  %v3205_v21 = vmul.f32 1.442695, %v3184_v30  ;;  %v3253_v39 = vmul.f32 1.442695, %v3232_v54  ;;  %4960 = vpow2.f32 %v2917_v1  ;;  %v7416_v63 = vpop.xlane.xlu1 %2621  ;;  %v7418_v57 = vpop.eup %4942 }
 0x269   : > { %v2871_v40 = vmul.f32 1.442695, %v2849_v15  ;;  %9606 = vst [vmem:[#allocation33_spill] sm:$0xff] %v7410_v16  ;;  %v7413_v48 = vmul.f32 1.442695, %v2897_v11  ;;  %9607 = vst [vmem:[#allocation74_spill] sm:$0xff] %v7418_v57  ;;  %4962 = vpow2.f32 %v2965_v10  ;;  %v9610_v8 = vmax.f32 %v9608_v37, %v9609_v32  ;;  %v7430_v11 = vpop.eup %4944 }
 0x26a   : > { %v9611_v54 = vld [vmem:[#allocation76_spill] sm:$0xff]  ;;  %v9612_v15 = vld [vmem:[#allocation81_spill] sm:$0xff]  ;;  %v2722_v1 = vmul.f32 0.17677669, %v7347_v61  ;;  %9614 = vst [vmem:[#allocation75_spill] sm:$0xff] %v7430_v11  ;;  %4964 = vrcp.f32 %v3293_v17  ;;  %v7437_v42 = vpop.eup %4946 }
 0x26b   : > { %v2834_v30 = vmax.f32 %v9610_v8, %v2642_v14  ;;  %v9613_v22 = vmax.f32 %v9611_v54, %v9612_v15  ;;  %v2967_v4 = vmul.f32 1.442695, %v2945_v52  ;;  %v7433_v36 = vmul.f32 0.17677669, %v7354_v55  ;;  %9615 = vst [vmem:[#allocation77_spill] sm:$0xff] %v7437_v42  ;;  %v7443_v45 = vpop.eup %4948 }
 0x26c   : > { %v7435_v10 = vmul.f32 0.17677669, %v2616_v46  ;;  %v3278_v8 = vadd.f32 %v7430_v11, %v7410_v16  ;;  %4966 = vpow2.f32 %v3155_v29  ;;  %9616 = vst [vmem:[#allocation78_spill] sm:$0xff] %v7443_v45  ;;  %v7447_v46 = vpop.xlane.xlu1 %2701  ;;  %v7449_v57 = vpop.eup %4950 }
 0x26d   : > { %v3121_v43 = vmax.f32 %v9613_v22, %v7389_v53  ;;  %v2850_v22 = vsub.f32 %v9608_v37, %v2834_v30  ;;  %v2898_v61 = vsub.f32 %v9609_v32, %v2834_v30  ;;  %4968 = vpow2.f32 %v3203_v7  ;;  %9617 = vst [vmem:[#allocation56_spill] sm:$0xff] %v7449_v57  ;;  %v7452_v37 = vpop.xlane.xlu0 %2624  ;;  %v7454_v32 = vpop.eup %4952 }
 0x26e   : > { %v2946_v17 = vsub.f32 %v2642_v14, %v2834_v30  ;;  %v3294_v9 = vadd.f32 %v7437_v42, %v3278_v8  ;;  %4970 = vpow2.f32 %v3251_v33  ;;  %9618 = vst [vmem:[#allocation34_spill] sm:$0xff] %v7454_v32  ;;  %v9620_v8 = vmax.f32 %v6937_v47, %v6939_v44 }
 0x26f   : > { %v3137_v52 = vsub.f32 %v9611_v54, %v3121_v43  ;;  %v3185_v55 = vsub.f32 %v9612_v15, %v3121_v43  ;;  %v2873_v29 = vmul.f32 1.442695, %v2850_v22  ;;  %v2921_v11 = vmul.f32 1.442695, %v2898_v61  ;;  %v7460_v54 = vpop.eup %4954 }
 0x270   : > { %4972 = vpow2.f32 %v3157_v38  ;;  %v2969_v7 = vmul.f32 1.442695, %v2946_v17  ;;  %9619 = vst [vmem:[#allocation51_spill] sm:$0xff] %v7460_v54  ;;  %v2991_v15 = vadd.f32 %v7454_v32, %v7449_v57  ;;  %v3233_v33 = vsub.f32 %v7389_v53, %v3121_v43  ;;  %v7468_v61 = vpop.eup %4956  ;;  %v7481_v53 = vpop.xlane.xlu1 %2627 }
 0x271   : > { %v7456_v14 = vmul.f32 1.442695, %v3137_v52  ;;  %v7458_v30 = vmul.f32 1.442695, %v3185_v55  ;;  %4974 = vrcp.f32 %v3294_v9  ;;  %v3122_v22 = vmax.f32 %v9620_v8, %v2722_v1  ;;  %9621 = vst [vmem:[#allocation52_spill] sm:$0xff] %v7468_v61  ;;  %v7483_v43 = vpop.f32.mrb[57].mxu0  ;;  %v7485_v8 = vpop.eup %4958 }
 0x272   : > { %4976 = vpow2.f32 %v3205_v21  ;;  %v9622_v38 = vmax.f32 %v6950_v60, %v6952_v6  ;;  %v9623_v9 = vmax.f32 %v6962_v13, %v6964_v0  ;;  %v7479_v55 = vmul.f32 0.17677669, %v7371_v26  ;;  %9624 = vst [vmem:[#allocation57_spill] sm:$0xff] %v7485_v8  ;;  %v7491_v57 = vpop.xlane.xlu0 %2704  ;;  %v7493_v45 = vpop.f32.mrb[58].mxu0 }
 0x273   : > { %v3007_v21 = vadd.f32 %v7460_v54, %v2991_v15  ;;  %4978 = vpow2.f32 %v3253_v39  ;;  %v7488_v32 = vmul.f32 1.442695, %v3233_v33  ;;  %v3186_v26 = vsub.f32 %v6939_v44, %v3122_v22 }
 0x274   : > { %v2835_v17 = vmax.f32 %v9622_v38, %v7433_v36  ;;  %v2836_v52 = vmax.f32 %v9623_v9, %v7435_v10  ;;  %v3138_v38 = vsub.f32 %v6937_v47, %v3122_v22  ;;  %v7495_v9 = vpop.eup %4960  ;;  %4980 = vpow2.f32 %v2871_v40 }
 0x275   : > { %9625 = vst [vmem:[#allocation59_spill] sm:$0xff] %v7495_v9  ;;  %v3234_v42 = vsub.f32 %v2722_v1, %v3122_v22  ;;  %v7499_v61 = vpop.eup %4962  ;;  %4982 = vrcp.f32 %v3007_v21  ;;  %v2992_v39 = vadd.f32 %v7495_v9, %v7485_v8  ;;  %v7507_v54 = vmul.f32 1.442695, %v3186_v26 }
 0x276   : > { %v2851_v16 = vsub.f32 %v6950_v60, %v2835_v17  ;;  %9626 = vst [vmem:[#allocation60_spill] sm:$0xff] %v7499_v61  ;;  %v3161_v15 = vmul.f32 1.442695, %v3138_v38  ;;  %v2899_v47 = vsub.f32 %v6952_v6, %v2835_v17  ;;  %v7504_v33 = vpop.eup %4964  ;;  %4984 = vpow2.f32 %v7413_v48  ;;  %v7513_v60 = vpop.xlane.xlu1 %2707 }
 0x277   : > { %9627 = vst [vmem:[#allocation64_spill] sm:$0xff] %v7504_v33  ;;  %v7509_v40 = vmul.f32 1.442695, %v3234_v42  ;;  %v7515_v1 = vpop.eup %4966  ;;  %v3008_v22 = vadd.f32 %v7499_v61, %v2992_v39  ;;  %4986 = vpow2.f32 %v2967_v4  ;;  %v2947_v6 = vsub.f32 %v7433_v36, %v2835_v17  ;;  %v7521_v38 = vpop.xlane.xlu0 %2630  ;;  %v9631_v36 = vld [vmem:[#allocation79_spill] sm:$0xff] }
 0x278   : > { %v7511_v44 = vmul.f32 1.442695, %v2851_v16  ;;  %9628 = vst [vmem:[#allocation71_spill] sm:$0xff] %v7515_v1  ;;  %v7518_v21 = vmul.f32 1.442695, %v2899_v47  ;;  %v7523_v48 = vpop.eup %4968  ;;  %4988 = vpow2.f32 %v2873_v29  ;;  %v2852_v42 = vsub.f32 %v6962_v13, %v2836_v52 }
 0x279   : > { %9629 = vst [vmem:[#allocation76_spill] sm:$0xff] %v7523_v48  ;;  %v2900_v16 = vsub.f32 %v6964_v0, %v2836_v52  ;;  %v2948_v26 = vsub.f32 %v7435_v10, %v2836_v52  ;;  %v7528_v9 = vpop.eup %4970  ;;  %4990 = vrcp.f32 %v3008_v22  ;;  %v3279_v4 = vadd.f32 %v7523_v48, %v7515_v1 }
 0x27a   : > { %9630 = vst [vmem:[#allocation81_spill] sm:$0xff] %v7528_v9  ;;  %v7532_v39 = vmul.f32 1.442695, %v2947_v6  ;;  %v9632_v17 = vmax.f32 %v6966_v3, %v9631_v36  ;;  %v7538_v29 = vpop.eup %4972  ;;  %4992 = vpow2.f32 %v2921_v11  ;;  %v7540_v13 = vmul.f32 1.442695, %v2852_v42  ;;  %v7546_v52 = vpop.xlane.xlu1 %2633 }
 0x27b   : > { %9633 = vst [vmem:[#allocation79_spill] sm:$0xff] %v7538_v29  ;;  %v7542_v0 = vmul.f32 1.442695, %v2900_v16  ;;  %v7544_v10 = vmul.f32 1.442695, %v2948_v26  ;;  %v7548_v22 = vpop.eup %4974  ;;  %v3295_v6 = vadd.f32 %v7528_v9, %v3279_v4  ;;  %4994 = vpow2.f32 %v2969_v7  ;;  %v7553_v1 = vpop.xlane.xlu0 %2710 }
 0x27c   : > { %v3123_v47 = vmax.f32 %v9632_v17, %v7479_v55  ;;  %9634 = vst [vmem:[#allocation84_spill] sm:$0xff] %v7548_v22  ;;  %v7555_v11 = vpop.f32.mrb[59].mxu0  ;;  %v7557_v42 = vpop.eup %4976  ;;  %4996 = vpow2.f32 %v7456_v14  ;;  %v2724_v26 = vmul.f32 0.17677669, %v7395_v62  ;;  %v2645_v61 = vmul.f32 0.17677669, %v7401_v58 }
 0x27d   : > { %9635 = vst [vmem:[#allocation85_spill] sm:$0xff] %v7555_v11  ;;  %9636 = vst [vmem:[#allocation86_spill] sm:$0xff] %v7557_v42  ;;  %v7563_v4 = vpop.eup %4978  ;;  %4998 = vrcp.f32 %v3295_v6  ;;  %v9639_v62 = vld [vmem:[#allocation82_spill] sm:$0xff] }
 0x27e   : > { %v3139_v48 = vsub.f32 %v6966_v3, %v3123_v47  ;;  %v3187_v17 = vsub.f32 %v9631_v36, %v3123_v47  ;;  %v3235_v16 = vsub.f32 %v7479_v55, %v3123_v47  ;;  %9637 = vst [vmem:[#allocation87_spill] sm:$0xff] %v7563_v4  ;;  %v3280_v3 = vadd.f32 %v7557_v42, %v7538_v29  ;;  %v7571_v9 = vpop.eup %4980  ;;  %v7582_v8 = vpop.xlane.xlu1 %2713 }
 0x27f   : > { %9638 = vst [vmem:[#allocation88_spill] sm:$0xff] %v7571_v9  ;;  %5000 = vpow2.f32 %v7458_v30  ;;  %v9640_v55 = vmax.f32 %v6977_v19, %v9639_v62  ;;  %v9641_v47 = vmax.f32 %v6990_v27, %v6992_v24  ;;  %v2646_v30 = vmul.f32 0.17677669, %v7416_v63  ;;  %v7592_v42 = vpop.xlane.xlu0 %2268 }
 0x280   : > { %v7567_v7 = vmul.f32 1.442695, %v3139_v48  ;;  %v7569_v36 = vmul.f32 1.442695, %v3187_v17  ;;  %v7574_v14 = vmul.f32 1.442695, %v3235_v16  ;;  %v7584_v48 = vpop.eup %4982  ;;  %v3296_v17 = vadd.f32 %v7563_v4, %v3280_v3 }
 0x281   : > { %v3124_v58 = vmax.f32 %v9640_v55, %v2724_v26  ;;  %v2837_v6 = vmax.f32 %v9641_v47, %v2645_v61  ;;  %9642 = vst [vmem:[#allocation82_spill] sm:$0xff] %v7584_v48  ;;  %5002 = vpow2.f32 %v7488_v32  ;;  %v7590_v16 = vmul.f32 0.17677669, %v7428_v5  ;;  %v7594_v55 = vpop.eup %4984  ;;  %v9651_v4 = vld [vmem:[#allocation4_spill] sm:$0xff] }
 0x282   : > { %9643 = vst [vmem:[#allocation89_spill] sm:$0xff] %v7594_v55  ;;  %5004 = vpow2.f32 %v3161_v15  ;;  %v7598_v48 = vpop.eup %4986  ;;  %v2993_v32 = vadd.f32 %v7594_v55, %v7571_v9 }
 0x283   : > { %v3140_v47 = vsub.f32 %v6977_v19, %v3124_v58  ;;  %v3188_v29 = vsub.f32 %v9639_v62, %v3124_v58  ;;  %v3236_v33 = vsub.f32 %v2724_v26, %v3124_v58  ;;  %9644 = vst [vmem:[#allocation90_spill] sm:$0xff] %v7598_v48  ;;  %5006 = vrcp.f32 %v3296_v17  ;;  %v7604_v3 = vpop.eup %4988 }
 0x284   : > { %v2853_v63 = vsub.f32 %v6990_v27, %v2837_v6  ;;  %v2901_v5 = vsub.f32 %v6992_v24, %v2837_v6  ;;  %9645 = vst [vmem:[#allocation91_spill] sm:$0xff] %v7604_v3  ;;  %5008 = vpow2.f32 %v7507_v54  ;;  %v7613_v26 = vpop.eup %4990  ;;  %v3009_v58 = vadd.f32 %v7598_v48, %v2993_v32  ;;  %v7621_v24 = vpop.xlane.xlu1 %2271  ;;  %v9652_v32 = vld [vmem:[#allocation10_spill] sm:$0xff] }
 0x285   : > { %v7607_v15 = vmul.f32 1.442695, %v3140_v47  ;;  %v7609_v19 = vmul.f32 1.442695, %v3188_v29  ;;  %v7611_v62 = vmul.f32 1.442695, %v3236_v33  ;;  %5010 = vpow2.f32 %v7509_v40  ;;  %v7623_v55 = vpop.eup %4992 }
 0x286   : > { %9646 = vst [vmem:[#allocation92_spill] sm:$0xff] %v7613_v26  ;;  %v7617_v17 = vmul.f32 1.442695, %v2853_v63  ;;  %v7619_v27 = vmul.f32 1.442695, %v2901_v5  ;;  %9647 = vst [vmem:[#allocation93_spill] sm:$0xff] %v7623_v55  ;;  %5012 = vpow2.f32 %v7511_v44  ;;  %v2949_v54 = vsub.f32 %v2645_v61, %v2837_v6  ;;  %v7633_v63 = vpop.xlane.xlu0 %2508  ;;  %v7635_v5 = vpop.eup %4994 }
 0x287   : > { %v9648_v29 = vld [vmem:[#allocation6_spill] sm:$0xff]  ;;  %v9649_v33 = vld [vmem:[#allocation80_spill] sm:$0xff]  ;;  %v9653_v48 = vmax.f32 %v9651_v4, %v9652_v32  ;;  %5014 = vrcp.f32 %v3009_v58  ;;  %v2994_v26 = vadd.f32 %v7623_v55, %v7604_v3  ;;  %v2726_v44 = vmul.f32 0.17677669, %v7447_v46  ;;  %v7643_v6 = vpop.eup %4996 }
 0x288   : > { %v9650_v47 = vmax.f32 %v9648_v29, %v9649_v33  ;;  %9654 = vst [vmem:[#allocation6_spill] sm:$0xff] %v7635_v5  ;;  %v7641_v61 = vmul.f32 0.17677669, %v7452_v37  ;;  %9655 = vst [vmem:[#allocation80_spill] sm:$0xff] %v7643_v6  ;;  %5016 = vpow2.f32 %v7518_v21  ;;  %v7650_v22 = vpop.eup %4998 }
 0x289   : > { %v3125_v40 = vmax.f32 %v9653_v48, %v7590_v16  ;;  %9656 = vst [vmem:[#allocation4_spill] sm:$0xff] %v7650_v22  ;;  %v3010_v58 = vadd.f32 %v7635_v5, %v2994_v26  ;;  %5018 = vpow2.f32 %v7532_v39  ;;  %v7655_v55 = vpop.eup %5000  ;;  %v2648_v5 = vmul.f32 0.17677669, %v7481_v53 }
 0x28a   : > { %v2838_v9 = vmax.f32 %v9650_v47, %v2646_v30  ;;  %v7646_v47 = vmul.f32 1.442695, %v2949_v54  ;;  %9657 = vst [vmem:[#allocation10_spill] sm:$0xff] %v7655_v55  ;;  %5020 = vpow2.f32 %v7540_v13  ;;  %v3281_v26 = vadd.f32 %v7655_v55, %v7643_v6  ;;  %v9662_v55 = vld [vmem:[#allocation35_spill] sm:$0xff]  ;;  %v9663_v6 = vld [vmem:[#allocation8_spill] sm:$0xff] }
 0x28b   : > { %v3141_v37 = vsub.f32 %v9651_v4, %v3125_v40  ;;  %5022 = vrcp.f32 %v3010_v58  ;;  %v7671_v4 = vpop.xlane.xlu1 %2511  ;;  %v7682_v58 = vpop.xlane.xlu0 %2748 }
 0x28c   : > { %v2854_v48 = vsub.f32 %v9648_v29, %v2838_v9  ;;  %v2902_v11 = vsub.f32 %v9649_v33, %v2838_v9  ;;  %v2950_v46 = vsub.f32 %v2646_v30, %v2838_v9  ;;  %v3189_v29 = vsub.f32 %v9652_v32, %v3125_v40  ;;  %v7663_v33 = vpop.eup %5002 }
 0x28d   : > { %9658 = vst [vmem:[#allocation94_spill] sm:$0xff] %v7663_v33  ;;  %v7669_v9 = vmul.f32 1.442695, %v3141_v37  ;;  %v7673_v30 = vpop.eup %5004  ;;  %5024 = vpow2.f32 %v7542_v0  ;;  %v9660_v32 = vmax.f32 %v7017_v49, %v7019_v12  ;;  %v3297_v37 = vadd.f32 %v7663_v33, %v3281_v26 }
 0x28e   : > { %v7658_v21 = vmul.f32 1.442695, %v2854_v48  ;;  %v7660_v54 = vmul.f32 1.442695, %v2902_v11  ;;  %v7667_v39 = vmul.f32 1.442695, %v2950_v46  ;;  %v3237_v11 = vsub.f32 %v7590_v16, %v3125_v40  ;;  %v7684_v46 = vpop.eup %5006 }
 0x28f   : > { %9659 = vst [vmem:[#allocation95_spill] sm:$0xff] %v7673_v30  ;;  %v7676_v13 = vmul.f32 1.442695, %v3189_v29  ;;  %v3126_v48 = vmax.f32 %v9660_v32, %v2726_v44  ;;  %9661 = vst [vmem:[#allocation96_spill] sm:$0xff] %v7684_v46  ;;  %5026 = vpow2.f32 %v7544_v10  ;;  %v9664_v0 = vmax.f32 %v9662_v55, %v9663_v6  ;;  %v7693_v16 = vpop.eup %5008 }
 0x290   : > { %9665 = vst [vmem:[#allocation35_spill] sm:$0xff] %v7693_v16  ;;  %5028 = vpow2.f32 %v7567_v7  ;;  %v7696_v40 = vmul.f32 1.442695, %v3237_v11  ;;  %v7700_v26 = vpop.eup %5010  ;;  %v3282_v10 = vadd.f32 %v7693_v16, %v7673_v30 }
 0x291   : > { %v2839_v29 = vmax.f32 %v9664_v0, %v7641_v61  ;;  %v3142_v32 = vsub.f32 %v7017_v49, %v3126_v48  ;;  %v3190_v3 = vsub.f32 %v7019_v12, %v3126_v48  ;;  %9666 = vst [vmem:[#allocation8_spill] sm:$0xff] %v7700_v26  ;;  %5030 = vrcp.f32 %v3297_v37  ;;  %v7705_v53 = vpop.eup %5012 }
 0x292   : > { %v3238_v33 = vsub.f32 %v2726_v44, %v3126_v48  ;;  %9667 = vst [vmem:[#allocation97_spill] sm:$0xff] %v7705_v53  ;;  %5032 = vpow2.f32 %v7569_v36  ;;  %v7713_v12 = vpop.eup %5014  ;;  %v3298_v37 = vadd.f32 %v7700_v26, %v3282_v10  ;;  %v7723_v48 = vpop.f32.mrb[60].mxu0 }
 0x293   : > { %v2855_v0 = vsub.f32 %v9662_v55, %v2839_v29  ;;  %v7708_v7 = vmul.f32 1.442695, %v3142_v32  ;;  %v7710_v11 = vmul.f32 1.442695, %v3190_v3  ;;  %v2903_v49 = vsub.f32 %v9663_v6, %v2839_v29  ;;  %9668 = vst [vmem:[#allocation98_spill] sm:$0xff] %v7713_v12  ;;  %v7721_v55 = vpop.xlane.xlu1 %2751  ;;  %v7725_v36 = vpop.eup %5016 }
 0x294   : > { %5034 = vpow2.f32 %v7574_v14  ;;  %v7717_v16 = vmul.f32 1.442695, %v3238_v33  ;;  %9669 = vst [vmem:[#allocation99_spill] sm:$0xff] %v7725_v36  ;;  %v2951_v6 = vsub.f32 %v7641_v61, %v2839_v29  ;;  %v9670_v32 = vmax.f32 %v7042_v50, %v7044_v41  ;;  %v7734_v33 = vpop.xlane.xlu0 %2274  ;;  %v7736_v10 = vpop.f32.mrb[61].mxu0 }
 0x295   : > { %v7719_v44 = vmul.f32 1.442695, %v2855_v0  ;;  %5036 = vpow2.f32 %v7607_v15  ;;  %v7728_v3 = vmul.f32 1.442695, %v2903_v49  ;;  %9671 = vst [vmem:[#allocation100_spill] sm:$0xff] %v7736_v10  ;;  %v7738_v0 = vpop.eup %5018  ;;  %v2995_v12 = vadd.f32 %v7725_v36, %v7705_v53  ;;  %v9676_v53 = vld [vmem:[#allocation38_spill] sm:$0xff] }
 0x296   : > { %v2840_v14 = vmax.f32 %v9670_v32, %v2648_v5  ;;  %9672 = vst [vmem:[#allocation101_spill] sm:$0xff] %v7738_v0  ;;  %5038 = vrcp.f32 %v3298_v37  ;;  %v2727_v15 = vmul.f32 0.17677669, %v7491_v57  ;;  %v2728_v49 = vmul.f32 0.17677669, %v7513_v60  ;;  %v7744_v26 = vpop.eup %5020  ;;  %v9675_v57 = vld [vmem:[#allocation36_spill] sm:$0xff] }
 0x297   : > { %9673 = vst [vmem:[#allocation102_spill] sm:$0xff] %v7744_v26  ;;  %5040 = vpow2.f32 %v7609_v19  ;;  %v7747_v61 = vmul.f32 1.442695, %v2951_v6  ;;  %v7751_v30 = vpop.eup %5022  ;;  %v3011_v37 = vadd.f32 %v7738_v0, %v2995_v12  ;;  %v9677_v60 = vmax.f32 %v9675_v57, %v9676_v53  ;;  %v9680_v6 = vld [vmem:[#allocation83_spill] sm:$0xff] }
 0x298   : > { %v2856_v29 = vsub.f32 %v7042_v50, %v2840_v14  ;;  %v2904_v32 = vsub.f32 %v7044_v41, %v2840_v14  ;;  %9674 = vst [vmem:[#allocation103_spill] sm:$0xff] %v7751_v30  ;;  %5042 = vpow2.f32 %v7611_v62  ;;  %v2952_v36 = vsub.f32 %v2648_v5, %v2840_v14  ;;  %v7758_v10 = vpop.eup %5024  ;;  %v9679_v41 = vld [vmem:[#allocation48_spill] sm:$0xff]  ;;  %v7782_v0 = vpop.xlane.xlu0 %2514 }
 0x299   : > { %v3127_v22 = vmax.f32 %v9677_v60, %v2727_v15  ;;  %9678 = vst [vmem:[#allocation36_spill] sm:$0xff] %v7758_v10  ;;  %5044 = vpow2.f32 %v7617_v17  ;;  %v9681_v30 = vmax.f32 %v9679_v41, %v9680_v6  ;;  %v7768_v12 = vpop.eup %5026  ;;  %v2996_v62 = vadd.f32 %v7758_v10, %v7744_v26  ;;  %v7775_v60 = vpop.xlane.xlu1 %2277 }
 0x29a   : > { %v7761_v19 = vmul.f32 1.442695, %v2856_v29  ;;  %v7763_v50 = vmul.f32 1.442695, %v2904_v32  ;;  %9682 = vst [vmem:[#allocation38_spill] sm:$0xff] %v7768_v12  ;;  %5046 = vrcp.f32 %v3011_v37  ;;  %v7777_v17 = vpop.eup %5028 }
 0x29b   : > { %v3128_v46 = vmax.f32 %v9681_v30, %v2728_v49  ;;  %v7772_v5 = vmul.f32 1.442695, %v2952_v36  ;;  %v3143_v14 = vsub.f32 %v9675_v57, %v3127_v22  ;;  %9683 = vst [vmem:[#allocation48_spill] sm:$0xff] %v7777_v17  ;;  %5048 = vpow2.f32 %v7619_v27  ;;  %v7784_v37 = vpop.eup %5030 }
 0x29c   : > { %v3191_v29 = vsub.f32 %v9676_v53, %v3127_v22  ;;  %v3239_v32 = vsub.f32 %v2727_v15, %v3127_v22  ;;  %9684 = vst [vmem:[#allocation83_spill] sm:$0xff] %v7784_v37  ;;  %v3012_v36 = vadd.f32 %v7768_v12, %v2996_v62  ;;  %5050 = vpow2.f32 %v7646_v47  ;;  %v7791_v26 = vpop.eup %5032 }
 0x29d   : > { %v3144_v30 = vsub.f32 %v9679_v41, %v3128_v46  ;;  %v7788_v57 = vmul.f32 1.442695, %v3143_v14  ;;  %v3192_v10 = vsub.f32 %v9680_v6, %v3128_v46  ;;  %9685 = vst [vmem:[#allocation104_spill] sm:$0xff] %v7791_v26  ;;  %5052 = vpow2.f32 %v7658_v21 }
 0x29e   : > { %v7794_v27 = vmul.f32 1.442695, %v3191_v29  ;;  %v7796_v22 = vmul.f32 1.442695, %v3239_v32  ;;  %v7800_v15 = vpop.eup %5034  ;;  %5054 = vrcp.f32 %v3012_v36  ;;  %v3283_v47 = vadd.f32 %v7791_v26, %v7777_v17 }
 0x29f   : > { %v7798_v53 = vmul.f32 1.442695, %v3144_v30  ;;  %9686 = vst [vmem:[#allocation105_spill] sm:$0xff] %v7800_v15  ;;  %v7804_v41 = vmul.f32 1.442695, %v3192_v10  ;;  %v3240_v62 = vsub.f32 %v2728_v49, %v3128_v46  ;;  %v7806_v6 = vpop.eup %5036  ;;  %5056 = vpow2.f32 %v7660_v54  ;;  %v7821_v10 = vpop.xlane.xlu1 %2517 }
 0x2a0   : > { %9687 = vst [vmem:[#allocation106_spill] sm:$0xff] %v7806_v6  ;;  %v2649_v21 = vmul.f32 0.17677669, %v7521_v38  ;;  %v2650_v14 = vmul.f32 0.17677669, %v7546_v52  ;;  %v7812_v32 = vpop.eup %5038  ;;  %v3299_v30 = vadd.f32 %v7800_v15, %v3283_v47  ;;  %5058 = vpow2.f32 %v7667_v39  ;;  %v9693_v15 = vld [vmem:[#allocation7_spill] sm:$0xff] }
 0x2a1   : > { %v2729_v29 = vmul.f32 0.17677669, %v7553_v1  ;;  %v7816_v36 = vmul.f32 1.442695, %v3240_v62  ;;  %v7819_v46 = vmul.f32 0.17677669, %v7582_v8  ;;  %v7823_v54 = vpop.eup %5040  ;;  %5060 = vpow2.f32 %v7669_v9  ;;  %v7835_v8 = vpop.xlane.xlu0 %2754 }
 0x2a2   : > { %9688 = vst [vmem:[#allocation107_spill] sm:$0xff] %v7823_v54  ;;  %v9689_v1 = vmax.f32 %v7115_v56, %v7117_v34  ;;  %v9690_v52 = vmax.f32 %v7159_v35, %v7161_v23  ;;  %v9691_v39 = vmax.f32 %v7167_v20, %v7169_v51  ;;  %v7837_v62 = vpop.eup %5042  ;;  %5062 = vrcp.f32 %v3299_v30 }
 0x2a3   : > { %9692 = vst [vmem:[#allocation108_spill] sm:$0xff] %v7837_v62  ;;  %v3284_v9 = vadd.f32 %v7823_v54, %v7806_v6  ;;  %v7846_v17 = vmul.f32 0.17677669, %v7592_v42  ;;  %5064 = vpow2.f32 %v7676_v13 }
 0x2a4   : > { %v2841_v38 = vmax.f32 %v9689_v1, %v2649_v21  ;;  %v2842_v49 = vmax.f32 %v9690_v52, %v2650_v14  ;;  %v3129_v47 = vmax.f32 %v9691_v39, %v2729_v29  ;;  %v9694_v1 = vmax.f32 %v7202_v25, %v9693_v15  ;;  %v7848_v52 = vpop.eup %5044 }
 0x2a5   : > { %9695 = vst [vmem:[#allocation7_spill] sm:$0xff] %v7848_v52  ;;  %v7853_v37 = vpop.eup %5046  ;;  %v3300_v54 = vadd.f32 %v7837_v62, %v3284_v9  ;;  %5066 = vpow2.f32 %v7696_v40 }
 0x2a6   : > { %v3130_v26 = vmax.f32 %v9694_v1, %v7819_v46  ;;  %v2857_v39 = vsub.f32 %v7115_v56, %v2841_v38  ;;  %v2905_v12 = vsub.f32 %v7117_v34, %v2841_v38  ;;  %v2953_v30 = vsub.f32 %v2649_v21, %v2841_v38  ;;  %9696 = vst [vmem:[#allocation109_spill] sm:$0xff] %v7853_v37  ;;  %v7859_v6 = vpop.eup %5048 }
 0x2a7   : > { %v2858_v1 = vsub.f32 %v7159_v35, %v2842_v49  ;;  %v2906_v42 = vsub.f32 %v7161_v23, %v2842_v49  ;;  %9697 = vst [vmem:[#allocation110_spill] sm:$0xff] %v7859_v6  ;;  %5068 = vpow2.f32 %v7708_v7  ;;  %v7868_v21 = vpop.eup %5050  ;;  %v2997_v40 = vadd.f32 %v7859_v6, %v7848_v52  ;;  %v7876_v23 = vpop.xlane.xlu1 %2757 }
 0x2a8   : > { %v7862_v13 = vmul.f32 1.442695, %v2857_v39  ;;  %v7864_v56 = vmul.f32 1.442695, %v2905_v12  ;;  %v7866_v34 = vmul.f32 1.442695, %v2953_v30  ;;  %5070 = vrcp.f32 %v3300_v54  ;;  %v7878_v9 = vpop.eup %5052  ;;  %v7883_v30 = vpop.xlane.xlu0 %2280 }
 0x2a9   : > { %9698 = vst [vmem:[#allocation111_spill] sm:$0xff] %v7868_v21  ;;  %v7872_v38 = vmul.f32 1.442695, %v2858_v1  ;;  %v7874_v35 = vmul.f32 1.442695, %v2906_v42  ;;  %9699 = vst [vmem:[#allocation112_spill] sm:$0xff] %v7878_v9  ;;  %5072 = vpow2.f32 %v7710_v11  ;;  %v2954_v7 = vsub.f32 %v2650_v14, %v2842_v49  ;;  %v7885_v54 = vpop.eup %5054 }
 0x2aa   : > { %v3145_v12 = vsub.f32 %v7167_v20, %v3129_v47  ;;  %v3193_v39 = vsub.f32 %v7169_v51, %v3129_v47  ;;  %v3013_v1 = vadd.f32 %v7868_v21, %v2997_v40  ;;  %5074 = vpow2.f32 %v7717_v16  ;;  %v7890_v52 = vpop.eup %5056 }
 0x2ab   : > { %v3241_v42 = vsub.f32 %v2729_v29, %v3129_v47  ;;  %v3146_v6 = vsub.f32 %v7202_v25, %v3130_v26  ;;  %9700 = vst [vmem:[#allocation113_spill] sm:$0xff] %v7890_v52  ;;  %5076 = vpow2.f32 %v7719_v44  ;;  %v7893_v11 = vmul.f32 1.442695, %v2954_v7  ;;  %v7899_v14 = vpop.eup %5058 }
 0x2ac   : > { %v7895_v20 = vmul.f32 1.442695, %v3145_v12  ;;  %v7897_v51 = vmul.f32 1.442695, %v3193_v39  ;;  %9701 = vst [vmem:[#allocation114_spill] sm:$0xff] %v7899_v14  ;;  %5078 = vrcp.f32 %v3013_v1  ;;  %v2998_v49 = vadd.f32 %v7890_v52, %v7878_v9  ;;  %v7907_v25 = vpop.eup %5060  ;;  %v7919_v1 = vpop.xlane.xlu1 %2283 }
 0x2ad   : > { %v7903_v16 = vmul.f32 1.442695, %v3241_v42  ;;  %v7905_v29 = vmul.f32 1.442695, %v3146_v6  ;;  %9702 = vst [vmem:[#allocation115_spill] sm:$0xff] %v7907_v25  ;;  %5080 = vpow2.f32 %v7728_v3  ;;  %v3194_v44 = vsub.f32 %v9693_v15, %v3130_v26  ;;  %v7913_v7 = vpop.eup %5062  ;;  %v7921_v42 = vpop.f32.mrb[62].mxu0 }
 0x2ae   : > { %v3242_v47 = vsub.f32 %v7819_v46, %v3130_v26  ;;  %v2316_v40 = vmul.f32 0.17677669, %v7621_v24  ;;  %9703 = vst [vmem:[#allocation116_spill] sm:$0xff] %v7913_v7  ;;  %v3014_v12 = vadd.f32 %v7899_v14, %v2998_v49  ;;  %5082 = vpow2.f32 %v7747_v61  ;;  %v7923_v3 = vpop.eup %5064  ;;  %v7931_v46 = vpop.xlane.xlu0 %2520 }
 0x2af   : > { %v2555_v39 = vmul.f32 0.17677669, %v7633_v63  ;;  %v2556_v6 = vmul.f32 0.17677669, %v7671_v4  ;;  %9704 = vst [vmem:[#allocation117_spill] sm:$0xff] %v7923_v3  ;;  %5084 = vpow2.f32 %v7761_v19  ;;  %v7933_v61 = vpop.eup %5066  ;;  %v3285_v63 = vadd.f32 %v7923_v3, %v7907_v25  ;;  %v7938_v21 = vpop.f32.mrb[63].mxu0 }
 0x2b0   : > { %v7926_v26 = vmul.f32 1.442695, %v3194_v44  ;;  %v7928_v24 = vmul.f32 1.442695, %v3242_v47  ;;  %v2795_v15 = vmul.f32 0.17677669, %v7682_v58  ;;  %5086 = vrcp.f32 %v3014_v12 }
 0x2b1   : > { %9705 = vst [vmem:[#allocation118_spill] sm:$0xff] %v7933_v61  ;;  %v3387_v4 = vmax.f32 %v7846_v17, %v2555_v39  ;;  %v3388_v49 = vmax.f32 %v2316_v40, %v2556_v6  ;;  %v7940_v19 = vpop.eup %5068  ;;  %5088 = vpow2.f32 %v7763_v50  ;;  %v2796_v44 = vmul.f32 0.17677669, %v7721_v55 }
 0x2b2   : > { %9706 = vst [vmem:[#allocation119_spill] sm:$0xff] %v7940_v19  ;;  %v7945_v58 = vmul.f32 0.17677669, %v7734_v33  ;;  %v7948_v47 = vmul.f32 0.17677669, %v7775_v60  ;;  %v7950_v12 = vpop.eup %5070  ;;  %v3301_v3 = vadd.f32 %v7933_v61, %v3285_v63  ;;  %5090 = vpow2.f32 %v7772_v5  ;;  %v2761_v9 = vpop.xlane.xlu0 %2760 }
 0x2b3   : > { %v3403_v25 = vmax.f32 %v3387_v4, %v2795_v15  ;;  %v7955_v14 = vmul.f32 0.17677669, %v7782_v0  ;;  %v7957_v52 = vpop.eup %5072  ;;  %5092 = vpow2.f32 %v7788_v57  ;;  %v3404_v55 = vmax.f32 %v3388_v49, %v2796_v44  ;;  %v7969_v4 = vpop.xlane.xlu1 %2523 }
 0x2b4   : > { %9707 = vst [vmem:[#allocation120_spill] sm:$0xff] %v7957_v52  ;;  %v7961_v33 = vmul.f32 0.17677669, %v7821_v10  ;;  %v2797_v50 = vmul.f32 0.17677669, %v7835_v8  ;;  %v7964_v60 = vpop.eup %5074  ;;  %5094 = vrcp.f32 %v3301_v3  ;;  %v3286_v5 = vadd.f32 %v7957_v52, %v7940_v19 }
 0x2b5   : > { %9708 = vst [vmem:[#allocation121_spill] sm:$0xff] %v7964_v60  ;;  %v3419_v63 = vsub.f32 %v7846_v17, %v3403_v25  ;;  %v3467_v0 = vsub.f32 %v2555_v39, %v3403_v25  ;;  %v7971_v61 = vpop.eup %5076  ;;  %5096 = vpow2.f32 %v7794_v27  ;;  %v3515_v57 = vsub.f32 %v2795_v15, %v3403_v25 }
 0x2b6   : > { %9709 = vst [vmem:[#allocation122_spill] sm:$0xff] %v7971_v61  ;;  %v3420_v10 = vsub.f32 %v2316_v40, %v3404_v55  ;;  %v3468_v49 = vsub.f32 %v2556_v6, %v3404_v55  ;;  %v7974_v8 = vpop.eup %5078  ;;  %v3302_v3 = vadd.f32 %v7964_v60, %v3286_v5  ;;  %5098 = vpow2.f32 %v7796_v22 }
 0x2b7   : > { %9710 = vst [vmem:[#allocation123_spill] sm:$0xff] %v7974_v8  ;;  %v7978_v52 = vmul.f32 1.442695, %v3419_v63  ;;  %v7980_v17 = vmul.f32 1.442695, %v3467_v0  ;;  %v7982_v39 = vpop.eup %5080  ;;  %5100 = vpow2.f32 %v7798_v53  ;;  %v3516_v6 = vsub.f32 %v2796_v44, %v3404_v55 }
 0x2b8   : > { %9711 = vst [vmem:[#allocation124_spill] sm:$0xff] %v7982_v39  ;;  %v7985_v19 = vmul.f32 1.442695, %v3515_v57  ;;  %v7987_v27 = vmul.f32 1.442695, %v3420_v10  ;;  %v7991_v40 = vpop.eup %5082  ;;  %5102 = vrcp.f32 %v3302_v3  ;;  %v2999_v22 = vadd.f32 %v7982_v39, %v7971_v61  ;;  %v2287_v39 = vpop.xlane.xlu0 %2286 }
 0x2b9   : > { %v7989_v25 = vmul.f32 1.442695, %v3468_v49  ;;  %9712 = vst [vmem:[#allocation125_spill] sm:$0xff] %v7991_v40  ;;  %v3389_v15 = vmax.f32 %v7945_v58, %v7955_v14  ;;  %v7997_v5 = vpop.eup %5084  ;;  %5104 = vpow2.f32 %v7804_v41  ;;  %v3390_v53 = vmax.f32 %v7948_v47, %v7961_v33  ;;  %v2764_v49 = vpop.xlane.xlu1 %2763 }
 0x2ba   : > { %9713 = vst [vmem:[#allocation126_spill] sm:$0xff] %v7997_v5  ;;  %v2798_v63 = vmul.f32 0.17677669, %v7876_v23  ;;  %v8004_v0 = vmul.f32 0.17677669, %v7883_v30  ;;  %v8006_v57 = vpop.eup %5086  ;;  %v3015_v10 = vadd.f32 %v7991_v40, %v2999_v22  ;;  %5106 = vpow2.f32 %v7816_v36 }
 0x2bb   : > { %9714 = vst [vmem:[#allocation127_spill] sm:$0xff] %v8006_v57  ;;  %v8010_v44 = vmul.f32 1.442695, %v3516_v6  ;;  %v3405_v55 = vmax.f32 %v3389_v15, %v2797_v50  ;;  %v8012_v3 = vpop.eup %5088  ;;  %5108 = vpow2.f32 %v7862_v13  ;;  %v8016_v23 = vmul.f32 0.17677669, %v7919_v1 }
 0x2bc   : > { %9715 = vst [vmem:[#allocation128_spill] sm:$0xff] %v8012_v3  ;;  %v3406_v41 = vmax.f32 %v3390_v53, %v2798_v63  ;;  %v8019_v30 = vmul.f32 0.17677669, %v7931_v46  ;;  %v8021_v61 = vpop.eup %5090  ;;  %5110 = vrcp.f32 %v3015_v10  ;;  %v3000_v36 = vadd.f32 %v8012_v3, %v7997_v5 }
 0x2bd   : > { %9716 = vst [vmem:[#allocation129_spill] sm:$0xff] %v8021_v61  ;;  %v3421_v22 = vsub.f32 %v7945_v58, %v3405_v55  ;;  %v3469_v6 = vsub.f32 %v7955_v14, %v3405_v55  ;;  %v8027_v15 = vpop.eup %5092  ;;  %5112 = vpow2.f32 %v7864_v56  ;;  %v3517_v13 = vsub.f32 %v2797_v50, %v3405_v55 }
 0x2be   : > { %9717 = vst [vmem:[#allocation130_spill] sm:$0xff] %v8027_v15  ;;  %v3422_v1 = vsub.f32 %v7948_v47, %v3406_v41  ;;  %v3470_v46 = vsub.f32 %v7961_v33, %v3406_v41  ;;  %v8032_v53 = vpop.eup %5094  ;;  %v3016_v10 = vadd.f32 %v8021_v61, %v3000_v36  ;;  %5114 = vpow2.f32 %v7866_v34 }
 0x2bf   : > { %9718 = vst [vmem:[#allocation131_spill] sm:$0xff] %v8032_v53  ;;  %v8036_v40 = vmul.f32 1.442695, %v3421_v22  ;;  %v8038_v58 = vmul.f32 1.442695, %v3469_v6  ;;  %v8040_v14 = vpop.eup %5096  ;;  %5116 = vpow2.f32 %v7872_v38  ;;  %v3518_v55 = vsub.f32 %v2798_v63, %v3406_v41  ;;  %v2290_v22 = vpop.xlane.xlu1 %2289 }
 0x2c0   : > { %9719 = vst [vmem:[#allocation132_spill] sm:$0xff] %v8040_v14  ;;  %v8043_v56 = vmul.f32 1.442695, %v3517_v13  ;;  %v8045_v50 = vmul.f32 1.442695, %v3422_v1  ;;  %v8049_v33 = vpop.eup %5098  ;;  %5118 = vrcp.f32 %v3016_v10  ;;  %v3287_v34 = vadd.f32 %v8040_v14, %v8027_v15 }
 0x2c1   : > { %v8047_v47 = vmul.f32 1.442695, %v3470_v46  ;;  %9720 = vst [vmem:[#allocation133_spill] sm:$0xff] %v8049_v33  ;;  %v3391_v36 = vmax.f32 %v8004_v0, %v8019_v30  ;;  %v8055_v6 = vpop.eup %5100  ;;  %5120 = vpow2.f32 %v7874_v35  ;;  %v2560_v38 = vmul.f32 0.17677669, %v7969_v4  ;;  %v2527_v46 = vpop.xlane.xlu0 %2526 }
 0x2c2   : > { %9721 = vst [vmem:[#allocation134_spill] sm:$0xff] %v8055_v6  ;;  %v2799_v13 = vmul.f32 0.17677669, %v2761_v9  ;;  %v2800_v1 = vmul.f32 0.17677669, %v2764_v49  ;;  %v8059_v61 = vpop.eup %5102  ;;  %v3303_v10 = vadd.f32 %v8049_v33, %v3287_v34  ;;  %5122 = vpow2.f32 %v7893_v11 }
 0x2c3   : > { %9722 = vst [vmem:[#allocation135_spill] sm:$0xff] %v8059_v61  ;;  %v8063_v63 = vmul.f32 1.442695, %v3518_v55  ;;  %v8065_v41 = vmul.f32 0.17677669, %v2287_v39  ;;  %v8067_v14 = vpop.eup %5104  ;;  %5124 = vpow2.f32 %v7895_v20  ;;  %v3392_v35 = vmax.f32 %v8016_v23, %v2560_v38 }
 0x2c4   : > { %9723 = vst [vmem:[#allocation136_spill] sm:$0xff] %v8067_v14  ;;  %v3407_v4 = vmax.f32 %v3391_v36, %v2799_v13  ;;  %v8071_v9 = vmul.f32 0.17677669, %v2290_v22  ;;  %v8073_v49 = vpop.eup %5106  ;;  %5126 = vrcp.f32 %v3303_v10  ;;  %v3288_v34 = vadd.f32 %v8067_v14, %v8055_v6  ;;  %v8082_v39 = vld [vmem:[%s9066_s6] ss:$0 sm:$0xff]  ;;  %v8099_v14 = vpop.f32.mrb[64].mxu0 }
 0x2c5   : > { %9724 = vst [vmem:[#allocation137_spill] sm:$0xff] %v8073_v49  ;;  %v8077_v11 = vmul.f32 0.17677669, %v2527_v46  ;;  %v8086_v20 = vadd.f32 %v8082_v39, %v7381_v31  ;;  %v8088_v55 = vpop.eup %5108  ;;  %5128 = vpow2.f32 %v7897_v51  ;;  %v3408_v15 = vmax.f32 %v3392_v35, %v2800_v1 }
 0x2c6   : > { %9725 = vst [vmem:[#allocation138_spill] sm:$0xff] %v8088_v55  ;;  %v3423_v36 = vsub.f32 %v8004_v0, %v3407_v4  ;;  %v3471_v22 = vsub.f32 %v8019_v30, %v3407_v4  ;;  %v3519_v10 = vsub.f32 %v2799_v13, %v3407_v4  ;;  %v8093_v46 = vpop.eup %5110  ;;  %v3304_v33 = vadd.f32 %v8073_v49, %v3288_v34  ;;  %v8115_v34 = vpop.f32.mrb[65].mxu0  ;;  %v9740_v49 = vld [vmem:[#allocation25_spill] sm:$0xff] }
 0x2c7   : > { %9726 = vst [vmem:[#allocation139_spill] sm:$0xff] %v8093_v46  ;;  %5130 = vpow2.f32 %v7903_v16  ;;  %v8101_v6 = vpop.eup %5112  ;;  %v3424_v35 = vsub.f32 %v8016_v23, %v3408_v15  ;;  %v3472_v4 = vsub.f32 %v2560_v38, %v3408_v15  ;;  %9729 = vst [vmem:[#allocation142_spill] sm:$0xff] %v8115_v34  ;;  %v9737_v46 = vld [vmem:[#allocation58_spill] sm:$0xff] }
 0x2c8   : > { %9727 = vst [vmem:[#allocation140_spill] sm:$0xff] %v8101_v6  ;;  %5132 = vpow2.f32 %v7905_v29  ;;  %v8104_v51 = vmul.f32 1.442695, %v3423_v36  ;;  %v8106_v0 = vmul.f32 1.442695, %v3471_v22  ;;  %v8110_v13 = vpop.eup %5114  ;;  %v3001_v16 = vadd.f32 %v8101_v6, %v8088_v55  ;;  %v2530_v6 = vpop.xlane.xlu1 %2529 }
 0x2c9   : > { %v8108_v30 = vmul.f32 1.442695, %v3519_v10  ;;  %9728 = vst [vmem:[#allocation141_spill] sm:$0xff] %v8110_v13  ;;  %5134 = vrcp.f32 %v3304_v33  ;;  %v8117_v31 = vpop.eup %5116  ;;  %v3520_v29 = vsub.f32 %v2800_v1, %v3408_v15  ;;  %v3052_v36 = vmul.f32 %v7383_v28, %v7299_v2  ;;  %v8132_v55 = vpop.xlane.xlu0 %2766  ;;  %v9733_v15 = vld [vmem:[#allocation31_spill] sm:$0xff]  ;;  %v9734_v1 = vld [vmem:[#allocation74_spill] sm:$0xff] }
 0x2ca   : > { %9730 = vst [vmem:[#allocation143_spill] sm:$0xff] %v8117_v31  ;;  %5136 = vpow2.f32 %v7926_v26  ;;  %v3068_v22 = vmul.f32 %v7383_v28, %v7301_v59  ;;  %v8124_v33 = vpop.eup %5118  ;;  %v3017_v10 = vadd.f32 %v8110_v13, %v3001_v16  ;;  %v8128_v23 = vmul.f32 1.442695, %v3424_v35 }
 0x2cb   : > { %9731 = vst [vmem:[#allocation144_spill] sm:$0xff] %v8124_v33  ;;  %5138 = vpow2.f32 %v7928_v24  ;;  %v8130_v38 = vmul.f32 1.442695, %v3472_v4  ;;  %v8134_v26 = vpop.eup %5120  ;;  %v8137_v2 = vmul.f32 1.442695, %v3520_v29  ;;  %v3084_v59 = vmul.f32 %v7383_v28, %v7304_v18  ;;  %v9736_v4 = vld [vmem:[#allocation32_spill] sm:$0xff] }
 0x2cc   : > { %9732 = vst [vmem:[#allocation145_spill] sm:$0xff] %v8134_v26  ;;  %5140 = vpow2.f32 %v7978_v52  ;;  %v3340_v16 = vmul.f32 %v9734_v1, %v9733_v15  ;;  %v8143_v24 = vpop.eup %5122  ;;  %v3002_v35 = vadd.f32 %v8134_v26, %v8117_v31  ;;  %v3356_v13 = vmul.f32 %v9734_v1, %v9736_v4  ;;  %v9739_v18 = vld [vmem:[#allocation13_spill] sm:$0xff]  ;;  %v9752_v31 = vld [vmem:[#allocation27_spill] sm:$0xff] }
 0x2cd   : > { %9735 = vst [vmem:[#allocation31_spill] sm:$0xff] %v8143_v24  ;;  %5142 = vrcp.f32 %v3017_v10  ;;  %v3372_v52 = vmul.f32 %v9734_v1, %v9737_v46  ;;  %v8151_v29 = vpop.eup %5124  ;;  %v3676_v28 = vmul.f32 %v3052_v36, %v9739_v18  ;;  %v3793_v3 = vmul.f32 %v3068_v22, %v9739_v18 }
 0x2ce   : > { %9738 = vst [vmem:[#allocation74_spill] sm:$0xff] %v8151_v29  ;;  %5144 = vpow2.f32 %v7980_v17  ;;  %v3692_v15 = vmul.f32 %v3340_v16, %v9740_v49  ;;  %v8157_v10 = vpop.eup %5126  ;;  %v3018_v26 = vadd.f32 %v8143_v24, %v3002_v35  ;;  %v3809_v4 = vmul.f32 %v3356_v13, %v9740_v49  ;;  %v9745_v35 = vld [vmem:[#allocation66_spill] sm:$0xff] }
 0x2cf   : > { %9741 = vst [vmem:[#allocation32_spill] sm:$0xff] %v8157_v10  ;;  %5146 = vpow2.f32 %v7985_v19  ;;  %v3910_v46 = vmul.f32 %v3084_v59, %v9739_v18  ;;  %v8163_v1 = vpop.eup %5128  ;;  %v3926_v36 = vmul.f32 %v3372_v52, %v9740_v49  ;;  %v8171_v22 = vadd.f32 %v8082_v39, %v7483_v43  ;;  %v9744_v59 = vld [vmem:[#allocation55_spill] sm:$0xff]  ;;  %v9747_v43 = vld [vmem:[#allocation30_spill] sm:$0xff] }
 0x2d0   : > { %9742 = vst [vmem:[#allocation58_spill] sm:$0xff] %v8163_v1  ;;  %5148 = vpow2.f32 %v7987_v27  ;;  %v8166_v17 = vadd.f32 %v3692_v15, %v3676_v28  ;;  %v3289_v19 = vadd.f32 %v8163_v1, %v8151_v29  ;;  %v8177_v13 = vadd.f32 %v3809_v4, %v3793_v3  ;;  %v2770_v27 = vpop.xlane.xlu1 %2769  ;;  %v2293_v28 = vpop.xlane.xlu0 %2292  ;;  %v9750_v4 = vld [vmem:[#allocation24_spill] sm:$0xff] }
 0x2d1   : > { %v8173_v16 = vpop.eup %5130  ;;  %5150 = vrcp.f32 %v3018_v26  ;;  %v3051_v18 = vmul.f32 %v9745_v35, %v9744_v59  ;;  %v8184_v49 = vadd.f32 %v3926_v36, %v3910_v46  ;;  %v3067_v52 = vmul.f32 %v9745_v35, %v9747_v43  ;;  %v9748_v26 = vld [vmem:[#allocation23_spill] sm:$0xff]  ;;  %v9751_v59 = vld [vmem:[#allocation72_spill] sm:$0xff] }
 0x2d2   : > { %9743 = vst [vmem:[#allocation13_spill] sm:$0xff] %v8173_v16  ;;  %v8181_v15 = vpop.eup %5132  ;;  %5152 = vpow2.f32 %v7989_v25  ;;  %v3083_v24 = vmul.f32 %v9745_v35, %v9748_v26  ;;  %v3305_v3 = vadd.f32 %v8173_v16, %v3289_v19  ;;  %v3339_v29 = vmul.f32 %v9751_v59, %v9750_v4  ;;  %v9754_v36 = vld [vmem:[#allocation28_spill] sm:$0xff]  ;;  %v9755_v35 = vld [vmem:[#allocation37_spill] sm:$0xff]  ;;  %v9757_v4 = vld [vmem:[#allocation54_spill] sm:$0xff] }
 0x2d3   : > { %9746 = vst [vmem:[#allocation25_spill] sm:$0xff] %v8181_v15  ;;  %v8190_v1 = vpop.eup %5134  ;;  %5154 = vpow2.f32 %v8010_v44  ;;  %v3355_v25 = vmul.f32 %v9751_v59, %v9752_v31  ;;  %v3371_v43 = vmul.f32 %v9751_v59, %v9754_v36  ;;  %v3675_v26 = vmul.f32 %v3051_v18, %v9755_v35 }
 0x2d4   : > { %9749 = vst [vmem:[#allocation55_spill] sm:$0xff] %v8190_v1  ;;  %v8198_v46 = vpop.eup %5136  ;;  %5156 = vpow2.f32 %v8036_v40  ;;  %v3792_v10 = vmul.f32 %v3067_v52, %v9755_v35  ;;  %v3691_v16 = vmul.f32 %v3339_v29, %v9757_v4  ;;  %v3909_v40 = vmul.f32 %v3083_v24, %v9755_v35 }
 0x2d5   : > { %9753 = vst [vmem:[#allocation66_spill] sm:$0xff] %v8198_v46  ;;  %v8205_v19 = vpop.eup %5138  ;;  %5158 = vrcp.f32 %v3305_v3  ;;  %v3290_v44 = vadd.f32 %v8198_v46, %v8181_v15  ;;  %v3808_v31 = vmul.f32 %v3355_v25, %v9757_v4  ;;  %v3925_v18 = vmul.f32 %v3371_v43, %v9757_v4  ;;  %v2296_v25 = vpop.xlane.xlu1 %2295 }
 0x2d6   : > { %9756 = vst [vmem:[#allocation30_spill] sm:$0xff] %v8205_v19  ;;  %v8211_v1 = vpop.eup %5140  ;;  %5160 = vpow2.f32 %v8038_v58  ;;  %v2562_v59 = vmul.f32 0.17677669, %v2530_v6  ;;  %v8220_v36 = vadd.f32 %v3691_v16, %v3675_v26  ;;  %v2533_v46 = vpop.xlane.xlu0 %2532  ;;  %v2801_v24 = vmul.f32 0.17677669, %v8132_v55 }
 0x2d7   : > { %v8216_v52 = vpop.eup %5142  ;;  %v3306_v3 = vadd.f32 %v8205_v19, %v3290_v44  ;;  %5162 = vpow2.f32 %v8043_v56  ;;  %v8222_v29 = vadd.f32 %v3808_v31, %v3792_v10  ;;  %v8227_v58 = vadd.f32 %v3925_v18, %v3909_v40 }
 0x2d8   : > { %9758 = vst [vmem:[#allocation23_spill] sm:$0xff] %v8216_v52  ;;  %v8224_v15 = vpop.eup %5144  ;;  %5164 = vpow2.f32 %v8045_v50  ;;  %v3394_v6 = vmax.f32 %v8071_v9, %v2562_v59  ;;  %v2802_v10 = vmul.f32 0.17677669, %v2770_v27  ;;  %v8235_v16 = vmul.f32 0.17677669, %v2293_v28 }
 0x2d9   : > { %v8231_v43 = vpop.eup %5146  ;;  %5166 = vrcp.f32 %v3306_v3  ;;  %v3563_v56 = vadd.f32 %v8224_v15, %v8211_v1  ;;  %v9759_v50 = vmax.f32 %v8065_v41, %v8077_v11  ;;  %v8243_v44 = vmul.f32 0.17677669, %v2296_v25 }
 0x2da   : > { %v8237_v35 = vpop.eup %5148  ;;  %5168 = vpow2.f32 %v8047_v47  ;;  %v8245_v55 = vmul.f32 0.17677669, %v2533_v46  ;;  %v3410_v27 = vmax.f32 %v3394_v6, %v2802_v10  ;;  %v8253_v28 = vadd.f32 %v8082_v39, %v7493_v45 }
 0x2db   : > { %v3409_v26 = vmax.f32 %v9759_v50, %v2801_v24  ;;  %v8247_v4 = vpop.eup %5150  ;;  %v3579_v31 = vadd.f32 %v8231_v43, %v3563_v56  ;;  %5170 = vpow2.f32 %v8063_v63 }
 0x2dc   : > { %9760 = vst [vmem:[#allocation24_spill] sm:$0xff] %v8247_v4  ;;  %v8255_v47 = vpop.eup %5152  ;;  %5172 = vpow2.f32 %v8104_v51  ;;  %v3426_v25 = vsub.f32 %v8071_v9, %v3410_v27  ;;  %v3474_v6 = vsub.f32 %v2562_v59, %v3410_v27  ;;  %v3522_v9 = vsub.f32 %v2802_v10, %v3410_v27  ;;  %v9763_v59 = vld [vmem:[#allocation65_spill] sm:$0xff]  ;;  %v9770_v4 = vld [vmem:[#allocation75_spill] sm:$0xff] }
 0x2dd   : > { %v3425_v40 = vsub.f32 %v8065_v41, %v3409_v26  ;;  %v3473_v46 = vsub.f32 %v8077_v11, %v3409_v26  ;;  %v3521_v18 = vsub.f32 %v2801_v24, %v3409_v26  ;;  %v8260_v3 = vpop.eup %5154  ;;  %5174 = vrcp.f32 %v3579_v31  ;;  %v8272_v31 = vpop.f32.mrb[66].mxu0 }
 0x2de   : > { %v3564_v63 = vadd.f32 %v8255_v47, %v8237_v35  ;;  %v8265_v45 = vpop.eup %5156  ;;  %5176 = vpow2.f32 %v8106_v0  ;;  %v3449_v24 = vmul.f32 1.442695, %v3426_v25  ;;  %v3497_v26 = vmul.f32 1.442695, %v3474_v6  ;;  %9762 = vst [vmem:[#allocation27_spill] sm:$0xff] %v8272_v31  ;;  %v9766_v25 = vld [vmem:[#allocation67_spill] sm:$0xff] }
 0x2df   : > { %v3447_v56 = vmul.f32 1.442695, %v3425_v40  ;;  %v3495_v51 = vmul.f32 1.442695, %v3473_v46  ;;  %v3543_v50 = vmul.f32 1.442695, %v3521_v18  ;;  %v8268_v41 = vpop.eup %5158  ;;  %5178 = vpow2.f32 %v8108_v30 }
 0x2e0   : > { %9761 = vst [vmem:[#allocation72_spill] sm:$0xff] %v8268_v41  ;;  %v3580_v11 = vadd.f32 %v8260_v3, %v3564_v63  ;;  %v8274_v52 = vpop.eup %5160  ;;  %5180 = vpow2.f32 %v8128_v23  ;;  %v9764_v40 = vld [vmem:[#allocation52_spill] sm:$0xff]  ;;  %v8281_v18 = vpop.f32.mrb[67].mxu0  ;;  %v3545_v27 = vmul.f32 1.442695, %v3522_v9  ;;  %v9774_v9 = vld [vmem:[#allocation26_spill] sm:$0xff] }
 0x2e1   : > { %v3054_v46 = vmul.f32 %v9764_v40, %v9763_v59  ;;  %9765 = vst [vmem:[#allocation28_spill] sm:$0xff] %v8281_v18  ;;  %v8283_v63 = vpop.eup %5162  ;;  %v3565_v30 = vadd.f32 %v8274_v52, %v8265_v45  ;;  %v3070_v6 = vmul.f32 %v9764_v40, %v9766_v25  ;;  %v9767_v41 = vld [vmem:[#allocation68_spill] sm:$0xff]  ;;  %v9768_v59 = vld [vmem:[#allocation33_spill] sm:$0xff]  ;;  %v8382_v18 = vld [vmem:[%s9067_s7 + $0x1] ss:$0 sm:$0xff] }
 0x2e2   : > { %5182 = vrcp.f32 %v3580_v11  ;;  %v3086_v23 = vmul.f32 %v9764_v40, %v9767_v41  ;;  %v8291_v10 = vpop.eup %5164  ;;  %v9769_v0 = vld [vmem:[#allocation84_spill] sm:$0xff]  ;;  %v9772_v25 = vld [vmem:[#allocation77_spill] sm:$0xff]  ;;  %v9773_v40 = vld [vmem:[#allocation14_spill] sm:$0xff] }
 0x2e3   : > { %5184 = vpow2.f32 %v8130_v38  ;;  %v3342_v19 = vmul.f32 %v9769_v0, %v9768_v59  ;;  %v3358_v11 = vmul.f32 %v9769_v0, %v9770_v4  ;;  %v8298_v33 = vpop.eup %5166  ;;  %v3581_v5 = vadd.f32 %v8283_v63, %v3565_v30 }
 0x2e4   : > { %9771 = vst [vmem:[#allocation37_spill] sm:$0xff] %v8298_v33  ;;  %5186 = vpow2.f32 %v8137_v2  ;;  %v3374_v41 = vmul.f32 %v9769_v0, %v9772_v25  ;;  %v3678_v53 = vmul.f32 %v3054_v46, %v9773_v40  ;;  %v8305_v38 = vpop.eup %5168  ;;  %v3795_v8 = vmul.f32 %v3070_v6, %v9773_v40  ;;  %v8316_v46 = vpop.f32.mrb[68].mxu0 }
 0x2e5   : > { %5188 = vpow2.f32 %v3447_v56  ;;  %v3694_v59 = vmul.f32 %v3342_v19, %v9774_v9  ;;  %v3811_v4 = vmul.f32 %v3358_v11, %v9774_v9  ;;  %v8310_v33 = vpop.eup %5170  ;;  %v3566_v2 = vadd.f32 %v8305_v38, %v8291_v10  ;;  %9775 = vst [vmem:[#allocation54_spill] sm:$0xff] %v8316_v46  ;;  %v8409_v57 = vpop.f32.mrb[69].mxu0 }
 0x2e6   : > { %5190 = vrcp.f32 %v3581_v5  ;;  %v3912_v30 = vmul.f32 %v3086_v23, %v9773_v40  ;;  %v3928_v0 = vmul.f32 %v3374_v41, %v9774_v9  ;;  %v8318_v25 = vpop.eup %5172  ;;  %v9776_v5 = vld [vmem:[#allocation85_spill] sm:$0xff]  ;;  %v9778_v9 = vld [vmem:[#allocation78_spill] sm:$0xff]  ;;  %9784 = vst [vmem:[#allocation65_spill] sm:$0xff] %v8409_v57 }
 0x2e7   : > { %5192 = vpow2.f32 %v3495_v51  ;;  %v8324_v19 = vadd.f32 %v3694_v59, %v3678_v53  ;;  %v8326_v56 = vadd.f32 %v3811_v4, %v3795_v8  ;;  %v8330_v6 = vadd.f32 %v8082_v39, %v9776_v5  ;;  %v5175_v23 = vpop.eup %5174  ;;  %v9777_v40 = vld [vmem:[#allocation61_spill] sm:$0xff] }
 0x2e8   : > { %v3582_v11 = vadd.f32 %v8310_v33, %v3566_v2  ;;  %5194 = vpow2.f32 %v3543_v50  ;;  %v8333_v41 = vadd.f32 %v3928_v0, %v3912_v30  ;;  %v8337_v46 = vmul.f32 %v9778_v9, %v9777_v40  ;;  %v8339_v51 = vpop.eup %5176  ;;  %v9779_v2 = vld [vmem:[#allocation62_spill] sm:$0xff]  ;;  %v9780_v0 = vld [vmem:[#allocation63_spill] sm:$0xff] }
 0x2e9   : > { %v3627_v53 = vmul.f32 %v5175_v23, %v8211_v1  ;;  %v3643_v8 = vmul.f32 %v5175_v23, %v8224_v15  ;;  %v3659_v59 = vmul.f32 %v5175_v23, %v8231_v43  ;;  %5196 = vpow2.f32 %v3449_v24  ;;  %v8344_v4 = vpop.eup %5178  ;;  %v8366_v40 = vld [vmem:[%s9067_s7] ss:$0 sm:$0xff] }
 0x2ea   : > { %5198 = vrcp.f32 %v3582_v11  ;;  %v3567_v50 = vadd.f32 %v8339_v51, %v8318_v25  ;;  %v8351_v30 = vmul.f32 %v9778_v9, %v9779_v2  ;;  %v8355_v5 = vmul.f32 %v9778_v9, %v9780_v0  ;;  %v8357_v1 = vpop.eup %5180  ;;  %v9781_v9 = vld [vmem:[#allocation69_spill] sm:$0xff]  ;;  %v9782_v2 = vld [vmem:[#allocation64_spill] sm:$0xff] }
 0x2eb   : > { %v3723_v15 = vmul.f32 %v3627_v53, %v8171_v22  ;;  %v3840_v43 = vmul.f32 %v3643_v8, %v8171_v22  ;;  %v3957_v24 = vmul.f32 %v3659_v59, %v8171_v22  ;;  %5200 = vpow2.f32 %v3497_v26  ;;  %v9783_v53 = vld [vmem:[#allocation70_spill] sm:$0xff] }
 0x2ec   : > { %v5183_v23 = vpop.eup %5182  ;;  %v3583_v11 = vadd.f32 %v8344_v4, %v3567_v50  ;;  %5202 = vpow2.f32 %v3545_v27  ;;  %v3341_v0 = vmul.f32 %v9782_v2, %v9781_v9  ;;  %v8372_v8 = vmul.f32 %v9782_v2, %v9783_v53  ;;  %v8387_v27 = vld [vmem:[%s9067_s7 + $0x2] ss:$0 sm:$0xff] }
 0x2ed   : > { %v8374_v22 = vpop.eup %5184  ;;  %v3628_v26 = vmul.f32 %v5183_v23, %v8237_v35  ;;  %v3644_v59 = vmul.f32 %v5183_v23, %v8255_v47  ;;  %v3660_v50 = vmul.f32 %v5183_v23, %v8260_v3  ;;  %v3739_v9 = vadd.f32 %v3723_v15, %v8220_v36 }
 0x2ee   : > { %v8390_v53 = vpop.eup %5186  ;;  %5204 = vrcp.f32 %v3583_v11  ;;  %v3568_v35 = vadd.f32 %v8374_v22, %v8357_v1  ;;  %v3856_v47 = vadd.f32 %v3840_v43, %v8222_v29  ;;  %v3973_v3 = vadd.f32 %v3957_v24, %v8227_v58  ;;  %v8407_v11 = vpop.xlane.xlu1 %2535  ;;  %v9785_v24 = vld [vmem:[#allocation73_spill] sm:$0xff] }
 0x2ef   : > { %v8401_v23 = vpop.eup %5188  ;;  %v3724_v60 = vmul.f32 %v3628_v26, %v8086_v20  ;;  %v3841_v61 = vmul.f32 %v3644_v59, %v8086_v20  ;;  %v3958_v36 = vmul.f32 %v3660_v50, %v8086_v20  ;;  %v3760_v15 = vmul.f32 %v8366_v40, %v3739_v9  ;;  %v8418_v59 = vpop.xlane.xlu0 %2772 }
 0x2f0   : > { %v5191_v31 = vpop.eup %5190  ;;  %v3584_v29 = vadd.f32 %v8390_v53, %v3568_v35  ;;  %v3877_v58 = vmul.f32 %v8382_v18, %v3856_v47  ;;  %v3994_v43 = vmul.f32 %v8387_v27, %v3973_v3  ;;  %v8416_v26 = vmul.f32 %v9782_v2, %v9785_v24 }
 0x2f1   : > { %v8420_v20 = vpop.eup %5192  ;;  %v3740_v50 = vadd.f32 %v3724_v60, %v8166_v17  ;;  %v3857_v9 = vadd.f32 %v3841_v61, %v8177_v13  ;;  %v3974_v57 = vadd.f32 %v3958_v36, %v8184_v49  ;;  %v3629_v35 = vmul.f32 %v5191_v31, %v8265_v45  ;;  %v8440_v13 = vld [vmem:[%s9068_s8] ss:$0 sm:$0xff] }
 0x2f2   : > { %v8426_v7 = vpop.eup %5194  ;;  %5206 = vrcp.f32 %v3584_v29  ;;  %v3893_v47 = vadd.f32 %v3877_v58, %v3760_v15  ;;  %v3569_v2 = vadd.f32 %v8420_v20, %v8401_v23  ;;  %v3645_v3 = vmul.f32 %v5191_v31, %v8274_v52  ;;  %v9786_v52 = vld [vmem:[#allocation39_spill] sm:$0xff]  ;;  %v9787_v58 = vld [vmem:[#allocation45_spill] sm:$0xff] }
 0x2f3   : > { %v8432_v24 = vpop.eup %5196  ;;  %v3761_v60 = vmul.f32 %v8366_v40, %v3740_v50  ;;  %v3878_v61 = vmul.f32 %v8382_v18, %v3857_v9  ;;  %v3995_v17 = vmul.f32 %v8387_v27, %v3974_v57  ;;  %v3661_v49 = vmul.f32 %v5191_v31, %v8283_v63  ;;  %v2299_v34 = vpop.xlane.xlu0 %2298 }
 0x2f4   : > { %v5199_v45 = vpop.eup %5198  ;;  %v4010_v36 = vadd.f32 %v3994_v43, %v3893_v47  ;;  %v3585_v15 = vadd.f32 %v8426_v7, %v3569_v2  ;;  %v3677_v29 = vmul.f32 %v8337_v46, %v9786_v52  ;;  %v3693_v50 = vmul.f32 %v3341_v0, %v9787_v58  ;;  %v2776_v43 = vpop.xlane.xlu1 %2775 }
 0x2f5   : > { %v8447_v37 = vpop.eup %5200  ;;  %v3894_v57 = vadd.f32 %v3878_v61, %v3761_v60  ;;  %v3630_v9 = vmul.f32 %v5199_v45, %v8291_v10  ;;  %v3646_v31 = vmul.f32 %v5199_v45, %v8305_v38  ;;  %v3662_v63 = vmul.f32 %v5199_v45, %v8310_v33  ;;  %v8465_v33 = vpop.f32.mrb[70].mxu0 }
 0x2f6   : > { %v8457_v47 = vpop.eup %5202  ;;  %v4033_v46 = vadd.f32 %v8440_v13, %v4010_v36  ;;  %5208 = vrcp.f32 %v3585_v15  ;;  %v3570_v0 = vadd.f32 %v8447_v37, %v8432_v24  ;;  %v3709_v2 = vadd.f32 %v3693_v50, %v3677_v29 }
 0x2f7   : > { %v4011_v62 = vadd.f32 %v3995_v17, %v3894_v57  ;;  %v3726_v60 = vmul.f32 %v3630_v9, %v8253_v28  ;;  %v3843_v10 = vmul.f32 %v3646_v31, %v8253_v28  ;;  %v3960_v38 = vmul.f32 %v3662_v63, %v8253_v28 }
 0x2f8   : > { %v8467_v61 = vpop.eup %5204  ;;  %4049 = vst.msk [vmem:[%s8452_s22] sm:$0xff] %vm595_vm0, %v4033_v46  ;;  %v3586_v45 = vadd.f32 %v8457_v47, %v3570_v0  ;;  %v3725_v36 = vmul.f32 %v3629_v35, %v8330_v6  ;;  %v3794_v17 = vmul.f32 %v8351_v30, %v9786_v52  ;;  %v3810_v15 = vmul.f32 %v8372_v8, %v9787_v58 }
 0x2f9   : > { %v4034_v29 = vadd.f32 %v8440_v13, %v4011_v62  ;;  %v3742_v28 = vadd.f32 %v3726_v60, %v8324_v19  ;;  %v3859_v50 = vadd.f32 %v3843_v10, %v8326_v56  ;;  %v3976_v57 = vadd.f32 %v3960_v38, %v8333_v41  ;;  %v2302_v19 = vpop.xlane.xlu1 %2301 }
 0x2fa   : > { %5210 = vrcp.f32 %v3586_v45  ;;  %v3741_v9 = vadd.f32 %v3725_v36, %v3709_v2  ;;  %v3826_v31 = vadd.f32 %v3810_v15, %v3794_v17  ;;  %v3842_v63 = vmul.f32 %v3645_v3, %v8330_v6  ;;  %v2539_v2 = vpop.xlane.xlu0 %2538  ;;  %v8500_v15 = vpop.f32.mrb[71].mxu0 }
 0x2fb   : > { %4050 = vst.msk [vmem:[%s8452_s22 + $0x8] sm:$0xff] %vm595_vm0, %v4034_v29  ;;  %v3763_v30 = vmul.f32 %v8366_v40, %v3742_v28  ;;  %v3880_v35 = vmul.f32 %v8382_v18, %v3859_v50  ;;  %v3997_v8 = vmul.f32 %v8387_v27, %v3976_v57  ;;  %v3911_v62 = vmul.f32 %v8355_v5, %v9786_v52  ;;  %v9789_v28 = vld [vmem:[#allocation57_spill] sm:$0xff]  ;;  %v9790_v50 = vld [vmem:[#allocation92_spill] sm:$0xff] }
 0x2fc   : > { %v5207_v56 = vpop.eup %5206  ;;  %v3762_v41 = vmul.f32 %v8366_v40, %v3741_v9  ;;  %v3858_v46 = vadd.f32 %v3842_v63, %v3826_v31  ;;  %v3927_v0 = vmul.f32 %v8416_v26, %v9787_v58  ;;  %v3959_v3 = vmul.f32 %v3661_v49, %v8330_v6 }
 0x2fd   : > { %v3896_v60 = vadd.f32 %v3880_v35, %v3763_v30  ;;  %v2564_v10 = vmul.f32 0.17677669, %v8407_v11  ;;  %v2803_v38 = vmul.f32 0.17677669, %v8418_v59  ;;  %v2804_v45 = vmul.f32 0.17677669, %v2776_v43 }
 0x2fe   : > { %v3879_v36 = vmul.f32 %v8382_v18, %v3858_v46  ;;  %v3943_v5 = vadd.f32 %v3927_v0, %v3911_v62  ;;  %v8496_v52 = vmul.f32 0.17677669, %v2299_v34  ;;  %v8498_v17 = vmul.f32 0.17677669, %v2302_v19  ;;  %v9791_v19 = vld [vmem:[#allocation59_spill] sm:$0xff] }
 0x2ff   : > { %v4013_v29 = vadd.f32 %v3997_v8, %v3896_v60  ;;  %v3396_v26 = vmax.f32 %v8243_v44, %v2564_v10  ;;  %v9788_v6 = vmax.f32 %v8235_v16, %v8245_v55  ;;  %v8506_v49 = vmul.f32 0.17677669, %v2539_v2 }
 0x300   : > { %v8508_v59 = vpop.eup %5208  ;;  %v3895_v58 = vadd.f32 %v3879_v36, %v3762_v41  ;;  %v3975_v43 = vadd.f32 %v3959_v3, %v3943_v5  ;;  %v2038_v34 = vadd.f32 %v8082_v39, %v7723_v48  ;;  %v3056_v57 = vmul.f32 %v9790_v50, %v9789_v28  ;;  %v9792_v3 = vld [vmem:[#allocation60_spill] sm:$0xff]  ;;  %v9793_v5 = vld [vmem:[#allocation79_spill] sm:$0xff] }
 0x301   : > { %v3411_v11 = vmax.f32 %v9788_v6, %v2803_v38  ;;  %v4036_v9 = vadd.f32 %v8440_v13, %v4013_v29  ;;  %v3412_v8 = vmax.f32 %v3396_v26, %v2804_v45  ;;  %v3397_v62 = vmax.f32 %v8496_v52, %v8506_v49  ;;  %v9794_v29 = vld [vmem:[#allocation96_spill] sm:$0xff]  ;;  %v9795_v6 = vld [vmem:[#allocation86_spill] sm:$0xff] }
 0x302   : > { %v3996_v35 = vmul.f32 %v8387_v27, %v3975_v43  ;;  %v3072_v41 = vmul.f32 %v9790_v50, %v9791_v19  ;;  %v3344_v26 = vmul.f32 %v9794_v29, %v9793_v5  ;;  %v9796_v43 = vld [vmem:[#allocation87_spill] sm:$0xff]  ;;  %v2542_v19 = vpop.xlane.xlu1 %2541  ;;  %v9800_v5 = vld [vmem:[#allocation56_spill] sm:$0xff] }
 0x303   : > { %v3427_v31 = vsub.f32 %v8235_v16, %v3411_v11  ;;  %v3475_v63 = vsub.f32 %v8245_v55, %v3411_v11  ;;  %v3523_v30 = vsub.f32 %v2803_v38, %v3411_v11  ;;  %4052 = vst.msk [vmem:[%s8452_s22 + $0x18] sm:$0xff] %vm595_vm0, %v4036_v9  ;;  %v3088_v16 = vmul.f32 %v9790_v50, %v9792_v3  ;;  %v2779_v3 = vpop.xlane.xlu0 %2778 }
 0x304   : > { %v8526_v2 = vpop.eup %5210  ;;  %v4012_v55 = vadd.f32 %v3996_v35, %v3895_v58  ;;  %v3428_v60 = vsub.f32 %v8243_v44, %v3412_v8  ;;  %v3476_v38 = vsub.f32 %v2564_v10, %v3412_v8  ;;  %v3524_v36 = vsub.f32 %v2804_v45, %v3412_v8  ;;  %v9798_v35 = vld [vmem:[#allocation3_spill] sm:$0xff] }
 0x305   : > { %v3451_v48 = vmul.f32 1.442695, %v3427_v31  ;;  %v3499_v46 = vmul.f32 1.442695, %v3475_v63  ;;  %v3547_v0 = vmul.f32 1.442695, %v3523_v30  ;;  %v3360_v11 = vmul.f32 %v9794_v29, %v9795_v6 }
 0x306   : > { %v3376_v28 = vmul.f32 %v9794_v29, %v9796_v43  ;;  %v4035_v50 = vadd.f32 %v8440_v13, %v4012_v55  ;;  %v3453_v9 = vmul.f32 1.442695, %v3428_v60  ;;  %v3501_v58 = vmul.f32 1.442695, %v3476_v38  ;;  %v9797_v63 = vld [vmem:[#allocation47_spill] sm:$0xff]  ;;  %v9801_v29 = vld [vmem:[#allocation82_spill] sm:$0xff] }
 0x307   : > { %5212 = vpow2.f32 %v3451_v48  ;;  %v3549_v31 = vmul.f32 1.442695, %v3524_v36  ;;  %v3632_v44 = vmul.f32 %v5207_v56, %v8357_v1  ;;  %v3648_v10 = vmul.f32 %v5207_v56, %v8374_v22 }
 0x308   : > { %5214 = vpow2.f32 %v3499_v46  ;;  %4051 = vst.msk [vmem:[%s8452_s22 + $0x10] sm:$0xff] %vm595_vm0, %v4035_v50  ;;  %v3664_v45 = vmul.f32 %v5207_v56, %v8390_v53  ;;  %v3680_v30 = vmul.f32 %v3056_v57, %v9797_v63  ;;  %v3696_v8 = vmul.f32 %v3344_v26, %v9798_v35  ;;  %v9799_v57 = vld [vmem:[#allocation100_spill] sm:$0xff] }
 0x309   : > { %5216 = vpow2.f32 %v3547_v0  ;;  %v3728_v48 = vmul.f32 %v3632_v44, %v2038_v34  ;;  %v3797_v46 = vmul.f32 %v3072_v41, %v9797_v63  ;;  %v3813_v0 = vmul.f32 %v3360_v11, %v9798_v35  ;;  %v9802_v41 = vld [vmem:[#allocation34_spill] sm:$0xff]  ;;  %v9803_v11 = vld [vmem:[#allocation51_spill] sm:$0xff] }
 0x30a   : > { %5218 = vpow2.f32 %v3453_v9  ;;  %v3712_v1 = vadd.f32 %v3696_v8, %v3680_v30  ;;  %v3845_v22 = vmul.f32 %v3648_v10, %v2038_v34  ;;  %v3914_v55 = vmul.f32 %v3088_v16, %v9797_v63  ;;  %v9804_v16 = vld [vmem:[#allocation71_spill] sm:$0xff]  ;;  %v9807_v10 = vld [vmem:[#allocation81_spill] sm:$0xff] }
 0x30b   : > { %5220 = vpow2.f32 %v3501_v58  ;;  %v3829_v60 = vadd.f32 %v3813_v0, %v3797_v46  ;;  %v3930_v53 = vmul.f32 %v3376_v28, %v9798_v35  ;;  %v3962_v56 = vmul.f32 %v3664_v45, %v2038_v34  ;;  %v9805_v58 = vld [vmem:[#allocation4_spill] sm:$0xff]  ;;  %v2782_v35 = vpop.xlane.xlu1 %2781 }
 0x30c   : > { %5222 = vpow2.f32 %v3549_v31  ;;  %v2033_v38 = vadd.f32 %v8082_v39, %v9799_v57  ;;  %v3744_v36 = vadd.f32 %v3728_v48, %v3712_v1  ;;  %v3055_v26 = vmul.f32 %v9801_v29, %v9800_v5  ;;  %v9806_v28 = vld [vmem:[#allocation76_spill] sm:$0xff] }
 0x30d   : > { %v3071_v6 = vmul.f32 %v9801_v29, %v9802_v41  ;;  %v3087_v43 = vmul.f32 %v9801_v29, %v9803_v11  ;;  %v3861_v50 = vadd.f32 %v3845_v22, %v3829_v60  ;;  %v3946_v9 = vadd.f32 %v3930_v53, %v3914_v55  ;;  %v9808_v1 = vld [vmem:[#allocation40_spill] sm:$0xff]  ;;  %v2305_v55 = vpop.xlane.xlu0 %2304  ;;  %v9809_v53 = vld [vmem:[#allocation53_spill] sm:$0xff] }
 0x30e   : > { %v3343_v31 = vmul.f32 %v9805_v58, %v9804_v16  ;;  %v3359_v34 = vmul.f32 %v9805_v58, %v9806_v28  ;;  %v3765_v44 = vmul.f32 %v8366_v40, %v3744_v36  ;;  %v3375_v45 = vmul.f32 %v9805_v58, %v9807_v10 }
 0x30f   : > { %v3631_v63 = vmul.f32 %v8467_v61, %v8318_v25  ;;  %v3647_v30 = vmul.f32 %v8467_v61, %v8339_v51  ;;  %v3882_v48 = vmul.f32 %v8382_v18, %v3861_v50  ;;  %v3978_v46 = vadd.f32 %v3962_v56, %v3946_v9 }
 0x310   : > { %v3663_v0 = vmul.f32 %v8467_v61, %v8344_v4  ;;  %v3679_v22 = vmul.f32 %v3055_v26, %v9808_v1  ;;  %v3695_v57 = vmul.f32 %v3343_v31, %v9809_v53  ;;  %v3796_v36 = vmul.f32 %v3071_v6, %v9808_v1 }
 0x311   : > { %v8566_v8 = vpop.eup %5212  ;;  %v3727_v25 = vmul.f32 %v3631_v63, %v2033_v38  ;;  %v3812_v51 = vmul.f32 %v3359_v34, %v9809_v53  ;;  %v3898_v29 = vadd.f32 %v3882_v48, %v3765_v44  ;;  %v3999_v4 = vmul.f32 %v8387_v27, %v3978_v46  ;;  %v2308_v48 = vpop.xlane.xlu1 %2307 }
 0x312   : > { %v8572_v60 = vpop.eup %5214  ;;  %v3844_v61 = vmul.f32 %v3647_v30, %v2033_v38  ;;  %v3711_v41 = vadd.f32 %v3695_v57, %v3679_v22  ;;  %v3913_v50 = vmul.f32 %v3087_v43, %v9808_v1  ;;  %v3929_v9 = vmul.f32 %v3375_v45, %v9809_v53  ;;  %v2545_v1 = vpop.xlane.xlu0 %2544 }
 0x313   : > { %v8577_v5 = vpop.eup %5216  ;;  %v3571_v56 = vadd.f32 %v8572_v60, %v8566_v8  ;;  %v3828_v11 = vadd.f32 %v3812_v51, %v3796_v36  ;;  %v4015_v58 = vadd.f32 %v3999_v4, %v3898_v29  ;;  %v3961_v31 = vmul.f32 %v3663_v0, %v2033_v38 }
 0x314   : > { %v8582_v26 = vpop.eup %5218  ;;  %v2566_v28 = vmul.f32 0.17677669, %v2542_v19  ;;  %v3743_v10 = vadd.f32 %v3727_v25, %v3711_v41  ;;  %v3945_v30 = vadd.f32 %v3929_v9, %v3913_v50  ;;  %v2805_v46 = vmul.f32 0.17677669, %v2779_v3  ;;  %v9811_v50 = vld [vmem:[#allocation103_spill] sm:$0xff] }
 0x315   : > { %v8586_v6 = vpop.eup %5220  ;;  %v3587_v16 = vadd.f32 %v8577_v5, %v3571_v56  ;;  %v3860_v63 = vadd.f32 %v3844_v61, %v3828_v11  ;;  %v4038_v43 = vadd.f32 %v8440_v13, %v4015_v58  ;;  %v2806_v57 = vmul.f32 0.17677669, %v2782_v35 }
 0x316   : > { %v8589_v34 = vpop.eup %5222  ;;  %v3572_v44 = vadd.f32 %v8586_v6, %v8582_v26  ;;  %v3398_v45 = vmax.f32 %v8498_v17, %v2566_v28  ;;  %v3764_v19 = vmul.f32 %v8366_v40, %v3743_v10  ;;  %v3977_v22 = vadd.f32 %v3961_v31, %v3945_v30 }
 0x317   : > { %5224 = vrcp.f32 %v3587_v16  ;;  %v3881_v0 = vmul.f32 %v8382_v18, %v3860_v63  ;;  %4054 = vst.msk [vmem:[%s8452_s22 + $0x28] sm:$0xff] %vm595_vm0, %v4038_v43  ;;  %v3413_v53 = vmax.f32 %v3397_v62, %v2805_v46  ;;  %v8603_v25 = vmul.f32 0.17677669, %v2305_v55  ;;  %v9810_v55 = vld [vmem:[#allocation91_spill] sm:$0xff]  ;;  %v9812_v63 = vld [vmem:[#allocation93_spill] sm:$0xff]  ;;  %v9813_v43 = vld [vmem:[#allocation6_spill] sm:$0xff] }
 0x318   : > { %v3588_v38 = vadd.f32 %v8589_v34, %v3572_v44  ;;  %v8605_v36 = vmul.f32 0.17677669, %v2308_v48  ;;  %v3998_v51 = vmul.f32 %v8387_v27, %v3977_v22  ;;  %v8608_v56 = vmul.f32 0.17677669, %v2545_v1 }
 0x319   : > { %v3897_v3 = vadd.f32 %v3881_v0, %v3764_v19  ;;  %v3429_v29 = vsub.f32 %v8496_v52, %v3413_v53  ;;  %v3477_v4 = vsub.f32 %v8506_v49, %v3413_v53  ;;  %v3525_v61 = vsub.f32 %v2805_v46, %v3413_v53  ;;  %v9816_v0 = vld [vmem:[#allocation8_spill] sm:$0xff] }
 0x31a   : > { %5226 = vrcp.f32 %v3588_v38  ;;  %v3414_v41 = vmax.f32 %v3398_v45, %v2806_v57  ;;  %v3399_v62 = vmax.f32 %v8603_v25, %v8608_v56  ;;  %v2048_v35 = vadd.f32 %v8082_v39, %v7921_v42  ;;  %v9814_v45 = vld [vmem:[#allocation95_spill] sm:$0xff] }
 0x31b   : > { %v4014_v11 = vadd.f32 %v3998_v51, %v3897_v3  ;;  %v3058_v9 = vmul.f32 %v9811_v50, %v9810_v55  ;;  %v3455_v16 = vmul.f32 1.442695, %v3429_v29  ;;  %v3503_v58 = vmul.f32 1.442695, %v3477_v4  ;;  %v9815_v38 = vld [vmem:[#allocation35_spill] sm:$0xff]  ;;  %v9817_v51 = vld [vmem:[#allocation17_spill] sm:$0xff] }
 0x31c   : > { %v3551_v31 = vmul.f32 1.442695, %v3525_v61  ;;  %v3430_v52 = vsub.f32 %v8498_v17, %v3414_v41  ;;  %v3478_v44 = vsub.f32 %v2566_v28, %v3414_v41  ;;  %v3526_v10 = vsub.f32 %v2806_v57, %v3414_v41  ;;  %v9818_v4 = vld [vmem:[#allocation5_spill] sm:$0xff]  ;;  %v2548_v41 = vpop.xlane.xlu1 %2547 }
 0x31d   : > { %v4037_v49 = vadd.f32 %v8440_v13, %v4014_v11  ;;  %v3074_v30 = vmul.f32 %v9811_v50, %v9812_v63  ;;  %5228 = vpow2.f32 %v3455_v16  ;;  %v3090_v42 = vmul.f32 %v9811_v50, %v9813_v43  ;;  %v2785_v50 = vpop.xlane.xlu0 %2784  ;;  %v9821_v63 = vld [vmem:[#allocation89_spill] sm:$0xff] }
 0x31e   : > { %v3457_v48 = vmul.f32 1.442695, %v3430_v52  ;;  %v3346_v46 = vmul.f32 %v7812_v32, %v9814_v45  ;;  %5230 = vpow2.f32 %v3503_v58  ;;  %v3505_v1 = vmul.f32 1.442695, %v3478_v44  ;;  %v9820_v44 = vld [vmem:[#allocation98_spill] sm:$0xff] }
 0x31f   : > { %4053 = vst.msk [vmem:[%s8452_s22 + $0x20] sm:$0xff] %vm595_vm0, %v4037_v49  ;;  %v3553_v17 = vmul.f32 1.442695, %v3526_v10  ;;  %v3362_v28 = vmul.f32 %v7812_v32, %v9815_v38  ;;  %5232 = vpow2.f32 %v3551_v31  ;;  %v3378_v22 = vmul.f32 %v7812_v32, %v9816_v0  ;;  %v9819_v49 = vld [vmem:[#allocation88_spill] sm:$0xff]  ;;  %v9825_v38 = vld [vmem:[#allocation10_spill] sm:$0xff] }
 0x320   : > { %v3634_v53 = vmul.f32 %v8526_v2, %v8432_v24  ;;  %v3650_v57 = vmul.f32 %v8526_v2, %v8447_v37  ;;  %5234 = vpow2.f32 %v3457_v48  ;;  %v3666_v3 = vmul.f32 %v8526_v2, %v8457_v47  ;;  %v9822_v48 = vld [vmem:[#allocation90_spill] sm:$0xff] }
 0x321   : > { %v8630_v19 = vpop.eup %5224  ;;  %v3682_v29 = vmul.f32 %v3058_v9, %v9817_v51  ;;  %v3698_v61 = vmul.f32 %v3346_v46, %v9818_v4  ;;  %5236 = vpow2.f32 %v3505_v1  ;;  %v3799_v55 = vmul.f32 %v3074_v30, %v9817_v51  ;;  %v9824_v1 = vld [vmem:[#allocation83_spill] sm:$0xff] }
 0x322   : > { %v3730_v11 = vmul.f32 %v3634_v53, %v2048_v35  ;;  %v3815_v32 = vmul.f32 %v3362_v28, %v9818_v4  ;;  %5238 = vpow2.f32 %v3553_v17  ;;  %v3847_v16 = vmul.f32 %v3650_v57, %v2048_v35  ;;  %v2788_v53 = vpop.xlane.xlu1 %2787 }
 0x323   : > { %v3714_v37 = vadd.f32 %v3698_v61, %v3682_v29  ;;  %v3916_v58 = vmul.f32 %v3090_v42, %v9817_v51  ;;  %v3932_v2 = vmul.f32 %v3378_v22, %v9818_v4  ;;  %v3964_v9 = vmul.f32 %v3666_v3, %v2048_v35  ;;  %v9823_v42 = vld [vmem:[#allocation80_spill] sm:$0xff]  ;;  %v9827_v4 = vld [vmem:[#allocation49_spill] sm:$0xff] }
 0x324   : > { %v8644_v24 = vpop.eup %5226  ;;  %v3831_v47 = vadd.f32 %v3815_v32, %v3799_v55  ;;  %v2043_v31 = vadd.f32 %v8082_v39, %v7938_v21  ;;  %v3057_v10 = vmul.f32 %v9820_v44, %v9819_v49  ;;  %v3073_v30 = vmul.f32 %v9820_v44, %v9821_v63  ;;  %v9826_v39 = vld [vmem:[#allocation94_spill] sm:$0xff] }
 0x325   : > { %v3746_v52 = vadd.f32 %v3730_v11, %v3714_v37  ;;  %v3089_v43 = vmul.f32 %v9820_v44, %v9822_v48  ;;  %v3948_v46 = vadd.f32 %v3932_v2, %v3916_v58  ;;  %v3345_v17 = vmul.f32 %v9824_v1, %v9823_v42  ;;  %v2311_v11 = vpop.xlane.xlu0 %2310  ;;  %v9828_v32 = vld [vmem:[#allocation46_spill] sm:$0xff] }
 0x326   : > { %v3863_v45 = vadd.f32 %v3847_v16, %v3831_v47  ;;  %v3361_v35 = vmul.f32 %v9824_v1, %v9825_v38  ;;  %v3377_v28 = vmul.f32 %v9824_v1, %v9826_v39  ;;  %v3633_v0 = vmul.f32 %v8508_v59, %v8401_v23 }
 0x327   : > { %v3767_v21 = vmul.f32 %v8366_v40, %v3746_v52  ;;  %v3649_v22 = vmul.f32 %v8508_v59, %v8420_v20  ;;  %v8667_v57 = vpop.eup %5228  ;;  %v3980_v51 = vadd.f32 %v3964_v9, %v3948_v46  ;;  %v3665_v29 = vmul.f32 %v8508_v59, %v8426_v7 }
 0x328   : > { %v3884_v3 = vmul.f32 %v8382_v18, %v3863_v45  ;;  %v3681_v61 = vmul.f32 %v3057_v10, %v9827_v4  ;;  %v8673_v55 = vpop.eup %5230  ;;  %v3697_v37 = vmul.f32 %v3345_v17, %v9828_v32  ;;  %v3729_v23 = vmul.f32 %v3633_v0, %v2043_v31 }
 0x329   : > { %v3798_v16 = vmul.f32 %v3073_v30, %v9827_v4  ;;  %v3814_v20 = vmul.f32 %v3361_v35, %v9828_v32  ;;  %v8678_v58 = vpop.eup %5232  ;;  %v3573_v47 = vadd.f32 %v8673_v55, %v8667_v57  ;;  %v4001_v7 = vmul.f32 %v8387_v27, %v3980_v51  ;;  %v2551_v0 = vpop.xlane.xlu0 %2550 }
 0x32a   : > { %v3900_v2 = vadd.f32 %v3884_v3, %v3767_v21  ;;  %v3846_v59 = vmul.f32 %v3649_v22, %v2043_v31  ;;  %v8683_v9 = vpop.eup %5234  ;;  %v3713_v52 = vadd.f32 %v3697_v37, %v3681_v61  ;;  %v3915_v44 = vmul.f32 %v3089_v43, %v9827_v4  ;;  %v2314_v21 = vpop.xlane.xlu1 %2313 }
 0x32b   : > { %v3830_v49 = vadd.f32 %v3814_v20, %v3798_v16  ;;  %v3931_v10 = vmul.f32 %v3377_v28, %v9828_v32  ;;  %v8687_v63 = vpop.eup %5236  ;;  %v3589_v30 = vadd.f32 %v8678_v58, %v3573_v47  ;;  %v3963_v45 = vmul.f32 %v3665_v29, %v2043_v31 }
 0x32c   : > { %v4017_v48 = vadd.f32 %v4001_v7, %v3900_v2  ;;  %v2568_v46 = vmul.f32 0.17677669, %v2548_v41  ;;  %v8690_v42 = vpop.eup %5238  ;;  %v3574_v1 = vadd.f32 %v8687_v63, %v8683_v9  ;;  %v3745_v17 = vadd.f32 %v3729_v23, %v3713_v52  ;;  %v9829_v7 = vld [vmem:[#allocation102_spill] sm:$0xff] }
 0x32d   : > { %v3862_v38 = vadd.f32 %v3846_v59, %v3830_v49  ;;  %v3947_v35 = vadd.f32 %v3931_v10, %v3915_v44  ;;  %5240 = vrcp.f32 %v3589_v30  ;;  %v2807_v28 = vmul.f32 0.17677669, %v2785_v50 }
 0x32e   : > { %v4040_v43 = vadd.f32 %v8440_v13, %v4017_v48  ;;  %v3400_v39 = vmax.f32 %v8605_v36, %v2568_v46  ;;  %v3590_v31 = vadd.f32 %v8690_v42, %v3574_v1  ;;  %v3766_v41 = vmul.f32 %v8366_v40, %v3745_v17  ;;  %v9830_v48 = vld [vmem:[#allocation36_spill] sm:$0xff]  ;;  %v9831_v17 = vld [vmem:[#allocation38_spill] sm:$0xff] }
 0x32f   : > { %v3883_v22 = vmul.f32 %v8382_v18, %v3862_v38  ;;  %v3979_v3 = vadd.f32 %v3963_v45, %v3947_v35  ;;  %v3415_v51 = vmax.f32 %v3399_v62, %v2807_v28  ;;  %v2808_v29 = vmul.f32 0.17677669, %v2788_v53  ;;  %v8718_v53 = vld [vmem:[%s9066_s6] ss:$0 sm:$0xff]  ;;  %v9832_v38 = vld [vmem:[#allocation106_spill] sm:$0xff] }
 0x330   : > { %4056 = vst.msk [vmem:[%s8452_s22 + $0x38] sm:$0xff] %vm595_vm0, %v4040_v43  ;;  %v8704_v4 = vmul.f32 0.17677669, %v2311_v11  ;;  %v8706_v61 = vmul.f32 0.17677669, %v2314_v21  ;;  %5242 = vrcp.f32 %v3590_v31  ;;  %v2058_v11 = vadd.f32 %v8718_v53, %v8099_v14  ;;  %v9833_v43 = vld [vmem:[#allocation107_spill] sm:$0xff] }
 0x331   : > { %v3899_v50 = vadd.f32 %v3883_v22, %v3766_v41  ;;  %v4000_v32 = vmul.f32 %v8387_v27, %v3979_v3  ;;  %v8709_v37 = vmul.f32 0.17677669, %v2551_v0  ;;  %v3431_v23 = vsub.f32 %v8603_v25, %v3415_v51  ;;  %v9835_v22 = vld [vmem:[#allocation18_spill] sm:$0xff] }
 0x332   : > { %v3479_v16 = vsub.f32 %v8608_v56, %v3415_v51  ;;  %v3527_v20 = vsub.f32 %v2807_v28, %v3415_v51  ;;  %v3416_v47 = vmax.f32 %v3400_v39, %v2808_v29  ;;  %v3060_v25 = vmul.f32 %v7885_v54, %v9829_v7  ;;  %v9834_v28 = vld [vmem:[#allocation108_spill] sm:$0xff]  ;;  %v9836_v51 = vld [vmem:[#allocation29_spill] sm:$0xff] }
 0x333   : > { %v4016_v2 = vadd.f32 %v4000_v32, %v3899_v50  ;;  %v3401_v62 = vmax.f32 %v8704_v4, %v8709_v37  ;;  %v3459_v59 = vmul.f32 1.442695, %v3431_v23  ;;  %v3076_v45 = vmul.f32 %v7885_v54, %v9830_v48 }
 0x334   : > { %v3507_v56 = vmul.f32 1.442695, %v3479_v16  ;;  %v3555_v52 = vmul.f32 1.442695, %v3527_v20  ;;  %v3432_v49 = vsub.f32 %v8605_v36, %v3416_v47  ;;  %v3480_v10 = vsub.f32 %v2568_v46, %v3416_v47 }
 0x335   : > { %v4039_v44 = vadd.f32 %v8440_v13, %v4016_v2  ;;  %v3528_v30 = vsub.f32 %v2808_v29, %v3416_v47  ;;  %5244 = vpow2.f32 %v3459_v59  ;;  %v3092_v14 = vmul.f32 %v7885_v54, %v9831_v17  ;;  %v9837_v47 = vld [vmem:[#allocation142_spill] sm:$0xff]  ;;  %v9839_v59 = vld [vmem:[#allocation109_spill] sm:$0xff] }
 0x336   : > { %v3461_v1 = vmul.f32 1.442695, %v3432_v49  ;;  %v3348_v35 = vmul.f32 %v7950_v12, %v9832_v38  ;;  %5246 = vpow2.f32 %v3507_v56  ;;  %v3509_v21 = vmul.f32 1.442695, %v3480_v10 }
 0x337   : > { %4055 = vst.msk [vmem:[%s8452_s22 + $0x30] sm:$0xff] %vm595_vm0, %v4039_v44  ;;  %v3557_v36 = vmul.f32 1.442695, %v3528_v30  ;;  %v3364_v46 = vmul.f32 %v7950_v12, %v9833_v43  ;;  %v8736_v39 = vpop.eup %5240  ;;  %5248 = vpow2.f32 %v3555_v52  ;;  %v3380_v0 = vmul.f32 %v7950_v12, %v9834_v28  ;;  %v9840_v52 = vld [vmem:[#allocation99_spill] sm:$0xff]  ;;  %v9841_v44 = vld [vmem:[#allocation101_spill] sm:$0xff] }
 0x338   : > { %v3636_v54 = vmul.f32 %v8644_v24, %v8582_v26  ;;  %v3652_v31 = vmul.f32 %v8644_v24, %v8586_v6  ;;  %5250 = vpow2.f32 %v3461_v1  ;;  %v3668_v41 = vmul.f32 %v8644_v24, %v8589_v34  ;;  %v9843_v1 = vld [vmem:[#allocation116_spill] sm:$0xff] }
 0x339   : > { %v3684_v3 = vmul.f32 %v3060_v25, %v9835_v22  ;;  %v3700_v29 = vmul.f32 %v3348_v35, %v9836_v51  ;;  %5252 = vpow2.f32 %v3509_v21  ;;  %v3801_v32 = vmul.f32 %v3076_v45, %v9835_v22  ;;  %v9838_v25 = vld [vmem:[#allocation97_spill] sm:$0xff]  ;;  %v9842_v45 = vld [vmem:[#allocation48_spill] sm:$0xff] }
 0x33a   : > { %v3732_v50 = vmul.f32 %v3636_v54, %v2058_v11  ;;  %v3817_v12 = vmul.f32 %v3364_v46, %v9836_v51  ;;  %v8750_v23 = vpop.eup %5242  ;;  %5254 = vpow2.f32 %v3557_v36  ;;  %v3849_v16 = vmul.f32 %v3652_v31, %v2058_v11  ;;  %v9845_v35 = vld [vmem:[#allocation105_spill] sm:$0xff]  ;;  %v2554_v46 = vpop.xlane.xlu1 %2553 }
 0x33b   : > { %v3716_v26 = vadd.f32 %v3700_v29, %v3684_v3  ;;  %v3918_v6 = vmul.f32 %v3092_v14, %v9835_v22  ;;  %v3934_v34 = vmul.f32 %v3380_v0, %v9836_v51  ;;  %v3966_v24 = vmul.f32 %v3668_v41, %v2058_v11  ;;  %v9844_v14 = vld [vmem:[#allocation104_spill] sm:$0xff]  ;;  %v9846_v41 = vld [vmem:[#allocation21_spill] sm:$0xff] }
 0x33c   : > { %v3833_v20 = vadd.f32 %v3817_v12, %v3801_v32  ;;  %v2053_v2 = vadd.f32 %v8718_v53, %v9837_v47  ;;  %v3059_v56 = vmul.f32 %v9839_v59, %v9838_v25  ;;  %v3075_v49 = vmul.f32 %v9839_v59, %v9840_v52  ;;  %v9847_v51 = vld [vmem:[#allocation9_spill] sm:$0xff]  ;;  %v2791_v47 = vpop.xlane.xlu0 %2790 }
 0x33d   : > { %v3748_v7 = vadd.f32 %v3732_v50, %v3716_v26  ;;  %v3091_v10 = vmul.f32 %v9839_v59, %v9841_v44  ;;  %v3950_v48 = vadd.f32 %v3934_v34, %v3918_v6  ;;  %v3347_v17 = vmul.f32 %v9843_v1, %v9842_v45 }
 0x33e   : > { %v3865_v30 = vadd.f32 %v3849_v16, %v3833_v20  ;;  %v3363_v11 = vmul.f32 %v9843_v1, %v9844_v14  ;;  %v3379_v21 = vmul.f32 %v9843_v1, %v9845_v35  ;;  %v3635_v36 = vmul.f32 %v8630_v19, %v8566_v8 }
 0x33f   : > { %v3769_v38 = vmul.f32 %v8366_v40, %v3748_v7  ;;  %v3651_v43 = vmul.f32 %v8630_v19, %v8572_v60  ;;  %v8773_v28 = vpop.eup %5244  ;;  %v3982_v54 = vadd.f32 %v3966_v24, %v3950_v48  ;;  %v3667_v31 = vmul.f32 %v8630_v19, %v8577_v5 }
 0x340   : > { %v3886_v0 = vmul.f32 %v8382_v18, %v3865_v30  ;;  %v3683_v22 = vmul.f32 %v3059_v56, %v9846_v41  ;;  %v8779_v3 = vpop.eup %5246  ;;  %v3699_v29 = vmul.f32 %v3347_v17, %v9847_v51  ;;  %v3731_v50 = vmul.f32 %v3635_v36, %v2053_v2 }
 0x341   : > { %v3800_v8 = vmul.f32 %v3075_v49, %v9846_v41  ;;  %v3816_v60 = vmul.f32 %v3363_v11, %v9847_v51  ;;  %v8784_v32 = vpop.eup %5248  ;;  %v3575_v12 = vadd.f32 %v8779_v3, %v8773_v28  ;;  %v4003_v16 = vmul.f32 %v8387_v27, %v3982_v54  ;;  %v9850_v54 = vld [vmem:[#allocation127_spill] sm:$0xff] }
 0x342   : > { %v3902_v26 = vadd.f32 %v3886_v0, %v3769_v38  ;;  %v3848_v5 = vmul.f32 %v3651_v43, %v2053_v2  ;;  %v8789_v19 = vpop.eup %5250  ;;  %v3715_v6 = vadd.f32 %v3699_v29, %v3683_v22  ;;  %v3917_v34 = vmul.f32 %v3091_v10, %v9846_v41  ;;  %v2794_v10 = vpop.xlane.xlu1 %2793  ;;  %v9848_v43 = vld [vmem:[#allocation27_spill] sm:$0xff]  ;;  %v9849_v0 = vld [vmem:[#allocation112_spill] sm:$0xff] }
 0x343   : > { %v3832_v20 = vadd.f32 %v3816_v60, %v3800_v8  ;;  %v3933_v24 = vmul.f32 %v3379_v21, %v9847_v51  ;;  %v8793_v7 = vpop.eup %5252  ;;  %v3591_v25 = vadd.f32 %v8784_v32, %v3575_v12  ;;  %v3965_v56 = vmul.f32 %v3667_v31, %v2053_v2  ;;  %v9851_v51 = vld [vmem:[#allocation113_spill] sm:$0xff] }
 0x344   : > { %v4019_v59 = vadd.f32 %v4003_v16, %v3902_v26  ;;  %v2570_v52 = vmul.f32 0.17677669, %v2554_v46  ;;  %v8796_v49 = vpop.eup %5254  ;;  %v3576_v44 = vadd.f32 %v8793_v7, %v8789_v19  ;;  %v3747_v30 = vadd.f32 %v3731_v50, %v3715_v6  ;;  %v9852_v26 = vld [vmem:[#allocation114_spill] sm:$0xff]  ;;  %v9854_v6 = vld [vmem:[#allocation135_spill] sm:$0xff] }
 0x345   : > { %v3864_v48 = vadd.f32 %v3848_v5, %v3832_v20  ;;  %v3949_v45 = vadd.f32 %v3933_v24, %v3917_v34  ;;  %5256 = vrcp.f32 %v3591_v25  ;;  %v2809_v14 = vmul.f32 0.17677669, %v2791_v47  ;;  %v9853_v5 = vld [vmem:[#allocation119_spill] sm:$0xff]  ;;  %v9855_v34 = vld [vmem:[#allocation120_spill] sm:$0xff] }
 0x346   : > { %v4042_v1 = vadd.f32 %v8440_v13, %v4019_v59  ;;  %v3402_v17 = vmax.f32 %v8706_v61, %v2570_v52  ;;  %v3592_v11 = vadd.f32 %v8796_v49, %v3576_v44  ;;  %v3768_v2 = vmul.f32 %v8366_v40, %v3747_v30  ;;  %v9856_v30 = vld [vmem:[#allocation121_spill] sm:$0xff] }
 0x347   : > { %v3885_v38 = vmul.f32 %v8382_v18, %v3864_v48  ;;  %v3981_v35 = vadd.f32 %v3965_v56, %v3949_v45  ;;  %v3417_v21 = vmax.f32 %v3401_v62, %v2809_v14  ;;  %v2810_v36 = vmul.f32 0.17677669, %v2794_v10 }
 0x348   : > { %4058 = vst.msk [vmem:[%s8452_s22 + $0x48] sm:$0xff] %vm595_vm0, %v4042_v1  ;;  %v2068_v46 = vadd.f32 %v8718_v53, %v9848_v43  ;;  %v3062_v31 = vmul.f32 %v9850_v54, %v9849_v0  ;;  %5258 = vrcp.f32 %v3592_v11  ;;  %v3078_v29 = vmul.f32 %v9850_v54, %v9851_v51  ;;  %v9857_v11 = vld [vmem:[#allocation50_spill] sm:$0xff] }
 0x349   : > { %v3901_v41 = vadd.f32 %v3885_v38, %v3768_v2  ;;  %v4002_v22 = vmul.f32 %v8387_v27, %v3981_v35  ;;  %v3433_v50 = vsub.f32 %v8704_v4, %v3417_v21  ;;  %v3481_v8 = vsub.f32 %v8709_v37, %v3417_v21  ;;  %v9858_v38 = vld [vmem:[#allocation11_spill] sm:$0xff] }
 0x34a   : > { %v3529_v60 = vsub.f32 %v2809_v14, %v3417_v21  ;;  %v3418_v62 = vmax.f32 %v3402_v17, %v2810_v36  ;;  %v3094_v16 = vmul.f32 %v9850_v54, %v9852_v26  ;;  %v3350_v20 = vmul.f32 %v9854_v6, %v9853_v5 }
 0x34b   : > { %v4018_v12 = vadd.f32 %v4002_v22, %v3901_v41  ;;  %v3366_v24 = vmul.f32 %v9854_v6, %v9855_v34  ;;  %v3463_v47 = vmul.f32 1.442695, %v3433_v50  ;;  %v3511_v25 = vmul.f32 1.442695, %v3481_v8  ;;  %v9859_v41 = vld [vmem:[#allocation28_spill] sm:$0xff]  ;;  %v9861_v8 = vld [vmem:[#allocation123_spill] sm:$0xff] }
 0x34c   : > { %v3559_v59 = vmul.f32 1.442695, %v3529_v60  ;;  %v3434_v4 = vsub.f32 %v8706_v61, %v3418_v62  ;;  %v3482_v56 = vsub.f32 %v2570_v52, %v3418_v62  ;;  %v3530_v44 = vsub.f32 %v2810_v36, %v3418_v62  ;;  %v9862_v62 = vld [vmem:[#allocation110_spill] sm:$0xff] }
 0x34d   : > { %v4041_v37 = vadd.f32 %v8440_v13, %v4018_v12  ;;  %v3382_v48 = vmul.f32 %v9854_v6, %v9856_v30  ;;  %5260 = vpow2.f32 %v3463_v47  ;;  %v3638_v10 = vmul.f32 %v8750_v23, %v8683_v9  ;;  %v9864_v6 = vld [vmem:[#allocation115_spill] sm:$0xff] }
 0x34e   : > { %v3465_v45 = vmul.f32 1.442695, %v3434_v4  ;;  %v3654_v1 = vmul.f32 %v8750_v23, %v8687_v63  ;;  %5262 = vpow2.f32 %v3511_v25  ;;  %v3513_v17 = vmul.f32 1.442695, %v3482_v56 }
 0x34f   : > { %4057 = vst.msk [vmem:[%s8452_s22 + $0x40] sm:$0xff] %vm595_vm0, %v4041_v37  ;;  %v3561_v61 = vmul.f32 1.442695, %v3530_v44  ;;  %v3670_v52 = vmul.f32 %v8750_v23, %v8690_v42  ;;  %v8837_v14 = vpop.eup %5256  ;;  %5264 = vpow2.f32 %v3559_v59  ;;  %v3686_v2 = vmul.f32 %v3062_v31, %v9857_v11  ;;  %v9867_v59 = vld [vmem:[#allocation118_spill] sm:$0xff] }
 0x350   : > { %v3702_v35 = vmul.f32 %v3350_v20, %v9858_v38  ;;  %v3734_v21 = vmul.f32 %v3638_v10, %v2068_v46  ;;  %5266 = vpow2.f32 %v3465_v45  ;;  %v3803_v9 = vmul.f32 %v3078_v29, %v9857_v11  ;;  %v9860_v29 = vld [vmem:[#allocation7_spill] sm:$0xff] }
 0x351   : > { %v3819_v63 = vmul.f32 %v3366_v24, %v9858_v38  ;;  %v3851_v36 = vmul.f32 %v3654_v1, %v2068_v46  ;;  %5268 = vpow2.f32 %v3513_v17  ;;  %v3920_v0 = vmul.f32 %v3094_v16, %v9857_v11  ;;  %v9863_v16 = vld [vmem:[#allocation111_spill] sm:$0xff]  ;;  %v9866_v24 = vld [vmem:[#allocation117_spill] sm:$0xff]  ;;  %v9869_v1 = vld [vmem:[#allocation12_spill] sm:$0xff] }
 0x352   : > { %v3718_v43 = vadd.f32 %v3702_v35, %v3686_v2  ;;  %v3936_v42 = vmul.f32 %v3382_v48, %v9858_v38  ;;  %v8845_v23 = vpop.eup %5258  ;;  %5270 = vpow2.f32 %v3561_v61  ;;  %v3968_v31 = vmul.f32 %v3670_v52, %v2068_v46  ;;  %v9865_v20 = vld [vmem:[#allocation131_spill] sm:$0xff]  ;;  %v9868_v48 = vld [vmem:[#allocation22_spill] sm:$0xff] }
 0x353   : > { %v3835_v54 = vadd.f32 %v3819_v63, %v3803_v9  ;;  %v2063_v22 = vadd.f32 %v8718_v53, %v9859_v41  ;;  %v3061_v60 = vmul.f32 %v9861_v8, %v9860_v29  ;;  %v3077_v12 = vmul.f32 %v9861_v8, %v9862_v62  ;;  %v9873_v29 = vld [vmem:[#allocation128_spill] sm:$0xff] }
 0x354   : > { %v3750_v51 = vadd.f32 %v3734_v21, %v3718_v43  ;;  %v3952_v50 = vadd.f32 %v3936_v42, %v3920_v0  ;;  %v3093_v5 = vmul.f32 %v9861_v8, %v9863_v16  ;;  %v3349_v34 = vmul.f32 %v9865_v20, %v9864_v6  ;;  %v9871_v0 = vld [vmem:[#allocation126_spill] sm:$0xff]  ;;  %v9872_v42 = vld [vmem:[#allocation144_spill] sm:$0xff] }
 0x355   : > { %v3867_v26 = vadd.f32 %v3851_v36, %v3835_v54  ;;  %v3365_v46 = vmul.f32 %v9865_v20, %v9866_v24  ;;  %v3381_v4 = vmul.f32 %v9865_v20, %v9867_v59  ;;  %v3637_v37 = vmul.f32 %v8736_v39, %v8667_v57  ;;  %v9870_v36 = vld [vmem:[#allocation54_spill] sm:$0xff]  ;;  %v9876_v24 = vld [vmem:[#allocation55_spill] sm:$0xff]  ;;  %v9877_v59 = vld [vmem:[#allocation136_spill] sm:$0xff] }
 0x356   : > { %v3771_v47 = vmul.f32 %v8366_v40, %v3750_v51  ;;  %v3984_v25 = vadd.f32 %v3968_v31, %v3952_v50  ;;  %v3653_v44 = vmul.f32 %v8736_v39, %v8673_v55  ;;  %v3669_v30 = vmul.f32 %v8736_v39, %v8678_v58 }
 0x357   : > { %v3888_v56 = vmul.f32 %v8382_v18, %v3867_v26  ;;  %v3685_v45 = vmul.f32 %v3061_v60, %v9868_v48  ;;  %v8870_v10 = vpop.eup %5260  ;;  %v3701_v17 = vmul.f32 %v3349_v34, %v9869_v1  ;;  %v3733_v61 = vmul.f32 %v3637_v37, %v2063_v22  ;;  %v9874_v26 = vld [vmem:[#allocation129_spill] sm:$0xff]  ;;  %v9875_v34 = vld [vmem:[#allocation134_spill] sm:$0xff] }
 0x358   : > { %v4005_v40 = vmul.f32 %v8387_v27, %v3984_v25  ;;  %v3802_v52 = vmul.f32 %v3077_v12, %v9868_v48  ;;  %v8875_v57 = vpop.eup %5262  ;;  %v3818_v11 = vmul.f32 %v3365_v46, %v9869_v1  ;;  %v3850_v55 = vmul.f32 %v3653_v44, %v2063_v22  ;;  %v9878_v37 = vld [vmem:[#allocation137_spill] sm:$0xff]  ;;  %v8926_v44 = vld [vmem:[%s9067_s7 + $0x2] ss:$0 sm:$0xff] }
 0x359   : > { %v3904_v18 = vadd.f32 %v3888_v56, %v3771_v47  ;;  %v3919_v2 = vmul.f32 %v3093_v5, %v9868_v48  ;;  %v8879_v58 = vpop.eup %5264  ;;  %v3577_v39 = vadd.f32 %v8875_v57, %v8870_v10  ;;  %v3717_v38 = vadd.f32 %v3701_v17, %v3685_v45  ;;  %v8905_v5 = vld [vmem:[%s9067_s7] ss:$0 sm:$0xff]  ;;  %v9879_v17 = vld [vmem:[#allocation41_spill] sm:$0xff] }
 0x35a   : > { %v3935_v27 = vmul.f32 %v3381_v4, %v9869_v1  ;;  %v3967_v35 = vmul.f32 %v3669_v30, %v2063_v22  ;;  %v8884_v21 = vpop.eup %5266  ;;  %v3834_v63 = vadd.f32 %v3818_v11, %v3802_v52  ;;  %v2078_v43 = vadd.f32 %v8718_v53, %v9870_v36  ;;  %v9880_v52 = vld [vmem:[#allocation15_spill] sm:$0xff] }
 0x35b   : > { %v4021_v9 = vadd.f32 %v4005_v40, %v3904_v18  ;;  %v3064_v54 = vmul.f32 %v9872_v42, %v9871_v0  ;;  %v8890_v31 = vpop.eup %5268  ;;  %v3593_v41 = vadd.f32 %v8879_v58, %v3577_v39  ;;  %v3749_v51 = vadd.f32 %v3733_v61, %v3717_v38  ;;  %v9883_v36 = vld [vmem:[#allocation139_spill] sm:$0xff] }
 0x35c   : > { %v3951_v50 = vadd.f32 %v3935_v27, %v3919_v2  ;;  %v3080_v22 = vmul.f32 %v9872_v42, %v9873_v29  ;;  %v8895_v8 = vpop.eup %5270  ;;  %v3578_v60 = vadd.f32 %v8890_v31, %v8884_v21  ;;  %v3866_v12 = vadd.f32 %v3850_v55, %v3834_v63  ;;  %v9882_v63 = vld [vmem:[#allocation122_spill] sm:$0xff] }
 0x35d   : > { %v4044_v62 = vadd.f32 %v8440_v13, %v4021_v9  ;;  %v3096_v16 = vmul.f32 %v9872_v42, %v9874_v26  ;;  %5272 = vrcp.f32 %v3593_v41  ;;  %v3770_v6 = vmul.f32 %v8905_v5, %v3749_v51  ;;  %v8916_v13 = vld [vmem:[%s9067_s7 + $0x1] ss:$0 sm:$0xff]  ;;  %v8948_v42 = vld [vmem:[%s9068_s8] ss:$0 sm:$0xff] }
 0x35e   : > { %v3983_v20 = vadd.f32 %v3967_v35, %v3951_v50  ;;  %v3352_v46 = vmul.f32 %v9876_v24, %v9875_v34  ;;  %v3594_v47 = vadd.f32 %v8895_v8, %v3578_v60  ;;  %v3887_v25 = vmul.f32 %v8916_v13, %v3866_v12  ;;  %v9881_v35 = vld [vmem:[#allocation65_spill] sm:$0xff]  ;;  %v9884_v50 = vld [vmem:[#allocation124_spill] sm:$0xff] }
 0x35f   : > { %4060 = vst.msk [vmem:[%s8452_s22 + $0x58] sm:$0xff] %vm595_vm0, %v4044_v62  ;;  %v3368_v4 = vmul.f32 %v9876_v24, %v9877_v59  ;;  %v3384_v56 = vmul.f32 %v9876_v24, %v9878_v37  ;;  %v3640_v48 = vmul.f32 %v8845_v23, %v8789_v19  ;;  %v3656_v45 = vmul.f32 %v8845_v23, %v8793_v7  ;;  %v9886_v62 = vld [vmem:[#allocation130_spill] sm:$0xff]  ;;  %v9887_v12 = vld [vmem:[#allocation32_spill] sm:$0xff]  ;;  %v9889_v24 = vld [vmem:[#allocation133_spill] sm:$0xff] }
 0x360   : > { %v4004_v30 = vmul.f32 %v8926_v44, %v3983_v20  ;;  %v3672_v40 = vmul.f32 %v8845_v23, %v8796_v49  ;;  %5274 = vrcp.f32 %v3594_v47  ;;  %v3903_v1 = vadd.f32 %v3887_v25, %v3770_v6 }
 0x361   : > { %v3688_v61 = vmul.f32 %v3064_v54, %v9879_v17  ;;  %v3704_v18 = vmul.f32 %v3352_v46, %v9880_v52  ;;  %v3736_v11 = vmul.f32 %v3640_v48, %v2078_v43  ;;  %v3805_v55 = vmul.f32 %v3080_v22, %v9879_v17 }
 0x362   : > { %v3821_v2 = vmul.f32 %v3368_v4, %v9880_v52  ;;  %v3853_v39 = vmul.f32 %v3656_v45, %v2078_v43  ;;  %v4020_v38 = vadd.f32 %v4004_v30, %v3903_v1  ;;  %v3922_v7 = vmul.f32 %v3096_v16, %v9879_v17  ;;  %v9888_v16 = vld [vmem:[#allocation132_spill] sm:$0xff] }
 0x363   : > { %v3720_v19 = vadd.f32 %v3704_v18, %v3688_v61  ;;  %v3938_v27 = vmul.f32 %v3384_v56, %v9880_v52  ;;  %v3970_v23 = vmul.f32 %v3672_v40, %v2078_v43  ;;  %v2073_v9 = vadd.f32 %v8718_v53, %v9881_v35  ;;  %v9885_v43 = vld [vmem:[#allocation125_spill] sm:$0xff]  ;;  %v9890_v56 = vld [vmem:[#allocation43_spill] sm:$0xff]  ;;  %v9891_v45 = vld [vmem:[#allocation16_spill] sm:$0xff] }
 0x364   : > { %v3837_v49 = vadd.f32 %v3821_v2, %v3805_v55  ;;  %v3063_v0 = vmul.f32 %v9883_v36, %v9882_v63  ;;  %v4043_v54 = vadd.f32 %v8948_v42, %v4020_v38  ;;  %v3079_v29 = vmul.f32 %v9883_v36, %v9884_v50  ;;  %v9892_v38 = vld [vmem:[#allocation143_spill] sm:$0xff] }
 0x365   : > { %v3752_v41 = vadd.f32 %v3736_v11, %v3720_v19  ;;  %v3954_v51 = vadd.f32 %v3938_v27, %v3922_v7  ;;  %v3095_v60 = vmul.f32 %v9883_v36, %v9885_v43  ;;  %v3351_v26 = vmul.f32 %v9887_v12, %v9886_v62  ;;  %v9893_v19 = vld [vmem:[#allocation24_spill] sm:$0xff]  ;;  %v9894_v27 = vld [vmem:[#allocation145_spill] sm:$0xff]  ;;  %v9895_v63 = vld [vmem:[#allocation31_spill] sm:$0xff] }
 0x366   : > { %v3869_v22 = vadd.f32 %v3853_v39, %v3837_v49  ;;  %v3367_v6 = vmul.f32 %v9887_v12, %v9888_v16  ;;  %4059 = vst.msk [vmem:[%s8452_s22 + $0x50] sm:$0xff] %vm595_vm0, %v4043_v54  ;;  %v3383_v46 = vmul.f32 %v9887_v12, %v9889_v24  ;;  %v3639_v47 = vmul.f32 %v8837_v14, %v8773_v28  ;;  %v9897_v54 = vld [vmem:[#allocation37_spill] sm:$0xff] }
 0x367   : > { %v3773_v20 = vmul.f32 %v8905_v5, %v3752_v41  ;;  %v3986_v34 = vadd.f32 %v3970_v23, %v3954_v51  ;;  %v8966_v25 = vpop.eup %5272  ;;  %v3655_v4 = vmul.f32 %v8837_v14, %v8779_v3  ;;  %v3671_v37 = vmul.f32 %v8837_v14, %v8784_v32  ;;  %v9898_v51 = vld [vmem:[#allocation66_spill] sm:$0xff] }
 0x368   : > { %v3890_v59 = vmul.f32 %v8916_v13, %v3869_v22  ;;  %v3687_v30 = vmul.f32 %v3063_v0, %v9890_v56  ;;  %v3703_v40 = vmul.f32 %v3351_v26, %v9891_v45  ;;  %v3735_v1 = vmul.f32 %v3639_v47, %v2073_v9  ;;  %v9896_v0 = vld [vmem:[#allocation25_spill] sm:$0xff] }
 0x369   : > { %v4007_v48 = vmul.f32 %v8926_v44, %v3986_v34  ;;  %v3804_v17 = vmul.f32 %v3079_v29, %v9890_v56  ;;  %v3820_v61 = vmul.f32 %v3367_v6, %v9891_v45  ;;  %v3852_v52 = vmul.f32 %v3655_v4, %v2073_v9  ;;  %v9899_v29 = vld [vmem:[#allocation30_spill] sm:$0xff]  ;;  %v9901_v34 = vld [vmem:[#allocation19_spill] sm:$0xff] }
 0x36a   : > { %v3906_v28 = vadd.f32 %v3890_v59, %v3773_v20  ;;  %v3921_v18 = vmul.f32 %v3095_v60, %v9890_v56  ;;  %v5275_v11 = vpop.eup %5274  ;;  %v3719_v3 = vadd.f32 %v3703_v40, %v3687_v30  ;;  %v3937_v55 = vmul.f32 %v3383_v46, %v9891_v45  ;;  %v9900_v6 = vld [vmem:[#allocation42_spill] sm:$0xff] }
 0x36b   : > { %v3969_v32 = vmul.f32 %v3671_v37, %v2073_v9  ;;  %v2088_v14 = vadd.f32 %v8718_v53, %v8465_v33  ;;  %v3836_v39 = vadd.f32 %v3820_v61, %v3804_v17  ;;  %v3066_v7 = vmul.f32 %v9893_v19, %v9892_v38  ;;  %v9902_v17 = vld [vmem:[#allocation138_spill] sm:$0xff] }
 0x36c   : > { %v4023_v2 = vadd.f32 %v4007_v48, %v3906_v28  ;;  %v3082_v49 = vmul.f32 %v9893_v19, %v9894_v27  ;;  %v3751_v23 = vadd.f32 %v3735_v1, %v3719_v3  ;;  %v3953_v35 = vadd.f32 %v3937_v55, %v3921_v18  ;;  %v9903_v28 = vld [vmem:[#allocation23_spill] sm:$0xff]  ;;  %v9905_v55 = vld [vmem:[#allocation141_spill] sm:$0xff] }
 0x36d   : > { %v3098_v36 = vmul.f32 %v9893_v19, %v9895_v63  ;;  %v3354_v9 = vmul.f32 %v9897_v54, %v9896_v0  ;;  %v3868_v33 = vadd.f32 %v3852_v52, %v3836_v39  ;;  %v3370_v50 = vmul.f32 %v9897_v54, %v9898_v51  ;;  %v9904_v52 = vld [vmem:[#allocation140_spill] sm:$0xff] }
 0x36e   : > { %v4046_v41 = vadd.f32 %v8948_v42, %v4023_v2  ;;  %v3386_v22 = vmul.f32 %v9897_v54, %v9899_v29  ;;  %v3772_v43 = vmul.f32 %v8905_v5, %v3751_v23  ;;  %v3985_v60 = vadd.f32 %v3969_v32, %v3953_v35  ;;  %v9906_v2 = vld [vmem:[#allocation74_spill] sm:$0xff]  ;;  %v9907_v39 = vld [vmem:[#allocation72_spill] sm:$0xff] }
 0x36f   : > { %v3642_v62 = vmul.f32 %v5275_v11, %v8884_v21  ;;  %v3658_v12 = vmul.f32 %v5275_v11, %v8890_v31  ;;  %v3889_v26 = vmul.f32 %v8916_v13, %v3868_v33  ;;  %v3674_v16 = vmul.f32 %v5275_v11, %v8895_v8  ;;  %v9910_v0 = vld [vmem:[#allocation44_spill] sm:$0xff] }
 0x370   : > { %4062 = vst.msk [vmem:[%s8452_s22 + $0x68] sm:$0xff] %vm595_vm0, %v4046_v41  ;;  %v3690_v20 = vmul.f32 %v3066_v7, %v9900_v6  ;;  %v3706_v24 = vmul.f32 %v3354_v9, %v9901_v34  ;;  %v4006_v46 = vmul.f32 %v8926_v44, %v3985_v60  ;;  %v3807_v59 = vmul.f32 %v3082_v49, %v9900_v6  ;;  %v9909_v7 = vld [vmem:[#allocation13_spill] sm:$0xff]  ;;  %v9911_v9 = vld [vmem:[#allocation20_spill] sm:$0xff] }
 0x371   : > { %v3738_v47 = vmul.f32 %v3642_v62, %v2088_v14  ;;  %v3823_v4 = vmul.f32 %v3370_v50, %v9901_v34  ;;  %v3905_v21 = vadd.f32 %v3889_v26, %v3772_v43  ;;  %v3855_v31 = vmul.f32 %v3658_v12, %v2088_v14 }
 0x372   : > { %v3722_v37 = vadd.f32 %v3706_v24, %v3690_v20  ;;  %v3924_v56 = vmul.f32 %v3098_v36, %v9900_v6  ;;  %v3940_v48 = vmul.f32 %v3386_v22, %v9901_v34  ;;  %v3972_v8 = vmul.f32 %v3674_v16, %v2088_v14 }
 0x373   : > { %v3839_v30 = vadd.f32 %v3823_v4, %v3807_v59  ;;  %v2083_v45 = vadd.f32 %v8718_v53, %v8500_v15  ;;  %v4022_v40 = vadd.f32 %v4006_v46, %v3905_v21  ;;  %v3065_v61 = vmul.f32 %v9903_v28, %v9902_v17  ;;  %v9908_v53 = vld [vmem:[#allocation58_spill] sm:$0xff] }
 0x374   : > { %v3754_v1 = vadd.f32 %v3738_v47, %v3722_v37  ;;  %v3081_v18 = vmul.f32 %v9903_v28, %v9904_v52  ;;  %v3956_v3 = vadd.f32 %v3940_v48, %v3924_v56  ;;  %v3097_v32 = vmul.f32 %v9903_v28, %v9905_v55 }
 0x375   : > { %v3871_v11 = vadd.f32 %v3855_v31, %v3839_v30  ;;  %v3353_v14 = vmul.f32 %v9907_v39, %v9906_v2  ;;  %v4045_v38 = vadd.f32 %v8948_v42, %v4022_v40  ;;  %v3369_v19 = vmul.f32 %v9907_v39, %v9908_v53 }
 0x376   : > { %v3775_v15 = vmul.f32 %v8905_v5, %v3754_v1  ;;  %v3385_v27 = vmul.f32 %v9907_v39, %v9909_v7  ;;  %v3988_v23 = vadd.f32 %v3972_v8, %v3956_v3  ;;  %v3641_v35 = vmul.f32 %v8966_v25, %v8870_v10 }
 0x377   : > { %v3892_v49 = vmul.f32 %v8916_v13, %v3871_v11  ;;  %v3657_v63 = vmul.f32 %v8966_v25, %v8875_v57  ;;  %4061 = vst.msk [vmem:[%s8452_s22 + $0x60] sm:$0xff] %vm595_vm0, %v4045_v38  ;;  %v3673_v36 = vmul.f32 %v8966_v25, %v8879_v58  ;;  %v3689_v54 = vmul.f32 %v3065_v61, %v9910_v0 }
 0x378   : > { %v3705_v41 = vmul.f32 %v3353_v14, %v9911_v9  ;;  %v3806_v33 = vmul.f32 %v3081_v18, %v9910_v0  ;;  %v4009_v50 = vmul.f32 %v8926_v44, %v3988_v23  ;;  %v3737_v29 = vmul.f32 %v3641_v35, %v2083_v45 }
 0x379   : > { %v3908_v51 = vadd.f32 %v3892_v49, %v3775_v15  ;;  %v3822_v10 = vmul.f32 %v3369_v19, %v9911_v9  ;;  %v3854_v57 = vmul.f32 %v3657_v63, %v2083_v45  ;;  %v3923_v43 = vmul.f32 %v3097_v32, %v9910_v0 }
 0x37a   : > { %v3721_v22 = vadd.f32 %v3705_v41, %v3689_v54  ;;  %v3939_v60 = vmul.f32 %v3385_v27, %v9911_v9  ;;  %v3971_v62 = vmul.f32 %v3673_v36, %v2083_v45 }
 0x37b   : > { %v4025_v58 = vadd.f32 %v4009_v50, %v3908_v51  ;;  %v3838_v25 = vadd.f32 %v3822_v10, %v3806_v33 }
 0x37c   : > { %v3753_v12 = vadd.f32 %v3737_v29, %v3721_v22  ;;  %v3955_v26 = vadd.f32 %v3939_v60, %v3923_v43 }
 0x37d   : > { %v4048_v16 = vadd.f32 %v8948_v42, %v4025_v58  ;;  %v3870_v6 = vadd.f32 %v3854_v57, %v3838_v25 }
 0x37e   : > { %v3774_v20 = vmul.f32 %v8905_v5, %v3753_v12  ;;  %v3987_v34 = vadd.f32 %v3971_v62, %v3955_v26 }
 0x37f   : > { %4064 = vst.msk [vmem:[%s8452_s22 + $0x78] sm:$0xff] %vm595_vm0, %v4048_v16  ;;  %v3891_v24 = vmul.f32 %v8916_v13, %v3870_v6 }
 0x380   : > { %v4008_v47 = vmul.f32 %v8926_v44, %v3987_v34 }
 0x381   : > { %v3907_v46 = vadd.f32 %v3891_v24, %v3774_v20 }
 0x383   : > { %v4024_v59 = vadd.f32 %v4008_v47, %v3907_v46 }
 0x385   : > { %v4047_v4 = vadd.f32 %v8948_v42, %v4024_v59 }
 0x387   : > { %4063 = vst.msk [vmem:[%s8452_s22 + $0x70] sm:$0xff] %vm595_vm0, %v4047_v4 }
 0x388 PF: > { %p16_p9 = scmp.ge.s32.totalorder %s5373_s13, 4   ;;  %s9912_s30 = smov %s5300_s10 }
 0x389   : > { %s9913_s10 = smov %s5382_s16  ;;  %s9914_s11 = smov %s5373_s13 }
 0x38a   :  { %18 = sbr.rel (!%p16_p9) target bundleno = 2 (0x2), region = 131 }

</bundles_post_ra>
